<compile_context>
chip_gen: v7x
topology: tpu7x:2x2x1
jax: 0.10.0
libtpu: 0.0.40
codegen_flags: <defaults>
</compile_context>

<pallas_src>
import math

import jax
import jax.numpy as jnp
from jax.experimental import pallas as pl
from jax.experimental.pallas import tpu as pltpu

# ----------------------- small, deterministic config -----------------------
B = 2                 # batch
SR = 16000            # sample rate
HOP = 256             # hop length
KLEN = 512            # CQT kernel (frame) length
T_SAMPLES = KLEN + 7 * HOP     # -> 8 encoder frames
N_BINS = 32           # CQT bins  (== d_model so encoder input matches T5)
D_MODEL = 32
N_HEADS = 4
D_KV = 8
INNER = N_HEADS * D_KV          # 32
D_FF = 64
N_LAYERS = 2          # encoder layers == decoder layers
VOCAB = 32            # voc_dict["n_voc"]
PAD_ID = 0            # voc_dict["pad"] == decoder_start_token_id
TD = 8                # label / decoder length
REL_BUCKETS = 8
REL_MAX_DIST = 20
LN_EPS = 1e-6
CQT_EPS = 1e-5
NEG_INF = -1e9


# ========================= in-kernel helper functions =========================

def _rms(x, w):
    # T5 LayerNorm (RMS): x * rsqrt(mean(x^2) + eps) * w     (w: (1, D))
    var = jnp.mean(x * x, axis=-1, keepdims=True)
    return x * jax.lax.rsqrt(var + LN_EPS) * w


def _new_gelu(x):
    # NewGELU (tanh approximation) -- T5 v1.1 "gated-gelu"
    return 0.5 * x * (1.0 + jnp.tanh(0.7978845608028654 * (x + 0.044715 * x * x * x)))


def _softmax_rows(s):
    s = s - jnp.max(s, axis=-1, keepdims=True)
    p = jnp.exp(s)
    # divide on the EUP (approx reciprocal) instead of the VALU
    return p * pl.reciprocal(jnp.sum(p, axis=-1, keepdims=True), approx=True)


def _head_stack(x, bdx):
    """(N, C) -> (H*N, H*C) block-diagonal replication.

    Row block h holds x in column block h and zeros elsewhere, so that a single
    K = H*C matmul against a head-stacked weight (H*C, dkv) yields per-head
    projections stacked along sublanes -- no in-kernel transposes/reshapes.
    Built purely with sublane/lane concats + a 0/1 mask.
    """
    xr = jnp.concatenate([x] * N_HEADS, axis=0)               # (H*N, C)
    return jnp.concatenate([xr] * N_HEADS, axis=1) * bdx      # (H*N, H*C)


def _mha(q_s, k_s, v_s, wo16, bias, bdc):
    """Head-stacked multi-head attention core (T5: no 1/sqrt(dk) scaling).

    q_s:(H*Nq, dkv)  k_s,v_s:(H*Nk, dkv)  wo16:(INNER, D) bf16
    bias:(H*Nq, H*Nk) additive (rel-pos / causal on head-diagonal blocks, -1e9
    between heads)  bdc:(H*Nq, INNER) 0/1 head block-diagonal mask.
    Returns (Nq, D) f32 == concat_heads(softmax(Q K^T + bias) V) @ Wo.
    """
    # one score matmul for all heads; cross-head blocks are killed by the bias
    s = jax.lax.dot_general(
        q_s.astype(jnp.bfloat16), k_s.astype(jnp.bfloat16),
        (((1,), (1,)), ((), ())), preferred_element_type=jnp.float32)   # (H*Nq, H*Nk)
    p = _softmax_rows(s + bias)                                          # one softmax
    ctx = jnp.dot(p.astype(jnp.bfloat16), v_s.astype(jnp.bfloat16),
                  preferred_element_type=jnp.float32)                    # (H*Nq, dkv)
    # place each head's ctx into its lane block so the head concat folds into one matmul
    ctx_bd = jnp.concatenate([ctx] * N_HEADS, axis=1) * bdc              # (H*Nq, INNER)
    o_st = jnp.dot(ctx_bd.astype(jnp.bfloat16), wo16,
                   preferred_element_type=jnp.float32)                   # (H*Nq, D)
    nq = o_st.shape[0] // N_HEADS
    out = o_st[0:nq]
    for hh in range(1, N_HEADS):                                         # sum head row-blocks
        out = out + o_st[hh * nq:(hh + 1) * nq]
    return out


def _gated_ff(x, wi16, wfo16):
    gi = jnp.dot(x.astype(jnp.bfloat16), wi16,
                 preferred_element_type=jnp.float32)          # (N, 2*D_FF) = 128 lanes
    g = _new_gelu(gi[:, :D_FF]) * gi[:, D_FF:]
    return jnp.dot(g.astype(jnp.bfloat16), wfo16, preferred_element_type=jnp.float32)


# =============================== the fused kernel ===============================

def _seq2seq_kernel(
        # per-batch inputs
        frames_ref, basis_ref, dec_emb_ref, labels_ref,
        # attention biases / head block-diagonal masks (batch-invariant, VMEM-resident)
        enc_bias_ref, dec_bias_ref, cross_bias_ref, bdx_ref, bdc_ref,
        # encoder weights (stacked over layers)
        e_ln1_ref, e_wqkv_ref, e_wo_ref, e_ln2_ref, e_wi_ref, e_wfo_ref, e_fln_ref,
        # decoder weights (stacked over layers)
        d_ln1_ref, d_wqkv_ref, d_wo1_ref, d_ln2_ref, d_wqc_ref, d_wkvc_ref, d_wo2_ref,
        d_ln3_ref, d_wi_ref, d_wfo_ref, d_fln_ref, lm_ref,
        # outputs
        logits_ref, loss_tok_ref):
    bdx = bdx_ref[...]
    bdc = bdc_ref[...]

    # ---------------- log-CQT front end ----------------
    proj = jnp.dot(frames_ref[...].astype(jnp.bfloat16), basis_ref[...],
                   preferred_element_type=jnp.float32)                    # (Te, 2*NB)
    re = proj[:, :N_BINS]
    im = proj[:, N_BINS:]
    # log(max(|cqt|, eps)) == 0.5 * log(max(re^2+im^2, eps^2))   (no sqrt)
    h = 0.5 * jnp.log(jnp.maximum(re * re + im * im, CQT_EPS * CQT_EPS))  # (Te, D)

    # ---------------- encoder (all layers) ----------------
    enc_bias = enc_bias_ref[...]
    for layer in range(N_LAYERS):   # N_LAYERS small -> keep Python-unrolled
        x_bd = _head_stack(_rms(h, e_ln1_ref[layer]), bdx)                # (H*Te, H*D)
        qkv = jnp.dot(x_bd.astype(jnp.bfloat16), e_wqkv_ref[layer],
                      preferred_element_type=jnp.float32)                 # (H*Te, 3*dkv)
        h = h + _mha(qkv[:, :D_KV], qkv[:, D_KV:2 * D_KV], qkv[:, 2 * D_KV:],
                     e_wo_ref[layer], enc_bias, bdc)
        h = h + _gated_ff(_rms(h, e_ln2_ref[layer]), e_wi_ref[layer], e_wfo_ref[layer])
    enc_h = _rms(h, e_fln_ref[...])
    # block-diag expansion of the encoder output, reused by every cross-attention
    enc_bd16 = _head_stack(enc_h, bdx).astype(jnp.bfloat16)               # (H*Te, H*D)

    # ---------------- decoder (all layers) ----------------
    dec_bias = dec_bias_ref[...]
    cross_bias = cross_bias_ref[...]
    h = dec_emb_ref[...]
    for layer in range(N_LAYERS):
        # self attention (causal + rel-pos)
        x_bd = _head_stack(_rms(h, d_ln1_ref[layer]), bdx)
        qkv = jnp.dot(x_bd.astype(jnp.bfloat16), d_wqkv_ref[layer],
                      preferred_element_type=jnp.float32)
        h = h + _mha(qkv[:, :D_KV], qkv[:, D_KV:2 * D_KV], qkv[:, 2 * D_KV:],
                     d_wo1_ref[layer], dec_bias, bdc)
        # cross attention over the encoder output
        x_bd = _head_stack(_rms(h, d_ln2_ref[layer]), bdx)
        q_s = jnp.dot(x_bd.astype(jnp.bfloat16), d_wqc_ref[layer],
                      preferred_element_type=jnp.float32)                 # (H*Td, dkv)
        kv = jnp.dot(enc_bd16, d_wkvc_ref[layer],
                     preferred_element_type=jnp.float32)                  # (H*Te, 2*dkv)
        h = h + _mha(q_s, kv[:, :D_KV], kv[:, D_KV:], d_wo2_ref[layer], cross_bias, bdc)
        # gated-GELU feed forward
        h = h + _gated_ff(_rms(h, d_ln3_ref[layer]), d_wi_ref[layer], d_wfo_ref[layer])
    h = _rms(h, d_fln_ref[...])

    logits = jnp.dot(h.astype(jnp.bfloat16), lm_ref[...],
                     preferred_element_type=jnp.float32)                  # (Td, V)
    logits_ref[...] = logits

    # per-token cross entropy (ignore_index = -100); the mean over valid tokens is
    # finalized in the wrapper because the batch axis is a parallel grid dimension.
    labels = labels_ref[...]                                              # (Td, 1) int32
    m = jnp.max(logits, axis=-1, keepdims=True)
    lse = jnp.log(jnp.sum(jnp.exp(logits - m), axis=-1, keepdims=True)) + m
    iota = jax.lax.broadcasted_iota(jnp.int32, logits.shape, 1)
    tgt = jnp.sum(jnp.where(iota == labels, logits, 0.0), axis=-1, keepdims=True)
    valid = (labels != -100).astype(jnp.float32)
    loss_tok_ref[...] = (lse - tgt) * valid


# =========================== plain-JAX glue (setup) ===========================

def frame_signal(wav, klen, hop):
    b, t = wav.shape
    nf = (t - klen) // hop + 1
    idx = jnp.arange(nf)[:, None] * hop + jnp.arange(klen)[None, :]
    return wav[:, idx]                       # (B, F, klen)


def make_cqt_basis(klen, n_bins, sr, fmin=32.7, bins_per_octave=12):
    t = jnp.arange(klen, dtype=jnp.float32)
    window = 0.5 - 0.5 * jnp.cos(2.0 * jnp.pi * t / (klen - 1))        # Hann
    freqs = fmin * 2.0 ** (jnp.arange(n_bins, dtype=jnp.float32) / bins_per_octave)
    phase = 2.0 * jnp.pi * freqs[None, :] * t[:, None] / sr            # (klen, n_bins)
    norm = 2.0 / klen
    cos_b = window[:, None] * jnp.cos(phase) * norm
    sin_b = window[:, None] * jnp.sin(phase) * norm
    # fused cos|sin basis -> a single MXU pass in the kernel
    return jnp.concatenate([cos_b, sin_b], axis=1).astype(jnp.float32)  # (klen, 2*n_bins)


def _relative_position_bucket(rel_pos, bidirectional, num_buckets, max_distance):
    rel_buckets = 0
    if bidirectional:
        num_buckets //= 2
        rel_buckets += (rel_pos > 0).astype(jnp.int32) * num_buckets
        rel_pos = jnp.abs(rel_pos)
    else:
        rel_pos = -jnp.minimum(rel_pos, 0)
    max_exact = num_buckets // 2
    is_small = rel_pos < max_exact
    rp_f = jnp.maximum(rel_pos.astype(jnp.float32), 1.0)
    rel_if_large = max_exact + (
        jnp.log(rp_f / max_exact) / math.log(max_distance / max_exact)
        * (num_buckets - max_exact)
    ).astype(jnp.int32)
    rel_if_large = jnp.minimum(rel_if_large, num_buckets - 1)
    rel_buckets += jnp.where(is_small, rel_pos, rel_if_large)
    return rel_buckets


def compute_position_bias(rel_emb, q_len, k_len, bidirectional):
    ctx = jnp.arange(q_len)[:, None]
    mem = jnp.arange(k_len)[None, :]
    buckets = _relative_position_bucket(mem - ctx, bidirectional,
                                        REL_BUCKETS, REL_MAX_DIST)
    values = rel_emb[buckets]                        # (q_len, k_len, H)
    return jnp.transpose(values, (2, 0, 1))          # (H, q_len, k_len)


def head_stack_bias(pos_hqk):
    """(H, Q, K) per-head additive bias -> (H*Q, H*K) for head-stacked attention:
    per-head bias on the diagonal blocks, -1e9 between heads."""
    h, q, k = pos_hqk.shape
    r = jnp.arange(h * q)
    c = jnp.arange(h * k)
    same_head = (r[:, None] // q) == (c[None, :] // k)
    vals = pos_hqk[r[:, None] // q, r[:, None] % q, c[None, :] % k]
    return jnp.where(same_head, vals, NEG_INF).astype(jnp.float32)


def block_diag_mask(nheads, n, c):
    """0/1 mask of shape (H*n, H*c) with ones on the head-diagonal blocks."""
    r = jnp.arange(nheads * n)
    col = jnp.arange(nheads * c)
    return ((r[:, None] // n) == (col[None, :] // c)).astype(jnp.float32)


def shift_right(labels):
    shifted = jnp.concatenate(
        [jnp.full((labels.shape[0], 1), PAD_ID, labels.dtype), labels[:, :-1]],
        axis=1)
    return jnp.where(shifted == -100, PAD_ID, shifted)


def _const_spec(a):
    nd = a.ndim

    def im(i):
        return (0,) * nd
    return pl.BlockSpec(a.shape, im)


def seq2seq_forward(params, wav, labels):
    """Equivalent of Seq2SeqTranscriber.forward(wav, labels) -> (loss, logits)."""
    b = wav.shape[0]
    frames = frame_signal(wav, KLEN, HOP)                        # (B, Te, K)
    te = frames.shape[1]
    td = labels.shape[1]
    assert te == td, "head block-diagonal masks assume Te == Td"
    frames2d = frames.reshape(b * te, KLEN)

    dec_ids = shift_right(labels)
    dec_emb = jnp.take(params["shared"], dec_ids.reshape(-1), axis=0)     # (B*Td, D)
    labels2d = labels.reshape(-1, 1).astype(jnp.int32)

    enc = params["encoder"]
    dec = params["decoder"]

    # head-stacked additive biases (-1e9 between heads); batch-invariant
    enc_pos = compute_position_bias(enc["rel_emb"], te, te, True)         # (H, Te, Te)
    dec_pos = compute_position_bias(dec["rel_emb"], td, td, False)
    causal = jnp.where(jnp.arange(td)[:, None] >= jnp.arange(td)[None, :], 0.0, NEG_INF)
    enc_bias = head_stack_bias(enc_pos)                                   # (H*Te, H*Te)
    dec_bias = head_stack_bias(dec_pos + causal[None])                    # (H*Td, H*Td)
    cross_bias = head_stack_bias(jnp.zeros((N_HEADS, td, te), jnp.float32))

    # block-diagonal 0/1 masks used to build the head-stacked activations in-kernel
    bdx = block_diag_mask(N_HEADS, te, D_MODEL)    # (H*N, H*D)   = (32, 128)
    bdc = block_diag_mask(N_HEADS, td, D_KV)       # (H*N, INNER) = (32, 32)

    logits2d, loss_tok = pl.pallas_call(
        _seq2seq_kernel,
        grid=(b,),
        in_specs=[
            pl.BlockSpec((te, KLEN), lambda i: (i, 0)),          # frames (per batch)
            _const_spec(params["cqt_basis"]),
            pl.BlockSpec((td, D_MODEL), lambda i: (i, 0)),       # decoder embeddings
            pl.BlockSpec((td, 1), lambda i: (i, 0)),             # labels
            _const_spec(enc_bias), _const_spec(dec_bias), _const_spec(cross_bias),
            _const_spec(bdx), _const_spec(bdc),
            _const_spec(enc["ln1"]), _const_spec(enc["wqkv"]), _const_spec(enc["wo"]),
            _const_spec(enc["ln2"]), _const_spec(enc["wi"]), _const_spec(enc["wfo"]),
            _const_spec(enc["final_ln"]),
            _const_spec(dec["ln1"]), _const_spec(dec["wqkv"]), _const_spec(dec["wo1"]),
            _const_spec(dec["ln2"]), _const_spec(dec["wqc"]), _const_spec(dec["wkvc"]),
            _const_spec(dec["wo2"]), _const_spec(dec["ln3"]), _const_spec(dec["wi"]),
            _const_spec(dec["wfo"]), _const_spec(dec["final_ln"]),
            _const_spec(params["lm_head"]),
        ],
        out_specs=(
            pl.BlockSpec((td, VOCAB), lambda i: (i, 0)),
            pl.BlockSpec((td, 1), lambda i: (i, 0)),
        ),
        out_shape=(
            jax.ShapeDtypeStruct((b * td, VOCAB), jnp.float32),
            jax.ShapeDtypeStruct((b * td, 1), jnp.float32),
        ),
        compiler_params=pltpu.CompilerParams(dimension_semantics=("parallel",)),
    )(frames2d, params["cqt_basis"], dec_emb, labels2d,
      enc_bias, dec_bias, cross_bias, bdx, bdc,
      enc["ln1"], enc["wqkv"], enc["wo"], enc["ln2"], enc["wi"], enc["wfo"],
      enc["final_ln"],
      dec["ln1"], dec["wqkv"], dec["wo1"], dec["ln2"], dec["wqc"], dec["wkvc"],
      dec["wo2"], dec["ln3"], dec["wi"], dec["wfo"], dec["final_ln"],
      params["lm_head"])

    # cross-entropy mean over valid tokens (ignore_index = -100), T5-style
    valid = (labels2d != -100).astype(jnp.float32)
    loss = jnp.sum(loss_tok) / jnp.maximum(jnp.sum(valid), 1.0)
    return loss, logits2d.reshape(b, td, VOCAB)


# ------------------------------ parameter init -------------------------------

def _head_stack_weight(w):
    """Logical T5 projection (D, H*dkv) -> head-stacked (H*D, dkv):
    row block h holds head h's columns (matches the in-kernel block-diag input)."""
    return jnp.transpose(w.reshape(D_MODEL, N_HEADS, D_KV),
                         (1, 0, 2)).reshape(N_HEADS * D_MODEL, D_KV)


def init_params(key):
    keys = iter(jax.random.split(key, 64))

    def nrm(shape, scale=0.05):
        return scale * jax.random.normal(next(keys), shape, jnp.float32)

    def ln_stack():
        return jnp.ones((N_LAYERS, 1, D_MODEL), jnp.float32)

    def qkv_hs():      # fused, head-stacked Q|K|V: (H*D, 3*dkv)
        return jnp.concatenate([_head_stack_weight(nrm((D_MODEL, INNER)))
                                for _ in range(3)], axis=-1)

    def kv_hs():       # fused, head-stacked cross K|V: (H*D, 2*dkv)
        return jnp.concatenate([_head_stack_weight(nrm((D_MODEL, INNER)))
                                for _ in range(2)], axis=-1)

    def bf(x):         # MXU operands stored bf16 (accumulation stays f32 in-kernel)
        return x.astype(jnp.bfloat16)

    enc = {
        "ln1": ln_stack(),
        "wqkv": bf(jnp.stack([qkv_hs() for _ in range(N_LAYERS)])),       # (L, H*D, 3*dkv)
        "wo": bf(jnp.stack([nrm((INNER, D_MODEL)) for _ in range(N_LAYERS)])),
        "ln2": ln_stack(),
        "wi": bf(jnp.stack([nrm((D_MODEL, 2 * D_FF)) for _ in range(N_LAYERS)])),
        "wfo": bf(jnp.stack([nrm((D_FF, D_MODEL)) for _ in range(N_LAYERS)])),
        "final_ln": jnp.ones((1, D_MODEL), jnp.float32),
        "rel_emb": nrm((REL_BUCKETS, N_HEADS)),
    }
    dec = {
        "ln1": ln_stack(),
        "wqkv": bf(jnp.stack([qkv_hs() for _ in range(N_LAYERS)])),
        "wo1": bf(jnp.stack([nrm((INNER, D_MODEL)) for _ in range(N_LAYERS)])),
        "ln2": ln_stack(),
        "wqc": bf(jnp.stack([_head_stack_weight(nrm((D_MODEL, INNER)))
                             for _ in range(N_LAYERS)])),                 # (L, H*D, dkv)
        "wkvc": bf(jnp.stack([kv_hs() for _ in range(N_LAYERS)])),        # (L, H*D, 2*dkv)
        "wo2": bf(jnp.stack([nrm((INNER, D_MODEL)) for _ in range(N_LAYERS)])),
        "ln3": ln_stack(),
        "wi": bf(jnp.stack([nrm((D_MODEL, 2 * D_FF)) for _ in range(N_LAYERS)])),
        "wfo": bf(jnp.stack([nrm((D_FF, D_MODEL)) for _ in range(N_LAYERS)])),
        "final_ln": jnp.ones((1, D_MODEL), jnp.float32),
        "rel_emb": nrm((REL_BUCKETS, N_HEADS)),
    }
    return {
        "cqt_basis": make_cqt_basis(KLEN, N_BINS, SR).astype(jnp.bfloat16),
        "encoder": enc,
        "decoder": dec,
        "shared": nrm((VOCAB, D_MODEL)),
        "lm_head": bf(nrm((D_MODEL, VOCAB))),
    }


if __name__ == "__main__":
    key = jax.random.PRNGKey(0)
    pkey, wkey, lkey = jax.random.split(key, 3)
    params = init_params(pkey)
    wav = jax.random.normal(wkey, (B, T_SAMPLES), jnp.float32)
    labels = jax.random.randint(lkey, (B, TD), 0, VOCAB, jnp.int32)

    loss, logits = jax.jit(seq2seq_forward)(params, wav, labels)
    jax.block_until_ready((loss, logits))
    assert logits.shape == (B, TD, VOCAB)
    assert bool(jnp.isfinite(loss))
    print("KERNEL_OK")
</pallas_src>

<mosaic_0001>
module attributes {stable_mosaic.version = 11 : i64} {
  func.func private @main(%arg0: i32) attributes {dimension_semantics = [#tpu.dimension_semantics<core_parallel>], iteration_bounds = array<i64: 2>, tpu.core_type = #tpu.core_type<sc_scalar_subcore>, window_params = []} {
    return
  }
}

module attributes {stable_mosaic.version = 11 : i64} {
  func.func private @main(%arg0: i32) attributes {dimension_semantics = [#tpu.dimension_semantics<core_parallel>], iteration_bounds = array<i64: 2>, tpu.core_type = #tpu.core_type<sc_scalar_subcore>, window_params = []} {
    return
  }
}

module attributes {stable_mosaic.version = 11 : i64} {
  func.func @_seq2seq_kernel(%arg0: i32, %arg1: memref<8x512xf32, #tpu.memory_space<vmem>>, %arg2: memref<512x64xbf16, #tpu.memory_space<vmem>>, %arg3: memref<8x32xf32, #tpu.memory_space<vmem>>, %arg4: memref<8x1xi32, #tpu.memory_space<vmem>>, %arg5: memref<32x32xf32, #tpu.memory_space<vmem>>, %arg6: memref<32x32xf32, #tpu.memory_space<vmem>>, %arg7: memref<32x32xf32, #tpu.memory_space<vmem>>, %arg8: memref<32x128xf32, #tpu.memory_space<vmem>>, %arg9: memref<32x32xf32, #tpu.memory_space<vmem>>, %arg10: memref<2x1x32xf32, #tpu.memory_space<vmem>>, %arg11: memref<2x128x24xbf16, #tpu.memory_space<vmem>>, %arg12: memref<2x32x32xbf16, #tpu.memory_space<vmem>>, %arg13: memref<2x1x32xf32, #tpu.memory_space<vmem>>, %arg14: memref<2x32x128xbf16, #tpu.memory_space<vmem>>, %arg15: memref<2x64x32xbf16, #tpu.memory_space<vmem>>, %arg16: memref<1x32xf32, #tpu.memory_space<vmem>>, %arg17: memref<2x1x32xf32, #tpu.memory_space<vmem>>, %arg18: memref<2x128x24xbf16, #tpu.memory_space<vmem>>, %arg19: memref<2x32x32xbf16, #tpu.memory_space<vmem>>, %arg20: memref<2x1x32xf32, #tpu.memory_space<vmem>>, %arg21: memref<2x128x8xbf16, #tpu.memory_space<vmem>>, %arg22: memref<2x128x16xbf16, #tpu.memory_space<vmem>>, %arg23: memref<2x32x32xbf16, #tpu.memory_space<vmem>>, %arg24: memref<2x1x32xf32, #tpu.memory_space<vmem>>, %arg25: memref<2x32x128xbf16, #tpu.memory_space<vmem>>, %arg26: memref<2x64x32xbf16, #tpu.memory_space<vmem>>, %arg27: memref<1x32xf32, #tpu.memory_space<vmem>>, %arg28: memref<32x32xbf16, #tpu.memory_space<vmem>>, %arg29: memref<8x32xf32, #tpu.memory_space<vmem>>, %arg30: memref<8x1xf32, #tpu.memory_space<vmem>>) attributes {dimension_semantics = [#tpu.dimension_semantics<parallel>], iteration_bounds = array<i64: 2>, scalar_prefetch = 0 : i64, scratch_operands = 0 : i64, tpu.core_type = #tpu.core_type<tc>, window_params = [{transform_indices = @transform_0, window_bounds = array<i64: 8, 512>}, {pipeline_mode = #tpu.pipeline_mode<synchronous>, transform_indices = @transform_1, window_bounds = array<i64: 512, 64>}, {transform_indices = @transform_2, window_bounds = array<i64: 8, 32>}, {transform_indices = @transform_3, window_bounds = array<i64: 8, 1>}, {pipeline_mode = #tpu.pipeline_mode<synchronous>, transform_indices = @transform_4, window_bounds = array<i64: 32, 32>}, {pipeline_mode = #tpu.pipeline_mode<synchronous>, transform_indices = @transform_5, window_bounds = array<i64: 32, 32>}, {pipeline_mode = #tpu.pipeline_mode<synchronous>, transform_indices = @transform_6, window_bounds = array<i64: 32, 32>}, {pipeline_mode = #tpu.pipeline_mode<synchronous>, transform_indices = @transform_7, window_bounds = array<i64: 32, 128>}, {pipeline_mode = #tpu.pipeline_mode<synchronous>, transform_indices = @transform_8, window_bounds = array<i64: 32, 32>}, {pipeline_mode = #tpu.pipeline_mode<synchronous>, transform_indices = @transform_9, window_bounds = array<i64: 2, 1, 32>}, {pipeline_mode = #tpu.pipeline_mode<synchronous>, transform_indices = @transform_10, window_bounds = array<i64: 2, 128, 24>}, {pipeline_mode = #tpu.pipeline_mode<synchronous>, transform_indices = @transform_11, window_bounds = array<i64: 2, 32, 32>}, {pipeline_mode = #tpu.pipeline_mode<synchronous>, transform_indices = @transform_12, window_bounds = array<i64: 2, 1, 32>}, {pipeline_mode = #tpu.pipeline_mode<synchronous>, transform_indices = @transform_13, window_bounds = array<i64: 2, 32, 128>}, {pipeline_mode = #tpu.pipeline_mode<synchronous>, transform_indices = @transform_14, window_bounds = array<i64: 2, 64, 32>}, {pipeline_mode = #tpu.pipeline_mode<synchronous>, transform_indices = @transform_15, window_bounds = array<i64: 1, 32>}, {pipeline_mode = #tpu.pipeline_mode<synchronous>, transform_indices = @transform_16, window_bounds = array<i64: 2, 1, 32>}, {pipeline_mode = #tpu.pipeline_mode<synchronous>, transform_indices = @transform_17, window_bounds = array<i64: 2, 128, 24>}, {pipeline_mode = #tpu.pipeline_mode<synchronous>, transform_indices = @transform_18, window_bounds = array<i64: 2, 32, 32>}, {pipeline_mode = #tpu.pipeline_mode<synchronous>, transform_indices = @transform_19, window_bounds = array<i64: 2, 1, 32>}, {pipeline_mode = #tpu.pipeline_mode<synchronous>, transform_indices = @transform_20, window_bounds = array<i64: 2, 128, 8>}, {pipeline_mode = #tpu.pipeline_mode<synchronous>, transform_indices = @transform_21, window_bounds = array<i64: 2, 128, 16>}, {pipeline_mode = #tpu.pipeline_mode<synchronous>, transform_indices = @transform_22, window_bounds = array<i64: 2, 32, 32>}, {pipeline_mode = #tpu.pipeline_mode<synchronous>, transform_indices = @transform_23, window_bounds = array<i64: 2, 1, 32>}, {pipeline_mode = #tpu.pipeline_mode<synchronous>, transform_indices = @transform_24, window_bounds = array<i64: 2, 32, 128>}, {pipeline_mode = #tpu.pipeline_mode<synchronous>, transform_indices = @transform_25, window_bounds = array<i64: 2, 64, 32>}, {pipeline_mode = #tpu.pipeline_mode<synchronous>, transform_indices = @transform_26, window_bounds = array<i64: 1, 32>}, {pipeline_mode = #tpu.pipeline_mode<synchronous>, transform_indices = @transform_27, window_bounds = array<i64: 32, 32>}, {transform_indices = @transform_28, window_bounds = array<i64: 8, 32>}, {transform_indices = @transform_29, window_bounds = array<i64: 8, 1>}]} {
    %c0 = arith.constant 0 : index
    %c0_0 = arith.constant 0 : index
    %0 = vector.load %arg8[%c0, %c0_0] : memref<32x128xf32, #tpu.memory_space<vmem>>, vector<32x128xf32>
    %c0_1 = arith.constant 0 : index
    %c0_2 = arith.constant 0 : index
    %1 = vector.load %arg9[%c0_1, %c0_2] : memref<32x32xf32, #tpu.memory_space<vmem>>, vector<32x32xf32>
    %c0_3 = arith.constant 0 : index
    %c0_4 = arith.constant 0 : index
    %2 = vector.load %arg1[%c0_3, %c0_4] : memref<8x512xf32, #tpu.memory_space<vmem>>, vector<8x512xf32>
    %3 = arith.truncf %2 : vector<8x512xf32> to vector<8x512xbf16>
    %c0_5 = arith.constant 0 : index
    %c0_6 = arith.constant 0 : index
    %4 = vector.load %arg2[%c0_5, %c0_6] : memref<512x64xbf16, #tpu.memory_space<vmem>>, vector<512x64xbf16>
    %cst = arith.constant dense<0.000000e+00> : vector<8x64xf32>
    %5 = tpu.matmul %3, %4, %cst {dimension_numbers = #tpu.dot_dimension_numbers<[1], [0], [0], [1], [0, 0, 1, 1], [], []>} : vector<8x512xbf16>, vector<512x64xbf16>, vector<8x64xf32> -> vector<8x64xf32>
    %6 = vector.extract_strided_slice %5 {offsets = [0, 0], sizes = [8, 32], strides = [1, 1]} : vector<8x64xf32> to vector<8x32xf32>
    %7 = vector.extract_strided_slice %5 {offsets = [0, 32], sizes = [8, 32], strides = [1, 1]} : vector<8x64xf32> to vector<8x32xf32>
    %8 = arith.mulf %6, %6 : vector<8x32xf32>
    %9 = arith.mulf %7, %7 : vector<8x32xf32>
    %10 = arith.addf %8, %9 : vector<8x32xf32>
    %cst_7 = arith.constant 1.000000e-10 : f32
    %11 = vector.broadcast %cst_7 : f32 to vector<8x32xf32>
    %12 = arith.maximumf %10, %11 : vector<8x32xf32>
    %13 = math.log %12 : vector<8x32xf32>
    %cst_8 = arith.constant 5.000000e-01 : f32
    %14 = vector.broadcast %cst_8 : f32 to vector<8x32xf32>
    %15 = arith.mulf %14, %13 : vector<8x32xf32>
    %c0_9 = arith.constant 0 : index
    %c0_10 = arith.constant 0 : index
    %16 = vector.load %arg5[%c0_9, %c0_10] : memref<32x32xf32, #tpu.memory_space<vmem>>, vector<32x32xf32>
    %c0_11 = arith.constant 0 : index
    %c0_12 = arith.constant 0 : index
    %c0_13 = arith.constant 0 : index
    %17 = vector.load %arg10[%c0_11, %c0_12, %c0_13] : memref<2x1x32xf32, #tpu.memory_space<vmem>>, vector<1x1x32xf32>
    %18 = vector.shape_cast %17 : vector<1x1x32xf32> to vector<1x32xf32>
    %19 = arith.mulf %15, %15 : vector<8x32xf32>
    %cst_14 = arith.constant dense<0.000000e+00> : vector<8xf32>
    %20 = vector.multi_reduction <add>, %19, %cst_14 [1] : vector<8x32xf32> to vector<8xf32>
    %21 = vector.shape_cast %20 : vector<8xf32> to vector<8x1xf32>
    %cst_15 = arith.constant 3.200000e+01 : f32
    %22 = vector.broadcast %cst_15 : f32 to vector<8x1xf32>
    %23 = arith.divf %21, %22 : vector<8x1xf32>
    %cst_16 = arith.constant 9.99999997E-7 : f32
    %24 = vector.broadcast %cst_16 : f32 to vector<8x1xf32>
    %25 = arith.addf %23, %24 : vector<8x1xf32>
    %26 = math.rsqrt %25 : vector<8x1xf32>
    %27 = vector.broadcast %26 : vector<8x1xf32> to vector<8x32xf32>
    %28 = arith.mulf %15, %27 : vector<8x32xf32>
    %29 = vector.broadcast %18 : vector<1x32xf32> to vector<8x32xf32>
    %30 = arith.mulf %28, %29 : vector<8x32xf32>
    %31 = tpu.concatenate %30, %30, %30, %30 in 0 : vector<8x32xf32>, vector<8x32xf32>, vector<8x32xf32>, vector<8x32xf32> -> vector<32x32xf32>
    %32 = tpu.concatenate %31, %31, %31, %31 in 1 : vector<32x32xf32>, vector<32x32xf32>, vector<32x32xf32>, vector<32x32xf32> -> vector<32x128xf32>
    %33 = arith.mulf %32, %0 : vector<32x128xf32>
    %34 = arith.truncf %33 : vector<32x128xf32> to vector<32x128xbf16>
    %c0_17 = arith.constant 0 : index
    %c0_18 = arith.constant 0 : index
    %c0_19 = arith.constant 0 : index
    %35 = vector.load %arg11[%c0_17, %c0_18, %c0_19] : memref<2x128x24xbf16, #tpu.memory_space<vmem>>, vector<1x128x24xbf16>
    %36 = vector.shape_cast %35 : vector<1x128x24xbf16> to vector<128x24xbf16>
    %cst_20 = arith.constant dense<0.000000e+00> : vector<32x24xf32>
    %37 = tpu.matmul %34, %36, %cst_20 {dimension_numbers = #tpu.dot_dimension_numbers<[1], [0], [0], [1], [0, 0, 1, 1], [], []>} : vector<32x128xbf16>, vector<128x24xbf16>, vector<32x24xf32> -> vector<32x24xf32>
    %38 = vector.extract_strided_slice %37 {offsets = [0, 0], sizes = [32, 8], strides = [1, 1]} : vector<32x24xf32> to vector<32x8xf32>
    %39 = vector.extract_strided_slice %37 {offsets = [0, 8], sizes = [32, 8], strides = [1, 1]} : vector<32x24xf32> to vector<32x8xf32>
    %40 = vector.extract_strided_slice %37 {offsets = [0, 16], sizes = [32, 8], strides = [1, 1]} : vector<32x24xf32> to vector<32x8xf32>
    %c0_21 = arith.constant 0 : index
    %c0_22 = arith.constant 0 : index
    %c0_23 = arith.constant 0 : index
    %41 = vector.load %arg12[%c0_21, %c0_22, %c0_23] : memref<2x32x32xbf16, #tpu.memory_space<vmem>>, vector<1x32x32xbf16>
    %42 = vector.shape_cast %41 : vector<1x32x32xbf16> to vector<32x32xbf16>
    %43 = arith.truncf %38 : vector<32x8xf32> to vector<32x8xbf16>
    %44 = arith.truncf %39 : vector<32x8xf32> to vector<32x8xbf16>
    %cst_24 = arith.constant dense<0.000000e+00> : vector<32x32xf32>
    %45 = tpu.matmul %43, %44, %cst_24 {dimension_numbers = #tpu.dot_dimension_numbers<[1], [1], [0], [0], [0, 0, 1, 0], [], []>} : vector<32x8xbf16>, vector<32x8xbf16>, vector<32x32xf32> -> vector<32x32xf32>
    %46 = arith.addf %45, %16 : vector<32x32xf32>
    %cst_25 = arith.constant dense<0xFF800000> : vector<32xf32>
    %47 = vector.multi_reduction <maximumf>, %46, %cst_25 [1] : vector<32x32xf32> to vector<32xf32>
    %48 = vector.shape_cast %47 : vector<32xf32> to vector<32x1xf32>
    %49 = vector.broadcast %48 : vector<32x1xf32> to vector<32x32xf32>
    %50 = arith.subf %46, %49 : vector<32x32xf32>
    %51 = math.exp %50 : vector<32x32xf32>
    %cst_26 = arith.constant dense<0.000000e+00> : vector<32xf32>
    %52 = vector.multi_reduction <add>, %51, %cst_26 [1] : vector<32x32xf32> to vector<32xf32>
    %53 = vector.shape_cast %52 : vector<32xf32> to vector<32x1xf32>
    %54 = tpu.reciprocal %53 {approx = true} : vector<32x1xf32> -> vector<32x1xf32>
    %55 = vector.broadcast %54 : vector<32x1xf32> to vector<32x32xf32>
    %56 = arith.mulf %51, %55 : vector<32x32xf32>
    %57 = arith.truncf %56 : vector<32x32xf32> to vector<32x32xbf16>
    %58 = arith.truncf %40 : vector<32x8xf32> to vector<32x8xbf16>
    %cst_27 = arith.constant dense<0.000000e+00> : vector<32x8xf32>
    %59 = tpu.matmul %57, %58, %cst_27 {dimension_numbers = #tpu.dot_dimension_numbers<[1], [0], [0], [1], [0, 0, 1, 1], [], []>} : vector<32x32xbf16>, vector<32x8xbf16>, vector<32x8xf32> -> vector<32x8xf32>
    %60 = tpu.concatenate %59, %59, %59, %59 in 1 : vector<32x8xf32>, vector<32x8xf32>, vector<32x8xf32>, vector<32x8xf32> -> vector<32x32xf32>
    %61 = arith.mulf %60, %1 : vector<32x32xf32>
    %62 = arith.truncf %61 : vector<32x32xf32> to vector<32x32xbf16>
    %cst_28 = arith.constant dense<0.000000e+00> : vector<32x32xf32>
    %63 = tpu.matmul %62, %42, %cst_28 {dimension_numbers = #tpu.dot_dimension_numbers<[1], [0], [0], [1], [0, 0, 1, 1], [], []>} : vector<32x32xbf16>, vector<32x32xbf16>, vector<32x32xf32> -> vector<32x32xf32>
    %64 = vector.extract_strided_slice %63 {offsets = [0, 0], sizes = [8, 32], strides = [1, 1]} : vector<32x32xf32> to vector<8x32xf32>
    %65 = vector.extract_strided_slice %63 {offsets = [8, 0], sizes = [8, 32], strides = [1, 1]} : vector<32x32xf32> to vector<8x32xf32>
    %66 = arith.addf %64, %65 : vector<8x32xf32>
    %67 = vector.extract_strided_slice %63 {offsets = [16, 0], sizes = [8, 32], strides = [1, 1]} : vector<32x32xf32> to vector<8x32xf32>
    %68 = arith.addf %66, %67 : vector<8x32xf32>
    %69 = vector.extract_strided_slice %63 {offsets = [24, 0], sizes = [8, 32], strides = [1, 1]} : vector<32x32xf32> to vector<8x32xf32>
    %70 = arith.addf %68, %69 : vector<8x32xf32>
    %71 = arith.addf %15, %70 : vector<8x32xf32>
    %c0_29 = arith.constant 0 : index
    %c0_30 = arith.constant 0 : index
    %c0_31 = arith.constant 0 : index
    %72 = vector.load %arg13[%c0_29, %c0_30, %c0_31] : memref<2x1x32xf32, #tpu.memory_space<vmem>>, vector<1x1x32xf32>
    %73 = vector.shape_cast %72 : vector<1x1x32xf32> to vector<1x32xf32>
    %74 = arith.mulf %71, %71 : vector<8x32xf32>
    %cst_32 = arith.constant dense<0.000000e+00> : vector<8xf32>
    %75 = vector.multi_reduction <add>, %74, %cst_32 [1] : vector<8x32xf32> to vector<8xf32>
    %76 = vector.shape_cast %75 : vector<8xf32> to vector<8x1xf32>
    %cst_33 = arith.constant 3.200000e+01 : f32
    %77 = vector.broadcast %cst_33 : f32 to vector<8x1xf32>
    %78 = arith.divf %76, %77 : vector<8x1xf32>
    %cst_34 = arith.constant 9.99999997E-7 : f32
    %79 = vector.broadcast %cst_34 : f32 to vector<8x1xf32>
    %80 = arith.addf %78, %79 : vector<8x1xf32>
    %81 = math.rsqrt %80 : vector<8x1xf32>
    %82 = vector.broadcast %81 : vector<8x1xf32> to vector<8x32xf32>
    %83 = arith.mulf %71, %82 : vector<8x32xf32>
    %84 = vector.broadcast %73 : vector<1x32xf32> to vector<8x32xf32>
    %85 = arith.mulf %83, %84 : vector<8x32xf32>
    %c0_35 = arith.constant 0 : index
    %c0_36 = arith.constant 0 : index
    %c0_37 = arith.constant 0 : index
    %86 = vector.load %arg14[%c0_35, %c0_36, %c0_37] : memref<2x32x128xbf16, #tpu.memory_space<vmem>>, vector<1x32x128xbf16>
    %87 = vector.shape_cast %86 : vector<1x32x128xbf16> to vector<32x128xbf16>
    %c0_38 = arith.constant 0 : index
    %c0_39 = arith.constant 0 : index
    %c0_40 = arith.constant 0 : index
    %88 = vector.load %arg15[%c0_38, %c0_39, %c0_40] : memref<2x64x32xbf16, #tpu.memory_space<vmem>>, vector<1x64x32xbf16>
    %89 = vector.shape_cast %88 : vector<1x64x32xbf16> to vector<64x32xbf16>
    %90 = arith.truncf %85 : vector<8x32xf32> to vector<8x32xbf16>
    %cst_41 = arith.constant dense<0.000000e+00> : vector<8x128xf32>
    %91 = tpu.matmul %90, %87, %cst_41 {dimension_numbers = #tpu.dot_dimension_numbers<[1], [0], [0], [1], [0, 0, 1, 1], [], []>} : vector<8x32xbf16>, vector<32x128xbf16>, vector<8x128xf32> -> vector<8x128xf32>
    %92 = vector.extract_strided_slice %91 {offsets = [0, 0], sizes = [8, 64], strides = [1, 1]} : vector<8x128xf32> to vector<8x64xf32>
    %cst_42 = arith.constant 5.000000e-01 : f32
    %93 = vector.broadcast %cst_42 : f32 to vector<8x64xf32>
    %94 = arith.mulf %93, %92 : vector<8x64xf32>
    %cst_43 = arith.constant 4.471500e-02 : f32
    %95 = vector.broadcast %cst_43 : f32 to vector<8x64xf32>
    %96 = arith.mulf %95, %92 : vector<8x64xf32>
    %97 = arith.mulf %96, %92 : vector<8x64xf32>
    %98 = arith.mulf %97, %92 : vector<8x64xf32>
    %99 = arith.addf %92, %98 : vector<8x64xf32>
    %cst_44 = arith.constant 0.797884583 : f32
    %100 = vector.broadcast %cst_44 : f32 to vector<8x64xf32>
    %101 = arith.mulf %100, %99 : vector<8x64xf32>
    %102 = math.tanh %101 : vector<8x64xf32>
    %cst_45 = arith.constant 1.000000e+00 : f32
    %103 = vector.broadcast %cst_45 : f32 to vector<8x64xf32>
    %104 = arith.addf %103, %102 : vector<8x64xf32>
    %105 = arith.mulf %94, %104 : vector<8x64xf32>
    %106 = vector.extract_strided_slice %91 {offsets = [0, 64], sizes = [8, 64], strides = [1, 1]} : vector<8x128xf32> to vector<8x64xf32>
    %107 = arith.mulf %105, %106 : vector<8x64xf32>
    %108 = arith.truncf %107 : vector<8x64xf32> to vector<8x64xbf16>
    %cst_46 = arith.constant dense<0.000000e+00> : vector<8x32xf32>
    %109 = tpu.matmul %108, %89, %cst_46 {dimension_numbers = #tpu.dot_dimension_numbers<[1], [0], [0], [1], [0, 0, 1, 1], [], []>} : vector<8x64xbf16>, vector<64x32xbf16>, vector<8x32xf32> -> vector<8x32xf32>
    %110 = arith.addf %71, %109 : vector<8x32xf32>
    %c1 = arith.constant 1 : index
    %c0_47 = arith.constant 0 : index
    %c0_48 = arith.constant 0 : index
    %111 = vector.load %arg10[%c1, %c0_47, %c0_48] : memref<2x1x32xf32, #tpu.memory_space<vmem>>, vector<1x1x32xf32>
    %112 = vector.shape_cast %111 : vector<1x1x32xf32> to vector<1x32xf32>
    %113 = arith.mulf %110, %110 : vector<8x32xf32>
    %cst_49 = arith.constant dense<0.000000e+00> : vector<8xf32>
    %114 = vector.multi_reduction <add>, %113, %cst_49 [1] : vector<8x32xf32> to vector<8xf32>
    %115 = vector.shape_cast %114 : vector<8xf32> to vector<8x1xf32>
    %cst_50 = arith.constant 3.200000e+01 : f32
    %116 = vector.broadcast %cst_50 : f32 to vector<8x1xf32>
    %117 = arith.divf %115, %116 : vector<8x1xf32>
    %cst_51 = arith.constant 9.99999997E-7 : f32
    %118 = vector.broadcast %cst_51 : f32 to vector<8x1xf32>
    %119 = arith.addf %117, %118 : vector<8x1xf32>
    %120 = math.rsqrt %119 : vector<8x1xf32>
    %121 = vector.broadcast %120 : vector<8x1xf32> to vector<8x32xf32>
    %122 = arith.mulf %110, %121 : vector<8x32xf32>
    %123 = vector.broadcast %112 : vector<1x32xf32> to vector<8x32xf32>
    %124 = arith.mulf %122, %123 : vector<8x32xf32>
    %125 = tpu.concatenate %124, %124, %124, %124 in 0 : vector<8x32xf32>, vector<8x32xf32>, vector<8x32xf32>, vector<8x32xf32> -> vector<32x32xf32>
    %126 = tpu.concatenate %125, %125, %125, %125 in 1 : vector<32x32xf32>, vector<32x32xf32>, vector<32x32xf32>, vector<32x32xf32> -> vector<32x128xf32>
    %127 = arith.mulf %126, %0 : vector<32x128xf32>
    %128 = arith.truncf %127 : vector<32x128xf32> to vector<32x128xbf16>
    %c1_52 = arith.constant 1 : index
    %c0_53 = arith.constant 0 : index
    %c0_54 = arith.constant 0 : index
    %129 = vector.load %arg11[%c1_52, %c0_53, %c0_54] : memref<2x128x24xbf16, #tpu.memory_space<vmem>>, vector<1x128x24xbf16>
    %130 = vector.shape_cast %129 : vector<1x128x24xbf16> to vector<128x24xbf16>
    %cst_55 = arith.constant dense<0.000000e+00> : vector<32x24xf32>
    %131 = tpu.matmul %128, %130, %cst_55 {dimension_numbers = #tpu.dot_dimension_numbers<[1], [0], [0], [1], [0, 0, 1, 1], [], []>} : vector<32x128xbf16>, vector<128x24xbf16>, vector<32x24xf32> -> vector<32x24xf32>
    %132 = vector.extract_strided_slice %131 {offsets = [0, 0], sizes = [32, 8], strides = [1, 1]} : vector<32x24xf32> to vector<32x8xf32>
    %133 = vector.extract_strided_slice %131 {offsets = [0, 8], sizes = [32, 8], strides = [1, 1]} : vector<32x24xf32> to vector<32x8xf32>
    %134 = vector.extract_strided_slice %131 {offsets = [0, 16], sizes = [32, 8], strides = [1, 1]} : vector<32x24xf32> to vector<32x8xf32>
    %c1_56 = arith.constant 1 : index
    %c0_57 = arith.constant 0 : index
    %c0_58 = arith.constant 0 : index
    %135 = vector.load %arg12[%c1_56, %c0_57, %c0_58] : memref<2x32x32xbf16, #tpu.memory_space<vmem>>, vector<1x32x32xbf16>
    %136 = vector.shape_cast %135 : vector<1x32x32xbf16> to vector<32x32xbf16>
    %137 = arith.truncf %132 : vector<32x8xf32> to vector<32x8xbf16>
    %138 = arith.truncf %133 : vector<32x8xf32> to vector<32x8xbf16>
    %cst_59 = arith.constant dense<0.000000e+00> : vector<32x32xf32>
    %139 = tpu.matmul %137, %138, %cst_59 {dimension_numbers = #tpu.dot_dimension_numbers<[1], [1], [0], [0], [0, 0, 1, 0], [], []>} : vector<32x8xbf16>, vector<32x8xbf16>, vector<32x32xf32> -> vector<32x32xf32>
    %140 = arith.addf %139, %16 : vector<32x32xf32>
    %cst_60 = arith.constant dense<0xFF800000> : vector<32xf32>
    %141 = vector.multi_reduction <maximumf>, %140, %cst_60 [1] : vector<32x32xf32> to vector<32xf32>
    %142 = vector.shape_cast %141 : vector<32xf32> to vector<32x1xf32>
    %143 = vector.broadcast %142 : vector<32x1xf32> to vector<32x32xf32>
    %144 = arith.subf %140, %143 : vector<32x32xf32>
    %145 = math.exp %144 : vector<32x32xf32>
    %cst_61 = arith.constant dense<0.000000e+00> : vector<32xf32>
    %146 = vector.multi_reduction <add>, %145, %cst_61 [1] : vector<32x32xf32> to vector<32xf32>
    %147 = vector.shape_cast %146 : vector<32xf32> to vector<32x1xf32>
    %148 = tpu.reciprocal %147 {approx = true} : vector<32x1xf32> -> vector<32x1xf32>
    %149 = vector.broadcast %148 : vector<32x1xf32> to vector<32x32xf32>
    %150 = arith.mulf %145, %149 : vector<32x32xf32>
    %151 = arith.truncf %150 : vector<32x32xf32> to vector<32x32xbf16>
    %152 = arith.truncf %134 : vector<32x8xf32> to vector<32x8xbf16>
    %cst_62 = arith.constant dense<0.000000e+00> : vector<32x8xf32>
    %153 = tpu.matmul %151, %152, %cst_62 {dimension_numbers = #tpu.dot_dimension_numbers<[1], [0], [0], [1], [0, 0, 1, 1], [], []>} : vector<32x32xbf16>, vector<32x8xbf16>, vector<32x8xf32> -> vector<32x8xf32>
    %154 = tpu.concatenate %153, %153, %153, %153 in 1 : vector<32x8xf32>, vector<32x8xf32>, vector<32x8xf32>, vector<32x8xf32> -> vector<32x32xf32>
    %155 = arith.mulf %154, %1 : vector<32x32xf32>
    %156 = arith.truncf %155 : vector<32x32xf32> to vector<32x32xbf16>
    %cst_63 = arith.constant dense<0.000000e+00> : vector<32x32xf32>
    %157 = tpu.matmul %156, %136, %cst_63 {dimension_numbers = #tpu.dot_dimension_numbers<[1], [0], [0], [1], [0, 0, 1, 1], [], []>} : vector<32x32xbf16>, vector<32x32xbf16>, vector<32x32xf32> -> vector<32x32xf32>
    %158 = vector.extract_strided_slice %157 {offsets = [0, 0], sizes = [8, 32], strides = [1, 1]} : vector<32x32xf32> to vector<8x32xf32>
    %159 = vector.extract_strided_slice %157 {offsets = [8, 0], sizes = [8, 32], strides = [1, 1]} : vector<32x32xf32> to vector<8x32xf32>
    %160 = arith.addf %158, %159 : vector<8x32xf32>
    %161 = vector.extract_strided_slice %157 {offsets = [16, 0], sizes = [8, 32], strides = [1, 1]} : vector<32x32xf32> to vector<8x32xf32>
    %162 = arith.addf %160, %161 : vector<8x32xf32>
    %163 = vector.extract_strided_slice %157 {offsets = [24, 0], sizes = [8, 32], strides = [1, 1]} : vector<32x32xf32> to vector<8x32xf32>
    %164 = arith.addf %162, %163 : vector<8x32xf32>
    %165 = arith.addf %110, %164 : vector<8x32xf32>
    %c1_64 = arith.constant 1 : index
    %c0_65 = arith.constant 0 : index
    %c0_66 = arith.constant 0 : index
    %166 = vector.load %arg13[%c1_64, %c0_65, %c0_66] : memref<2x1x32xf32, #tpu.memory_space<vmem>>, vector<1x1x32xf32>
    %167 = vector.shape_cast %166 : vector<1x1x32xf32> to vector<1x32xf32>
    %168 = arith.mulf %165, %165 : vector<8x32xf32>
    %cst_67 = arith.constant dense<0.000000e+00> : vector<8xf32>
    %169 = vector.multi_reduction <add>, %168, %cst_67 [1] : vector<8x32xf32> to vector<8xf32>
    %170 = vector.shape_cast %169 : vector<8xf32> to vector<8x1xf32>
    %cst_68 = arith.constant 3.200000e+01 : f32
    %171 = vector.broadcast %cst_68 : f32 to vector<8x1xf32>
    %172 = arith.divf %170, %171 : vector<8x1xf32>
    %cst_69 = arith.constant 9.99999997E-7 : f32
    %173 = vector.broadcast %cst_69 : f32 to vector<8x1xf32>
    %174 = arith.addf %172, %173 : vector<8x1xf32>
    %175 = math.rsqrt %174 : vector<8x1xf32>
    %176 = vector.broadcast %175 : vector<8x1xf32> to vector<8x32xf32>
    %177 = arith.mulf %165, %176 : vector<8x32xf32>
    %178 = vector.broadcast %167 : vector<1x32xf32> to vector<8x32xf32>
    %179 = arith.mulf %177, %178 : vector<8x32xf32>
    %c1_70 = arith.constant 1 : index
    %c0_71 = arith.constant 0 : index
    %c0_72 = arith.constant 0 : index
    %180 = vector.load %arg14[%c1_70, %c0_71, %c0_72] : memref<2x32x128xbf16, #tpu.memory_space<vmem>>, vector<1x32x128xbf16>
    %181 = vector.shape_cast %180 : vector<1x32x128xbf16> to vector<32x128xbf16>
    %c1_73 = arith.constant 1 : index
    %c0_74 = arith.constant 0 : index
    %c0_75 = arith.constant 0 : index
    %182 = vector.load %arg15[%c1_73, %c0_74, %c0_75] : memref<2x64x32xbf16, #tpu.memory_space<vmem>>, vector<1x64x32xbf16>
    %183 = vector.shape_cast %182 : vector<1x64x32xbf16> to vector<64x32xbf16>
    %184 = arith.truncf %179 : vector<8x32xf32> to vector<8x32xbf16>
    %cst_76 = arith.constant dense<0.000000e+00> : vector<8x128xf32>
    %185 = tpu.matmul %184, %181, %cst_76 {dimension_numbers = #tpu.dot_dimension_numbers<[1], [0], [0], [1], [0, 0, 1, 1], [], []>} : vector<8x32xbf16>, vector<32x128xbf16>, vector<8x128xf32> -> vector<8x128xf32>
    %186 = vector.extract_strided_slice %185 {offsets = [0, 0], sizes = [8, 64], strides = [1, 1]} : vector<8x128xf32> to vector<8x64xf32>
    %cst_77 = arith.constant 5.000000e-01 : f32
    %187 = vector.broadcast %cst_77 : f32 to vector<8x64xf32>
    %188 = arith.mulf %187, %186 : vector<8x64xf32>
    %cst_78 = arith.constant 4.471500e-02 : f32
    %189 = vector.broadcast %cst_78 : f32 to vector<8x64xf32>
    %190 = arith.mulf %189, %186 : vector<8x64xf32>
    %191 = arith.mulf %190, %186 : vector<8x64xf32>
    %192 = arith.mulf %191, %186 : vector<8x64xf32>
    %193 = arith.addf %186, %192 : vector<8x64xf32>
    %cst_79 = arith.constant 0.797884583 : f32
    %194 = vector.broadcast %cst_79 : f32 to vector<8x64xf32>
    %195 = arith.mulf %194, %193 : vector<8x64xf32>
    %196 = math.tanh %195 : vector<8x64xf32>
    %cst_80 = arith.constant 1.000000e+00 : f32
    %197 = vector.broadcast %cst_80 : f32 to vector<8x64xf32>
    %198 = arith.addf %197, %196 : vector<8x64xf32>
    %199 = arith.mulf %188, %198 : vector<8x64xf32>
    %200 = vector.extract_strided_slice %185 {offsets = [0, 64], sizes = [8, 64], strides = [1, 1]} : vector<8x128xf32> to vector<8x64xf32>
    %201 = arith.mulf %199, %200 : vector<8x64xf32>
    %202 = arith.truncf %201 : vector<8x64xf32> to vector<8x64xbf16>
    %cst_81 = arith.constant dense<0.000000e+00> : vector<8x32xf32>
    %203 = tpu.matmul %202, %183, %cst_81 {dimension_numbers = #tpu.dot_dimension_numbers<[1], [0], [0], [1], [0, 0, 1, 1], [], []>} : vector<8x64xbf16>, vector<64x32xbf16>, vector<8x32xf32> -> vector<8x32xf32>
    %204 = arith.addf %165, %203 : vector<8x32xf32>
    %c0_82 = arith.constant 0 : index
    %c0_83 = arith.constant 0 : index
    %205 = vector.load %arg16[%c0_82, %c0_83] : memref<1x32xf32, #tpu.memory_space<vmem>>, vector<1x32xf32>
    %206 = arith.mulf %204, %204 : vector<8x32xf32>
    %cst_84 = arith.constant dense<0.000000e+00> : vector<8xf32>
    %207 = vector.multi_reduction <add>, %206, %cst_84 [1] : vector<8x32xf32> to vector<8xf32>
    %208 = vector.shape_cast %207 : vector<8xf32> to vector<8x1xf32>
    %cst_85 = arith.constant 3.200000e+01 : f32
    %209 = vector.broadcast %cst_85 : f32 to vector<8x1xf32>
    %210 = arith.divf %208, %209 : vector<8x1xf32>
    %cst_86 = arith.constant 9.99999997E-7 : f32
    %211 = vector.broadcast %cst_86 : f32 to vector<8x1xf32>
    %212 = arith.addf %210, %211 : vector<8x1xf32>
    %213 = math.rsqrt %212 : vector<8x1xf32>
    %214 = vector.broadcast %213 : vector<8x1xf32> to vector<8x32xf32>
    %215 = arith.mulf %204, %214 : vector<8x32xf32>
    %216 = vector.broadcast %205 : vector<1x32xf32> to vector<8x32xf32>
    %217 = arith.mulf %215, %216 : vector<8x32xf32>
    %218 = tpu.concatenate %217, %217, %217, %217 in 0 : vector<8x32xf32>, vector<8x32xf32>, vector<8x32xf32>, vector<8x32xf32> -> vector<32x32xf32>
    %219 = tpu.concatenate %218, %218, %218, %218 in 1 : vector<32x32xf32>, vector<32x32xf32>, vector<32x32xf32>, vector<32x32xf32> -> vector<32x128xf32>
    %220 = arith.mulf %219, %0 : vector<32x128xf32>
    %221 = arith.truncf %220 : vector<32x128xf32> to vector<32x128xbf16>
    %c0_87 = arith.constant 0 : index
    %c0_88 = arith.constant 0 : index
    %222 = vector.load %arg6[%c0_87, %c0_88] : memref<32x32xf32, #tpu.memory_space<vmem>>, vector<32x32xf32>
    %c0_89 = arith.constant 0 : index
    %c0_90 = arith.constant 0 : index
    %223 = vector.load %arg7[%c0_89, %c0_90] : memref<32x32xf32, #tpu.memory_space<vmem>>, vector<32x32xf32>
    %c0_91 = arith.constant 0 : index
    %c0_92 = arith.constant 0 : index
    %224 = vector.load %arg3[%c0_91, %c0_92] : memref<8x32xf32, #tpu.memory_space<vmem>>, vector<8x32xf32>
    %c0_93 = arith.constant 0 : index
    %c0_94 = arith.constant 0 : index
    %c0_95 = arith.constant 0 : index
    %225 = vector.load %arg17[%c0_93, %c0_94, %c0_95] : memref<2x1x32xf32, #tpu.memory_space<vmem>>, vector<1x1x32xf32>
    %226 = vector.shape_cast %225 : vector<1x1x32xf32> to vector<1x32xf32>
    %227 = arith.mulf %224, %224 : vector<8x32xf32>
    %cst_96 = arith.constant dense<0.000000e+00> : vector<8xf32>
    %228 = vector.multi_reduction <add>, %227, %cst_96 [1] : vector<8x32xf32> to vector<8xf32>
    %229 = vector.shape_cast %228 : vector<8xf32> to vector<8x1xf32>
    %cst_97 = arith.constant 3.200000e+01 : f32
    %230 = vector.broadcast %cst_97 : f32 to vector<8x1xf32>
    %231 = arith.divf %229, %230 : vector<8x1xf32>
    %cst_98 = arith.constant 9.99999997E-7 : f32
    %232 = vector.broadcast %cst_98 : f32 to vector<8x1xf32>
    %233 = arith.addf %231, %232 : vector<8x1xf32>
    %234 = math.rsqrt %233 : vector<8x1xf32>
    %235 = vector.broadcast %234 : vector<8x1xf32> to vector<8x32xf32>
    %236 = arith.mulf %224, %235 : vector<8x32xf32>
    %237 = vector.broadcast %226 : vector<1x32xf32> to vector<8x32xf32>
    %238 = arith.mulf %236, %237 : vector<8x32xf32>
    %239 = tpu.concatenate %238, %238, %238, %238 in 0 : vector<8x32xf32>, vector<8x32xf32>, vector<8x32xf32>, vector<8x32xf32> -> vector<32x32xf32>
    %240 = tpu.concatenate %239, %239, %239, %239 in 1 : vector<32x32xf32>, vector<32x32xf32>, vector<32x32xf32>, vector<32x32xf32> -> vector<32x128xf32>
    %241 = arith.mulf %240, %0 : vector<32x128xf32>
    %242 = arith.truncf %241 : vector<32x128xf32> to vector<32x128xbf16>
    %c0_99 = arith.constant 0 : index
    %c0_100 = arith.constant 0 : index
    %c0_101 = arith.constant 0 : index
    %243 = vector.load %arg18[%c0_99, %c0_100, %c0_101] : memref<2x128x24xbf16, #tpu.memory_space<vmem>>, vector<1x128x24xbf16>
    %244 = vector.shape_cast %243 : vector<1x128x24xbf16> to vector<128x24xbf16>
    %cst_102 = arith.constant dense<0.000000e+00> : vector<32x24xf32>
    %245 = tpu.matmul %242, %244, %cst_102 {dimension_numbers = #tpu.dot_dimension_numbers<[1], [0], [0], [1], [0, 0, 1, 1], [], []>} : vector<32x128xbf16>, vector<128x24xbf16>, vector<32x24xf32> -> vector<32x24xf32>
    %246 = vector.extract_strided_slice %245 {offsets = [0, 0], sizes = [32, 8], strides = [1, 1]} : vector<32x24xf32> to vector<32x8xf32>
    %247 = vector.extract_strided_slice %245 {offsets = [0, 8], sizes = [32, 8], strides = [1, 1]} : vector<32x24xf32> to vector<32x8xf32>
    %248 = vector.extract_strided_slice %245 {offsets = [0, 16], sizes = [32, 8], strides = [1, 1]} : vector<32x24xf32> to vector<32x8xf32>
    %c0_103 = arith.constant 0 : index
    %c0_104 = arith.constant 0 : index
    %c0_105 = arith.constant 0 : index
    %249 = vector.load %arg19[%c0_103, %c0_104, %c0_105] : memref<2x32x32xbf16, #tpu.memory_space<vmem>>, vector<1x32x32xbf16>
    %250 = vector.shape_cast %249 : vector<1x32x32xbf16> to vector<32x32xbf16>
    %251 = arith.truncf %246 : vector<32x8xf32> to vector<32x8xbf16>
    %252 = arith.truncf %247 : vector<32x8xf32> to vector<32x8xbf16>
    %cst_106 = arith.constant dense<0.000000e+00> : vector<32x32xf32>
    %253 = tpu.matmul %251, %252, %cst_106 {dimension_numbers = #tpu.dot_dimension_numbers<[1], [1], [0], [0], [0, 0, 1, 0], [], []>} : vector<32x8xbf16>, vector<32x8xbf16>, vector<32x32xf32> -> vector<32x32xf32>
    %254 = arith.addf %253, %222 : vector<32x32xf32>
    %cst_107 = arith.constant dense<0xFF800000> : vector<32xf32>
    %255 = vector.multi_reduction <maximumf>, %254, %cst_107 [1] : vector<32x32xf32> to vector<32xf32>
    %256 = vector.shape_cast %255 : vector<32xf32> to vector<32x1xf32>
    %257 = vector.broadcast %256 : vector<32x1xf32> to vector<32x32xf32>
    %258 = arith.subf %254, %257 : vector<32x32xf32>
    %259 = math.exp %258 : vector<32x32xf32>
    %cst_108 = arith.constant dense<0.000000e+00> : vector<32xf32>
    %260 = vector.multi_reduction <add>, %259, %cst_108 [1] : vector<32x32xf32> to vector<32xf32>
    %261 = vector.shape_cast %260 : vector<32xf32> to vector<32x1xf32>
    %262 = tpu.reciprocal %261 {approx = true} : vector<32x1xf32> -> vector<32x1xf32>
    %263 = vector.broadcast %262 : vector<32x1xf32> to vector<32x32xf32>
    %264 = arith.mulf %259, %263 : vector<32x32xf32>
    %265 = arith.truncf %264 : vector<32x32xf32> to vector<32x32xbf16>
    %266 = arith.truncf %248 : vector<32x8xf32> to vector<32x8xbf16>
    %cst_109 = arith.constant dense<0.000000e+00> : vector<32x8xf32>
    %267 = tpu.matmul %265, %266, %cst_109 {dimension_numbers = #tpu.dot_dimension_numbers<[1], [0], [0], [1], [0, 0, 1, 1], [], []>} : vector<32x32xbf16>, vector<32x8xbf16>, vector<32x8xf32> -> vector<32x8xf32>
    %268 = tpu.concatenate %267, %267, %267, %267 in 1 : vector<32x8xf32>, vector<32x8xf32>, vector<32x8xf32>, vector<32x8xf32> -> vector<32x32xf32>
    %269 = arith.mulf %268, %1 : vector<32x32xf32>
    %270 = arith.truncf %269 : vector<32x32xf32> to vector<32x32xbf16>
    %cst_110 = arith.constant dense<0.000000e+00> : vector<32x32xf32>
    %271 = tpu.matmul %270, %250, %cst_110 {dimension_numbers = #tpu.dot_dimension_numbers<[1], [0], [0], [1], [0, 0, 1, 1], [], []>} : vector<32x32xbf16>, vector<32x32xbf16>, vector<32x32xf32> -> vector<32x32xf32>
    %272 = vector.extract_strided_slice %271 {offsets = [0, 0], sizes = [8, 32], strides = [1, 1]} : vector<32x32xf32> to vector<8x32xf32>
    %273 = vector.extract_strided_slice %271 {offsets = [8, 0], sizes = [8, 32], strides = [1, 1]} : vector<32x32xf32> to vector<8x32xf32>
    %274 = arith.addf %272, %273 : vector<8x32xf32>
    %275 = vector.extract_strided_slice %271 {offsets = [16, 0], sizes = [8, 32], strides = [1, 1]} : vector<32x32xf32> to vector<8x32xf32>
    %276 = arith.addf %274, %275 : vector<8x32xf32>
    %277 = vector.extract_strided_slice %271 {offsets = [24, 0], sizes = [8, 32], strides = [1, 1]} : vector<32x32xf32> to vector<8x32xf32>
    %278 = arith.addf %276, %277 : vector<8x32xf32>
    %279 = arith.addf %224, %278 : vector<8x32xf32>
    %c0_111 = arith.constant 0 : index
    %c0_112 = arith.constant 0 : index
    %c0_113 = arith.constant 0 : index
    %280 = vector.load %arg20[%c0_111, %c0_112, %c0_113] : memref<2x1x32xf32, #tpu.memory_space<vmem>>, vector<1x1x32xf32>
    %281 = vector.shape_cast %280 : vector<1x1x32xf32> to vector<1x32xf32>
    %282 = arith.mulf %279, %279 : vector<8x32xf32>
    %cst_114 = arith.constant dense<0.000000e+00> : vector<8xf32>
    %283 = vector.multi_reduction <add>, %282, %cst_114 [1] : vector<8x32xf32> to vector<8xf32>
    %284 = vector.shape_cast %283 : vector<8xf32> to vector<8x1xf32>
    %cst_115 = arith.constant 3.200000e+01 : f32
    %285 = vector.broadcast %cst_115 : f32 to vector<8x1xf32>
    %286 = arith.divf %284, %285 : vector<8x1xf32>
    %cst_116 = arith.constant 9.99999997E-7 : f32
    %287 = vector.broadcast %cst_116 : f32 to vector<8x1xf32>
    %288 = arith.addf %286, %287 : vector<8x1xf32>
    %289 = math.rsqrt %288 : vector<8x1xf32>
    %290 = vector.broadcast %289 : vector<8x1xf32> to vector<8x32xf32>
    %291 = arith.mulf %279, %290 : vector<8x32xf32>
    %292 = vector.broadcast %281 : vector<1x32xf32> to vector<8x32xf32>
    %293 = arith.mulf %291, %292 : vector<8x32xf32>
    %294 = tpu.concatenate %293, %293, %293, %293 in 0 : vector<8x32xf32>, vector<8x32xf32>, vector<8x32xf32>, vector<8x32xf32> -> vector<32x32xf32>
    %295 = tpu.concatenate %294, %294, %294, %294 in 1 : vector<32x32xf32>, vector<32x32xf32>, vector<32x32xf32>, vector<32x32xf32> -> vector<32x128xf32>
    %296 = arith.mulf %295, %0 : vector<32x128xf32>
    %297 = arith.truncf %296 : vector<32x128xf32> to vector<32x128xbf16>
    %c0_117 = arith.constant 0 : index
    %c0_118 = arith.constant 0 : index
    %c0_119 = arith.constant 0 : index
    %298 = vector.load %arg21[%c0_117, %c0_118, %c0_119] : memref<2x128x8xbf16, #tpu.memory_space<vmem>>, vector<1x128x8xbf16>
    %299 = vector.shape_cast %298 : vector<1x128x8xbf16> to vector<128x8xbf16>
    %cst_120 = arith.constant dense<0.000000e+00> : vector<32x8xf32>
    %300 = tpu.matmul %297, %299, %cst_120 {dimension_numbers = #tpu.dot_dimension_numbers<[1], [0], [0], [1], [0, 0, 1, 1], [], []>} : vector<32x128xbf16>, vector<128x8xbf16>, vector<32x8xf32> -> vector<32x8xf32>
    %c0_121 = arith.constant 0 : index
    %c0_122 = arith.constant 0 : index
    %c0_123 = arith.constant 0 : index
    %301 = vector.load %arg22[%c0_121, %c0_122, %c0_123] : memref<2x128x16xbf16, #tpu.memory_space<vmem>>, vector<1x128x16xbf16>
    %302 = vector.shape_cast %301 : vector<1x128x16xbf16> to vector<128x16xbf16>
    %cst_124 = arith.constant dense<0.000000e+00> : vector<32x16xf32>
    %303 = tpu.matmul %221, %302, %cst_124 {dimension_numbers = #tpu.dot_dimension_numbers<[1], [0], [0], [1], [0, 0, 1, 1], [], []>} : vector<32x128xbf16>, vector<128x16xbf16>, vector<32x16xf32> -> vector<32x16xf32>
    %304 = vector.extract_strided_slice %303 {offsets = [0, 0], sizes = [32, 8], strides = [1, 1]} : vector<32x16xf32> to vector<32x8xf32>
    %305 = vector.extract_strided_slice %303 {offsets = [0, 8], sizes = [32, 8], strides = [1, 1]} : vector<32x16xf32> to vector<32x8xf32>
    %c0_125 = arith.constant 0 : index
    %c0_126 = arith.constant 0 : index
    %c0_127 = arith.constant 0 : index
    %306 = vector.load %arg23[%c0_125, %c0_126, %c0_127] : memref<2x32x32xbf16, #tpu.memory_space<vmem>>, vector<1x32x32xbf16>
    %307 = vector.shape_cast %306 : vector<1x32x32xbf16> to vector<32x32xbf16>
    %308 = arith.truncf %300 : vector<32x8xf32> to vector<32x8xbf16>
    %309 = arith.truncf %304 : vector<32x8xf32> to vector<32x8xbf16>
    %cst_128 = arith.constant dense<0.000000e+00> : vector<32x32xf32>
    %310 = tpu.matmul %308, %309, %cst_128 {dimension_numbers = #tpu.dot_dimension_numbers<[1], [1], [0], [0], [0, 0, 1, 0], [], []>} : vector<32x8xbf16>, vector<32x8xbf16>, vector<32x32xf32> -> vector<32x32xf32>
    %311 = arith.addf %310, %223 : vector<32x32xf32>
    %cst_129 = arith.constant dense<0xFF800000> : vector<32xf32>
    %312 = vector.multi_reduction <maximumf>, %311, %cst_129 [1] : vector<32x32xf32> to vector<32xf32>
    %313 = vector.shape_cast %312 : vector<32xf32> to vector<32x1xf32>
    %314 = vector.broadcast %313 : vector<32x1xf32> to vector<32x32xf32>
    %315 = arith.subf %311, %314 : vector<32x32xf32>
    %316 = math.exp %315 : vector<32x32xf32>
    %cst_130 = arith.constant dense<0.000000e+00> : vector<32xf32>
    %317 = vector.multi_reduction <add>, %316, %cst_130 [1] : vector<32x32xf32> to vector<32xf32>
    %318 = vector.shape_cast %317 : vector<32xf32> to vector<32x1xf32>
    %319 = tpu.reciprocal %318 {approx = true} : vector<32x1xf32> -> vector<32x1xf32>
    %320 = vector.broadcast %319 : vector<32x1xf32> to vector<32x32xf32>
    %321 = arith.mulf %316, %320 : vector<32x32xf32>
    %322 = arith.truncf %321 : vector<32x32xf32> to vector<32x32xbf16>
    %323 = arith.truncf %305 : vector<32x8xf32> to vector<32x8xbf16>
    %cst_131 = arith.constant dense<0.000000e+00> : vector<32x8xf32>
    %324 = tpu.matmul %322, %323, %cst_131 {dimension_numbers = #tpu.dot_dimension_numbers<[1], [0], [0], [1], [0, 0, 1, 1], [], []>} : vector<32x32xbf16>, vector<32x8xbf16>, vector<32x8xf32> -> vector<32x8xf32>
    %325 = tpu.concatenate %324, %324, %324, %324 in 1 : vector<32x8xf32>, vector<32x8xf32>, vector<32x8xf32>, vector<32x8xf32> -> vector<32x32xf32>
    %326 = arith.mulf %325, %1 : vector<32x32xf32>
    %327 = arith.truncf %326 : vector<32x32xf32> to vector<32x32xbf16>
    %cst_132 = arith.constant dense<0.000000e+00> : vector<32x32xf32>
    %328 = tpu.matmul %327, %307, %cst_132 {dimension_numbers = #tpu.dot_dimension_numbers<[1], [0], [0], [1], [0, 0, 1, 1], [], []>} : vector<32x32xbf16>, vector<32x32xbf16>, vector<32x32xf32> -> vector<32x32xf32>
    %329 = vector.extract_strided_slice %328 {offsets = [0, 0], sizes = [8, 32], strides = [1, 1]} : vector<32x32xf32> to vector<8x32xf32>
    %330 = vector.extract_strided_slice %328 {offsets = [8, 0], sizes = [8, 32], strides = [1, 1]} : vector<32x32xf32> to vector<8x32xf32>
    %331 = arith.addf %329, %330 : vector<8x32xf32>
    %332 = vector.extract_strided_slice %328 {offsets = [16, 0], sizes = [8, 32], strides = [1, 1]} : vector<32x32xf32> to vector<8x32xf32>
    %333 = arith.addf %331, %332 : vector<8x32xf32>
    %334 = vector.extract_strided_slice %328 {offsets = [24, 0], sizes = [8, 32], strides = [1, 1]} : vector<32x32xf32> to vector<8x32xf32>
    %335 = arith.addf %333, %334 : vector<8x32xf32>
    %336 = arith.addf %279, %335 : vector<8x32xf32>
    %c0_133 = arith.constant 0 : index
    %c0_134 = arith.constant 0 : index
    %c0_135 = arith.constant 0 : index
    %337 = vector.load %arg24[%c0_133, %c0_134, %c0_135] : memref<2x1x32xf32, #tpu.memory_space<vmem>>, vector<1x1x32xf32>
    %338 = vector.shape_cast %337 : vector<1x1x32xf32> to vector<1x32xf32>
    %339 = arith.mulf %336, %336 : vector<8x32xf32>
    %cst_136 = arith.constant dense<0.000000e+00> : vector<8xf32>
    %340 = vector.multi_reduction <add>, %339, %cst_136 [1] : vector<8x32xf32> to vector<8xf32>
    %341 = vector.shape_cast %340 : vector<8xf32> to vector<8x1xf32>
    %cst_137 = arith.constant 3.200000e+01 : f32
    %342 = vector.broadcast %cst_137 : f32 to vector<8x1xf32>
    %343 = arith.divf %341, %342 : vector<8x1xf32>
    %cst_138 = arith.constant 9.99999997E-7 : f32
    %344 = vector.broadcast %cst_138 : f32 to vector<8x1xf32>
    %345 = arith.addf %343, %344 : vector<8x1xf32>
    %346 = math.rsqrt %345 : vector<8x1xf32>
    %347 = vector.broadcast %346 : vector<8x1xf32> to vector<8x32xf32>
    %348 = arith.mulf %336, %347 : vector<8x32xf32>
    %349 = vector.broadcast %338 : vector<1x32xf32> to vector<8x32xf32>
    %350 = arith.mulf %348, %349 : vector<8x32xf32>
    %c0_139 = arith.constant 0 : index
    %c0_140 = arith.constant 0 : index
    %c0_141 = arith.constant 0 : index
    %351 = vector.load %arg25[%c0_139, %c0_140, %c0_141] : memref<2x32x128xbf16, #tpu.memory_space<vmem>>, vector<1x32x128xbf16>
    %352 = vector.shape_cast %351 : vector<1x32x128xbf16> to vector<32x128xbf16>
    %c0_142 = arith.constant 0 : index
    %c0_143 = arith.constant 0 : index
    %c0_144 = arith.constant 0 : index
    %353 = vector.load %arg26[%c0_142, %c0_143, %c0_144] : memref<2x64x32xbf16, #tpu.memory_space<vmem>>, vector<1x64x32xbf16>
    %354 = vector.shape_cast %353 : vector<1x64x32xbf16> to vector<64x32xbf16>
    %355 = arith.truncf %350 : vector<8x32xf32> to vector<8x32xbf16>
    %cst_145 = arith.constant dense<0.000000e+00> : vector<8x128xf32>
    %356 = tpu.matmul %355, %352, %cst_145 {dimension_numbers = #tpu.dot_dimension_numbers<[1], [0], [0], [1], [0, 0, 1, 1], [], []>} : vector<8x32xbf16>, vector<32x128xbf16>, vector<8x128xf32> -> vector<8x128xf32>
    %357 = vector.extract_strided_slice %356 {offsets = [0, 0], sizes = [8, 64], strides = [1, 1]} : vector<8x128xf32> to vector<8x64xf32>
    %cst_146 = arith.constant 5.000000e-01 : f32
    %358 = vector.broadcast %cst_146 : f32 to vector<8x64xf32>
    %359 = arith.mulf %358, %357 : vector<8x64xf32>
    %cst_147 = arith.constant 4.471500e-02 : f32
    %360 = vector.broadcast %cst_147 : f32 to vector<8x64xf32>
    %361 = arith.mulf %360, %357 : vector<8x64xf32>
    %362 = arith.mulf %361, %357 : vector<8x64xf32>
    %363 = arith.mulf %362, %357 : vector<8x64xf32>
    %364 = arith.addf %357, %363 : vector<8x64xf32>
    %cst_148 = arith.constant 0.797884583 : f32
    %365 = vector.broadcast %cst_148 : f32 to vector<8x64xf32>
    %366 = arith.mulf %365, %364 : vector<8x64xf32>
    %367 = math.tanh %366 : vector<8x64xf32>
    %cst_149 = arith.constant 1.000000e+00 : f32
    %368 = vector.broadcast %cst_149 : f32 to vector<8x64xf32>
    %369 = arith.addf %368, %367 : vector<8x64xf32>
    %370 = arith.mulf %359, %369 : vector<8x64xf32>
    %371 = vector.extract_strided_slice %356 {offsets = [0, 64], sizes = [8, 64], strides = [1, 1]} : vector<8x128xf32> to vector<8x64xf32>
    %372 = arith.mulf %370, %371 : vector<8x64xf32>
    %373 = arith.truncf %372 : vector<8x64xf32> to vector<8x64xbf16>
    %cst_150 = arith.constant dense<0.000000e+00> : vector<8x32xf32>
    %374 = tpu.matmul %373, %354, %cst_150 {dimension_numbers = #tpu.dot_dimension_numbers<[1], [0], [0], [1], [0, 0, 1, 1], [], []>} : vector<8x64xbf16>, vector<64x32xbf16>, vector<8x32xf32> -> vector<8x32xf32>
    %375 = arith.addf %336, %374 : vector<8x32xf32>
    %c1_151 = arith.constant 1 : index
    %c0_152 = arith.constant 0 : index
    %c0_153 = arith.constant 0 : index
    %376 = vector.load %arg17[%c1_151, %c0_152, %c0_153] : memref<2x1x32xf32, #tpu.memory_space<vmem>>, vector<1x1x32xf32>
    %377 = vector.shape_cast %376 : vector<1x1x32xf32> to vector<1x32xf32>
    %378 = arith.mulf %375, %375 : vector<8x32xf32>
    %cst_154 = arith.constant dense<0.000000e+00> : vector<8xf32>
    %379 = vector.multi_reduction <add>, %378, %cst_154 [1] : vector<8x32xf32> to vector<8xf32>
    %380 = vector.shape_cast %379 : vector<8xf32> to vector<8x1xf32>
    %cst_155 = arith.constant 3.200000e+01 : f32
    %381 = vector.broadcast %cst_155 : f32 to vector<8x1xf32>
    %382 = arith.divf %380, %381 : vector<8x1xf32>
    %cst_156 = arith.constant 9.99999997E-7 : f32
    %383 = vector.broadcast %cst_156 : f32 to vector<8x1xf32>
    %384 = arith.addf %382, %383 : vector<8x1xf32>
    %385 = math.rsqrt %384 : vector<8x1xf32>
    %386 = vector.broadcast %385 : vector<8x1xf32> to vector<8x32xf32>
    %387 = arith.mulf %375, %386 : vector<8x32xf32>
    %388 = vector.broadcast %377 : vector<1x32xf32> to vector<8x32xf32>
    %389 = arith.mulf %387, %388 : vector<8x32xf32>
    %390 = tpu.concatenate %389, %389, %389, %389 in 0 : vector<8x32xf32>, vector<8x32xf32>, vector<8x32xf32>, vector<8x32xf32> -> vector<32x32xf32>
    %391 = tpu.concatenate %390, %390, %390, %390 in 1 : vector<32x32xf32>, vector<32x32xf32>, vector<32x32xf32>, vector<32x32xf32> -> vector<32x128xf32>
    %392 = arith.mulf %391, %0 : vector<32x128xf32>
    %393 = arith.truncf %392 : vector<32x128xf32> to vector<32x128xbf16>
    %c1_157 = arith.constant 1 : index
    %c0_158 = arith.constant 0 : index
    %c0_159 = arith.constant 0 : index
    %394 = vector.load %arg18[%c1_157, %c0_158, %c0_159] : memref<2x128x24xbf16, #tpu.memory_space<vmem>>, vector<1x128x24xbf16>
    %395 = vector.shape_cast %394 : vector<1x128x24xbf16> to vector<128x24xbf16>
    %cst_160 = arith.constant dense<0.000000e+00> : vector<32x24xf32>
    %396 = tpu.matmul %393, %395, %cst_160 {dimension_numbers = #tpu.dot_dimension_numbers<[1], [0], [0], [1], [0, 0, 1, 1], [], []>} : vector<32x128xbf16>, vector<128x24xbf16>, vector<32x24xf32> -> vector<32x24xf32>
    %397 = vector.extract_strided_slice %396 {offsets = [0, 0], sizes = [32, 8], strides = [1, 1]} : vector<32x24xf32> to vector<32x8xf32>
    %398 = vector.extract_strided_slice %396 {offsets = [0, 8], sizes = [32, 8], strides = [1, 1]} : vector<32x24xf32> to vector<32x8xf32>
    %399 = vector.extract_strided_slice %396 {offsets = [0, 16], sizes = [32, 8], strides = [1, 1]} : vector<32x24xf32> to vector<32x8xf32>
    %c1_161 = arith.constant 1 : index
    %c0_162 = arith.constant 0 : index
    %c0_163 = arith.constant 0 : index
    %400 = vector.load %arg19[%c1_161, %c0_162, %c0_163] : memref<2x32x32xbf16, #tpu.memory_space<vmem>>, vector<1x32x32xbf16>
    %401 = vector.shape_cast %400 : vector<1x32x32xbf16> to vector<32x32xbf16>
    %402 = arith.truncf %397 : vector<32x8xf32> to vector<32x8xbf16>
    %403 = arith.truncf %398 : vector<32x8xf32> to vector<32x8xbf16>
    %cst_164 = arith.constant dense<0.000000e+00> : vector<32x32xf32>
    %404 = tpu.matmul %402, %403, %cst_164 {dimension_numbers = #tpu.dot_dimension_numbers<[1], [1], [0], [0], [0, 0, 1, 0], [], []>} : vector<32x8xbf16>, vector<32x8xbf16>, vector<32x32xf32> -> vector<32x32xf32>
    %405 = arith.addf %404, %222 : vector<32x32xf32>
    %cst_165 = arith.constant dense<0xFF800000> : vector<32xf32>
    %406 = vector.multi_reduction <maximumf>, %405, %cst_165 [1] : vector<32x32xf32> to vector<32xf32>
    %407 = vector.shape_cast %406 : vector<32xf32> to vector<32x1xf32>
    %408 = vector.broadcast %407 : vector<32x1xf32> to vector<32x32xf32>
    %409 = arith.subf %405, %408 : vector<32x32xf32>
    %410 = math.exp %409 : vector<32x32xf32>
    %cst_166 = arith.constant dense<0.000000e+00> : vector<32xf32>
    %411 = vector.multi_reduction <add>, %410, %cst_166 [1] : vector<32x32xf32> to vector<32xf32>
    %412 = vector.shape_cast %411 : vector<32xf32> to vector<32x1xf32>
    %413 = tpu.reciprocal %412 {approx = true} : vector<32x1xf32> -> vector<32x1xf32>
    %414 = vector.broadcast %413 : vector<32x1xf32> to vector<32x32xf32>
    %415 = arith.mulf %410, %414 : vector<32x32xf32>
    %416 = arith.truncf %415 : vector<32x32xf32> to vector<32x32xbf16>
    %417 = arith.truncf %399 : vector<32x8xf32> to vector<32x8xbf16>
    %cst_167 = arith.constant dense<0.000000e+00> : vector<32x8xf32>
    %418 = tpu.matmul %416, %417, %cst_167 {dimension_numbers = #tpu.dot_dimension_numbers<[1], [0], [0], [1], [0, 0, 1, 1], [], []>} : vector<32x32xbf16>, vector<32x8xbf16>, vector<32x8xf32> -> vector<32x8xf32>
    %419 = tpu.concatenate %418, %418, %418, %418 in 1 : vector<32x8xf32>, vector<32x8xf32>, vector<32x8xf32>, vector<32x8xf32> -> vector<32x32xf32>
    %420 = arith.mulf %419, %1 : vector<32x32xf32>
    %421 = arith.truncf %420 : vector<32x32xf32> to vector<32x32xbf16>
    %cst_168 = arith.constant dense<0.000000e+00> : vector<32x32xf32>
    %422 = tpu.matmul %421, %401, %cst_168 {dimension_numbers = #tpu.dot_dimension_numbers<[1], [0], [0], [1], [0, 0, 1, 1], [], []>} : vector<32x32xbf16>, vector<32x32xbf16>, vector<32x32xf32> -> vector<32x32xf32>
    %423 = vector.extract_strided_slice %422 {offsets = [0, 0], sizes = [8, 32], strides = [1, 1]} : vector<32x32xf32> to vector<8x32xf32>
    %424 = vector.extract_strided_slice %422 {offsets = [8, 0], sizes = [8, 32], strides = [1, 1]} : vector<32x32xf32> to vector<8x32xf32>
    %425 = arith.addf %423, %424 : vector<8x32xf32>
    %426 = vector.extract_strided_slice %422 {offsets = [16, 0], sizes = [8, 32], strides = [1, 1]} : vector<32x32xf32> to vector<8x32xf32>
    %427 = arith.addf %425, %426 : vector<8x32xf32>
    %428 = vector.extract_strided_slice %422 {offsets = [24, 0], sizes = [8, 32], strides = [1, 1]} : vector<32x32xf32> to vector<8x32xf32>
    %429 = arith.addf %427, %428 : vector<8x32xf32>
    %430 = arith.addf %375, %429 : vector<8x32xf32>
    %c1_169 = arith.constant 1 : index
    %c0_170 = arith.constant 0 : index
    %c0_171 = arith.constant 0 : index
    %431 = vector.load %arg20[%c1_169, %c0_170, %c0_171] : memref<2x1x32xf32, #tpu.memory_space<vmem>>, vector<1x1x32xf32>
    %432 = vector.shape_cast %431 : vector<1x1x32xf32> to vector<1x32xf32>
    %433 = arith.mulf %430, %430 : vector<8x32xf32>
    %cst_172 = arith.constant dense<0.000000e+00> : vector<8xf32>
    %434 = vector.multi_reduction <add>, %433, %cst_172 [1] : vector<8x32xf32> to vector<8xf32>
    %435 = vector.shape_cast %434 : vector<8xf32> to vector<8x1xf32>
    %cst_173 = arith.constant 3.200000e+01 : f32
    %436 = vector.broadcast %cst_173 : f32 to vector<8x1xf32>
    %437 = arith.divf %435, %436 : vector<8x1xf32>
    %cst_174 = arith.constant 9.99999997E-7 : f32
    %438 = vector.broadcast %cst_174 : f32 to vector<8x1xf32>
    %439 = arith.addf %437, %438 : vector<8x1xf32>
    %440 = math.rsqrt %439 : vector<8x1xf32>
    %441 = vector.broadcast %440 : vector<8x1xf32> to vector<8x32xf32>
    %442 = arith.mulf %430, %441 : vector<8x32xf32>
    %443 = vector.broadcast %432 : vector<1x32xf32> to vector<8x32xf32>
    %444 = arith.mulf %442, %443 : vector<8x32xf32>
    %445 = tpu.concatenate %444, %444, %444, %444 in 0 : vector<8x32xf32>, vector<8x32xf32>, vector<8x32xf32>, vector<8x32xf32> -> vector<32x32xf32>
    %446 = tpu.concatenate %445, %445, %445, %445 in 1 : vector<32x32xf32>, vector<32x32xf32>, vector<32x32xf32>, vector<32x32xf32> -> vector<32x128xf32>
    %447 = arith.mulf %446, %0 : vector<32x128xf32>
    %448 = arith.truncf %447 : vector<32x128xf32> to vector<32x128xbf16>
    %c1_175 = arith.constant 1 : index
    %c0_176 = arith.constant 0 : index
    %c0_177 = arith.constant 0 : index
    %449 = vector.load %arg21[%c1_175, %c0_176, %c0_177] : memref<2x128x8xbf16, #tpu.memory_space<vmem>>, vector<1x128x8xbf16>
    %450 = vector.shape_cast %449 : vector<1x128x8xbf16> to vector<128x8xbf16>
    %cst_178 = arith.constant dense<0.000000e+00> : vector<32x8xf32>
    %451 = tpu.matmul %448, %450, %cst_178 {dimension_numbers = #tpu.dot_dimension_numbers<[1], [0], [0], [1], [0, 0, 1, 1], [], []>} : vector<32x128xbf16>, vector<128x8xbf16>, vector<32x8xf32> -> vector<32x8xf32>
    %c1_179 = arith.constant 1 : index
    %c0_180 = arith.constant 0 : index
    %c0_181 = arith.constant 0 : index
    %452 = vector.load %arg22[%c1_179, %c0_180, %c0_181] : memref<2x128x16xbf16, #tpu.memory_space<vmem>>, vector<1x128x16xbf16>
    %453 = vector.shape_cast %452 : vector<1x128x16xbf16> to vector<128x16xbf16>
    %cst_182 = arith.constant dense<0.000000e+00> : vector<32x16xf32>
    %454 = tpu.matmul %221, %453, %cst_182 {dimension_numbers = #tpu.dot_dimension_numbers<[1], [0], [0], [1], [0, 0, 1, 1], [], []>} : vector<32x128xbf16>, vector<128x16xbf16>, vector<32x16xf32> -> vector<32x16xf32>
    %455 = vector.extract_strided_slice %454 {offsets = [0, 0], sizes = [32, 8], strides = [1, 1]} : vector<32x16xf32> to vector<32x8xf32>
    %456 = vector.extract_strided_slice %454 {offsets = [0, 8], sizes = [32, 8], strides = [1, 1]} : vector<32x16xf32> to vector<32x8xf32>
    %c1_183 = arith.constant 1 : index
    %c0_184 = arith.constant 0 : index
    %c0_185 = arith.constant 0 : index
    %457 = vector.load %arg23[%c1_183, %c0_184, %c0_185] : memref<2x32x32xbf16, #tpu.memory_space<vmem>>, vector<1x32x32xbf16>
    %458 = vector.shape_cast %457 : vector<1x32x32xbf16> to vector<32x32xbf16>
    %459 = arith.truncf %451 : vector<32x8xf32> to vector<32x8xbf16>
    %460 = arith.truncf %455 : vector<32x8xf32> to vector<32x8xbf16>
    %cst_186 = arith.constant dense<0.000000e+00> : vector<32x32xf32>
    %461 = tpu.matmul %459, %460, %cst_186 {dimension_numbers = #tpu.dot_dimension_numbers<[1], [1], [0], [0], [0, 0, 1, 0], [], []>} : vector<32x8xbf16>, vector<32x8xbf16>, vector<32x32xf32> -> vector<32x32xf32>
    %462 = arith.addf %461, %223 : vector<32x32xf32>
    %cst_187 = arith.constant dense<0xFF800000> : vector<32xf32>
    %463 = vector.multi_reduction <maximumf>, %462, %cst_187 [1] : vector<32x32xf32> to vector<32xf32>
    %464 = vector.shape_cast %463 : vector<32xf32> to vector<32x1xf32>
    %465 = vector.broadcast %464 : vector<32x1xf32> to vector<32x32xf32>
    %466 = arith.subf %462, %465 : vector<32x32xf32>
    %467 = math.exp %466 : vector<32x32xf32>
    %cst_188 = arith.constant dense<0.000000e+00> : vector<32xf32>
    %468 = vector.multi_reduction <add>, %467, %cst_188 [1] : vector<32x32xf32> to vector<32xf32>
    %469 = vector.shape_cast %468 : vector<32xf32> to vector<32x1xf32>
    %470 = tpu.reciprocal %469 {approx = true} : vector<32x1xf32> -> vector<32x1xf32>
    %471 = vector.broadcast %470 : vector<32x1xf32> to vector<32x32xf32>
    %472 = arith.mulf %467, %471 : vector<32x32xf32>
    %473 = arith.truncf %472 : vector<32x32xf32> to vector<32x32xbf16>
    %474 = arith.truncf %456 : vector<32x8xf32> to vector<32x8xbf16>
    %cst_189 = arith.constant dense<0.000000e+00> : vector<32x8xf32>
    %475 = tpu.matmul %473, %474, %cst_189 {dimension_numbers = #tpu.dot_dimension_numbers<[1], [0], [0], [1], [0, 0, 1, 1], [], []>} : vector<32x32xbf16>, vector<32x8xbf16>, vector<32x8xf32> -> vector<32x8xf32>
    %476 = tpu.concatenate %475, %475, %475, %475 in 1 : vector<32x8xf32>, vector<32x8xf32>, vector<32x8xf32>, vector<32x8xf32> -> vector<32x32xf32>
    %477 = arith.mulf %476, %1 : vector<32x32xf32>
    %478 = arith.truncf %477 : vector<32x32xf32> to vector<32x32xbf16>
    %cst_190 = arith.constant dense<0.000000e+00> : vector<32x32xf32>
    %479 = tpu.matmul %478, %458, %cst_190 {dimension_numbers = #tpu.dot_dimension_numbers<[1], [0], [0], [1], [0, 0, 1, 1], [], []>} : vector<32x32xbf16>, vector<32x32xbf16>, vector<32x32xf32> -> vector<32x32xf32>
    %480 = vector.extract_strided_slice %479 {offsets = [0, 0], sizes = [8, 32], strides = [1, 1]} : vector<32x32xf32> to vector<8x32xf32>
    %481 = vector.extract_strided_slice %479 {offsets = [8, 0], sizes = [8, 32], strides = [1, 1]} : vector<32x32xf32> to vector<8x32xf32>
    %482 = arith.addf %480, %481 : vector<8x32xf32>
    %483 = vector.extract_strided_slice %479 {offsets = [16, 0], sizes = [8, 32], strides = [1, 1]} : vector<32x32xf32> to vector<8x32xf32>
    %484 = arith.addf %482, %483 : vector<8x32xf32>
    %485 = vector.extract_strided_slice %479 {offsets = [24, 0], sizes = [8, 32], strides = [1, 1]} : vector<32x32xf32> to vector<8x32xf32>
    %486 = arith.addf %484, %485 : vector<8x32xf32>
    %487 = arith.addf %430, %486 : vector<8x32xf32>
    %c1_191 = arith.constant 1 : index
    %c0_192 = arith.constant 0 : index
    %c0_193 = arith.constant 0 : index
    %488 = vector.load %arg24[%c1_191, %c0_192, %c0_193] : memref<2x1x32xf32, #tpu.memory_space<vmem>>, vector<1x1x32xf32>
    %489 = vector.shape_cast %488 : vector<1x1x32xf32> to vector<1x32xf32>
    %490 = arith.mulf %487, %487 : vector<8x32xf32>
    %cst_194 = arith.constant dense<0.000000e+00> : vector<8xf32>
    %491 = vector.multi_reduction <add>, %490, %cst_194 [1] : vector<8x32xf32> to vector<8xf32>
    %492 = vector.shape_cast %491 : vector<8xf32> to vector<8x1xf32>
    %cst_195 = arith.constant 3.200000e+01 : f32
    %493 = vector.broadcast %cst_195 : f32 to vector<8x1xf32>
    %494 = arith.divf %492, %493 : vector<8x1xf32>
    %cst_196 = arith.constant 9.99999997E-7 : f32
    %495 = vector.broadcast %cst_196 : f32 to vector<8x1xf32>
    %496 = arith.addf %494, %495 : vector<8x1xf32>
    %497 = math.rsqrt %496 : vector<8x1xf32>
    %498 = vector.broadcast %497 : vector<8x1xf32> to vector<8x32xf32>
    %499 = arith.mulf %487, %498 : vector<8x32xf32>
    %500 = vector.broadcast %489 : vector<1x32xf32> to vector<8x32xf32>
    %501 = arith.mulf %499, %500 : vector<8x32xf32>
    %c1_197 = arith.constant 1 : index
    %c0_198 = arith.constant 0 : index
    %c0_199 = arith.constant 0 : index
    %502 = vector.load %arg25[%c1_197, %c0_198, %c0_199] : memref<2x32x128xbf16, #tpu.memory_space<vmem>>, vector<1x32x128xbf16>
    %503 = vector.shape_cast %502 : vector<1x32x128xbf16> to vector<32x128xbf16>
    %c1_200 = arith.constant 1 : index
    %c0_201 = arith.constant 0 : index
    %c0_202 = arith.constant 0 : index
    %504 = vector.load %arg26[%c1_200, %c0_201, %c0_202] : memref<2x64x32xbf16, #tpu.memory_space<vmem>>, vector<1x64x32xbf16>
    %505 = vector.shape_cast %504 : vector<1x64x32xbf16> to vector<64x32xbf16>
    %506 = arith.truncf %501 : vector<8x32xf32> to vector<8x32xbf16>
    %cst_203 = arith.constant dense<0.000000e+00> : vector<8x128xf32>
    %507 = tpu.matmul %506, %503, %cst_203 {dimension_numbers = #tpu.dot_dimension_numbers<[1], [0], [0], [1], [0, 0, 1, 1], [], []>} : vector<8x32xbf16>, vector<32x128xbf16>, vector<8x128xf32> -> vector<8x128xf32>
    %508 = vector.extract_strided_slice %507 {offsets = [0, 0], sizes = [8, 64], strides = [1, 1]} : vector<8x128xf32> to vector<8x64xf32>
    %cst_204 = arith.constant 5.000000e-01 : f32
    %509 = vector.broadcast %cst_204 : f32 to vector<8x64xf32>
    %510 = arith.mulf %509, %508 : vector<8x64xf32>
    %cst_205 = arith.constant 4.471500e-02 : f32
    %511 = vector.broadcast %cst_205 : f32 to vector<8x64xf32>
    %512 = arith.mulf %511, %508 : vector<8x64xf32>
    %513 = arith.mulf %512, %508 : vector<8x64xf32>
    %514 = arith.mulf %513, %508 : vector<8x64xf32>
    %515 = arith.addf %508, %514 : vector<8x64xf32>
    %cst_206 = arith.constant 0.797884583 : f32
    %516 = vector.broadcast %cst_206 : f32 to vector<8x64xf32>
    %517 = arith.mulf %516, %515 : vector<8x64xf32>
    %518 = math.tanh %517 : vector<8x64xf32>
    %cst_207 = arith.constant 1.000000e+00 : f32
    %519 = vector.broadcast %cst_207 : f32 to vector<8x64xf32>
    %520 = arith.addf %519, %518 : vector<8x64xf32>
    %521 = arith.mulf %510, %520 : vector<8x64xf32>
    %522 = vector.extract_strided_slice %507 {offsets = [0, 64], sizes = [8, 64], strides = [1, 1]} : vector<8x128xf32> to vector<8x64xf32>
    %523 = arith.mulf %521, %522 : vector<8x64xf32>
    %524 = arith.truncf %523 : vector<8x64xf32> to vector<8x64xbf16>
    %cst_208 = arith.constant dense<0.000000e+00> : vector<8x32xf32>
    %525 = tpu.matmul %524, %505, %cst_208 {dimension_numbers = #tpu.dot_dimension_numbers<[1], [0], [0], [1], [0, 0, 1, 1], [], []>} : vector<8x64xbf16>, vector<64x32xbf16>, vector<8x32xf32> -> vector<8x32xf32>
    %526 = arith.addf %487, %525 : vector<8x32xf32>
    %c0_209 = arith.constant 0 : index
    %c0_210 = arith.constant 0 : index
    %527 = vector.load %arg27[%c0_209, %c0_210] : memref<1x32xf32, #tpu.memory_space<vmem>>, vector<1x32xf32>
    %528 = arith.mulf %526, %526 : vector<8x32xf32>
    %cst_211 = arith.constant dense<0.000000e+00> : vector<8xf32>
    %529 = vector.multi_reduction <add>, %528, %cst_211 [1] : vector<8x32xf32> to vector<8xf32>
    %530 = vector.shape_cast %529 : vector<8xf32> to vector<8x1xf32>
    %cst_212 = arith.constant 3.200000e+01 : f32
    %531 = vector.broadcast %cst_212 : f32 to vector<8x1xf32>
    %532 = arith.divf %530, %531 : vector<8x1xf32>
    %cst_213 = arith.constant 9.99999997E-7 : f32
    %533 = vector.broadcast %cst_213 : f32 to vector<8x1xf32>
    %534 = arith.addf %532, %533 : vector<8x1xf32>
    %535 = math.rsqrt %534 : vector<8x1xf32>
    %536 = vector.broadcast %535 : vector<8x1xf32> to vector<8x32xf32>
    %537 = arith.mulf %526, %536 : vector<8x32xf32>
    %538 = vector.broadcast %527 : vector<1x32xf32> to vector<8x32xf32>
    %539 = arith.mulf %537, %538 : vector<8x32xf32>
    %540 = arith.truncf %539 : vector<8x32xf32> to vector<8x32xbf16>
    %c0_214 = arith.constant 0 : index
    %c0_215 = arith.constant 0 : index
    %541 = vector.load %arg28[%c0_214, %c0_215] : memref<32x32xbf16, #tpu.memory_space<vmem>>, vector<32x32xbf16>
    %cst_216 = arith.constant dense<0.000000e+00> : vector<8x32xf32>
    %542 = tpu.matmul %540, %541, %cst_216 {dimension_numbers = #tpu.dot_dimension_numbers<[1], [0], [0], [1], [0, 0, 1, 1], [], []>} : vector<8x32xbf16>, vector<32x32xbf16>, vector<8x32xf32> -> vector<8x32xf32>
    %c0_217 = arith.constant 0 : index
    %c0_218 = arith.constant 0 : index
    %543 = vector.load %arg29[%c0_217, %c0_218] : memref<8x32xf32, #tpu.memory_space<vmem>>, vector<8x32xf32>
    tpu.vector_store %arg29[%c0_217, %c0_218], %542 {strides = array<i32>} : memref<8x32xf32, #tpu.memory_space<vmem>>, vector<8x32xf32>,
    %c0_219 = arith.constant 0 : index
    %c0_220 = arith.constant 0 : index
    %544 = vector.load %arg4[%c0_219, %c0_220] : memref<8x1xi32, #tpu.memory_space<vmem>>, vector<8x1xi32>
    %cst_221 = arith.constant dense<0xFF800000> : vector<8xf32>
    %545 = vector.multi_reduction <maximumf>, %542, %cst_221 [1] : vector<8x32xf32> to vector<8xf32>
    %546 = vector.shape_cast %545 : vector<8xf32> to vector<8x1xf32>
    %547 = vector.broadcast %546 : vector<8x1xf32> to vector<8x32xf32>
    %548 = arith.subf %542, %547 : vector<8x32xf32>
    %549 = math.exp %548 : vector<8x32xf32>
    %cst_222 = arith.constant dense<0.000000e+00> : vector<8xf32>
    %550 = vector.multi_reduction <add>, %549, %cst_222 [1] : vector<8x32xf32> to vector<8xf32>
    %551 = vector.shape_cast %550 : vector<8xf32> to vector<8x1xf32>
    %552 = math.log %551 : vector<8x1xf32>
    %553 = arith.addf %552, %546 : vector<8x1xf32>
    %554 = tpu.iota {dimensions = array<i32: 1>} : vector<8x32xi32>
    %555 = vector.broadcast %544 : vector<8x1xi32> to vector<8x32xi32>
    %556 = arith.cmpi eq, %554, %555 : vector<8x32xi32>
    %cst_223 = arith.constant 0.000000e+00 : f32
    %557 = vector.broadcast %cst_223 : f32 to vector<8x32xf32>
    %558 = arith.select %556, %542, %557 : vector<8x32xi1>, vector<8x32xf32>
    %cst_224 = arith.constant dense<0.000000e+00> : vector<8xf32>
    %559 = vector.multi_reduction <add>, %558, %cst_224 [1] : vector<8x32xf32> to vector<8xf32>
    %560 = vector.shape_cast %559 : vector<8xf32> to vector<8x1xf32>
    %c-100_i32 = arith.constant -100 : i32
    %561 = vector.broadcast %c-100_i32 : i32 to vector<8x1xi32>
    %562 = arith.cmpi ne, %544, %561 : vector<8x1xi32>
    %563 = arith.extui %562 : vector<8x1xi1> to vector<8x1xi32>
    %564 = arith.sitofp %563 : vector<8x1xi32> to vector<8x1xf32>
    %565 = arith.subf %553, %560 : vector<8x1xf32>
    %566 = arith.mulf %565, %564 : vector<8x1xf32>
    %c0_225 = arith.constant 0 : index
    %c0_226 = arith.constant 0 : index
    %567 = vector.load %arg30[%c0_225, %c0_226] : memref<8x1xf32, #tpu.memory_space<vmem>>, vector<8x1xf32>
    tpu.vector_store %arg30[%c0_225, %c0_226], %566 {strides = array<i32>} : memref<8x1xf32, #tpu.memory_space<vmem>>, vector<8x1xf32>,
    return
  }
  func.func @transform_0(%arg0: i32) -> (i32, i32) {
    %c0_i32 = arith.constant 0 : i32
    %c0_i32_0 = arith.constant 0 : i32
    return %arg0, %c0_i32 : i32, i32
  }
  func.func @transform_1(%arg0: i32) -> (i32, i32) {
    %c0_i32 = arith.constant 0 : i32
    %c0_i32_0 = arith.constant 0 : i32
    %c0_i32_1 = arith.constant 0 : i32
    return %c0_i32, %c0_i32_0 : i32, i32
  }
  func.func @transform_2(%arg0: i32) -> (i32, i32) {
    %c0_i32 = arith.constant 0 : i32
    %c0_i32_0 = arith.constant 0 : i32
    return %arg0, %c0_i32 : i32, i32
  }
  func.func @transform_3(%arg0: i32) -> (i32, i32) {
    %c0_i32 = arith.constant 0 : i32
    %c0_i32_0 = arith.constant 0 : i32
    return %arg0, %c0_i32 : i32, i32
  }
  func.func @transform_4(%arg0: i32) -> (i32, i32) {
    %c0_i32 = arith.constant 0 : i32
    %c0_i32_0 = arith.constant 0 : i32
    %c0_i32_1 = arith.constant 0 : i32
    return %c0_i32, %c0_i32_0 : i32, i32
  }
  func.func @transform_5(%arg0: i32) -> (i32, i32) {
    %c0_i32 = arith.constant 0 : i32
    %c0_i32_0 = arith.constant 0 : i32
    %c0_i32_1 = arith.constant 0 : i32
    return %c0_i32, %c0_i32_0 : i32, i32
  }
  func.func @transform_6(%arg0: i32) -> (i32, i32) {
    %c0_i32 = arith.constant 0 : i32
    %c0_i32_0 = arith.constant 0 : i32
    %c0_i32_1 = arith.constant 0 : i32
    return %c0_i32, %c0_i32_0 : i32, i32
  }
  func.func @transform_7(%arg0: i32) -> (i32, i32) {
    %c0_i32 = arith.constant 0 : i32
    %c0_i32_0 = arith.constant 0 : i32
    %c0_i32_1 = arith.constant 0 : i32
    return %c0_i32, %c0_i32_0 : i32, i32
  }
  func.func @transform_8(%arg0: i32) -> (i32, i32) {
    %c0_i32 = arith.constant 0 : i32
    %c0_i32_0 = arith.constant 0 : i32
    %c0_i32_1 = arith.constant 0 : i32
    return %c0_i32, %c0_i32_0 : i32, i32
  }
  func.func @transform_9(%arg0: i32) -> (i32, i32, i32) {
    %c0_i32 = arith.constant 0 : i32
    %c0_i32_0 = arith.constant 0 : i32
    %c0_i32_1 = arith.constant 0 : i32
    %c0_i32_2 = arith.constant 0 : i32
    return %c0_i32, %c0_i32_0, %c0_i32_1 : i32, i32, i32
  }
  func.func @transform_10(%arg0: i32) -> (i32, i32, i32) {
    %c0_i32 = arith.constant 0 : i32
    %c0_i32_0 = arith.constant 0 : i32
    %c0_i32_1 = arith.constant 0 : i32
    %c0_i32_2 = arith.constant 0 : i32
    return %c0_i32, %c0_i32_0, %c0_i32_1 : i32, i32, i32
  }
  func.func @transform_11(%arg0: i32) -> (i32, i32, i32) {
    %c0_i32 = arith.constant 0 : i32
    %c0_i32_0 = arith.constant 0 : i32
    %c0_i32_1 = arith.constant 0 : i32
    %c0_i32_2 = arith.constant 0 : i32
    return %c0_i32, %c0_i32_0, %c0_i32_1 : i32, i32, i32
  }
  func.func @transform_12(%arg0: i32) -> (i32, i32, i32) {
    %c0_i32 = arith.constant 0 : i32
    %c0_i32_0 = arith.constant 0 : i32
    %c0_i32_1 = arith.constant 0 : i32
    %c0_i32_2 = arith.constant 0 : i32
    return %c0_i32, %c0_i32_0, %c0_i32_1 : i32, i32, i32
  }
  func.func @transform_13(%arg0: i32) -> (i32, i32, i32) {
    %c0_i32 = arith.constant 0 : i32
    %c0_i32_0 = arith.constant 0 : i32
    %c0_i32_1 = arith.constant 0 : i32
    %c0_i32_2 = arith.constant 0 : i32
    return %c0_i32, %c0_i32_0, %c0_i32_1 : i32, i32, i32
  }
  func.func @transform_14(%arg0: i32) -> (i32, i32, i32) {
    %c0_i32 = arith.constant 0 : i32
    %c0_i32_0 = arith.constant 0 : i32
    %c0_i32_1 = arith.constant 0 : i32
    %c0_i32_2 = arith.constant 0 : i32
    return %c0_i32, %c0_i32_0, %c0_i32_1 : i32, i32, i32
  }
  func.func @transform_15(%arg0: i32) -> (i32, i32) {
    %c0_i32 = arith.constant 0 : i32
    %c0_i32_0 = arith.constant 0 : i32
    %c0_i32_1 = arith.constant 0 : i32
    return %c0_i32, %c0_i32_0 : i32, i32
  }
  func.func @transform_16(%arg0: i32) -> (i32, i32, i32) {
    %c0_i32 = arith.constant 0 : i32
    %c0_i32_0 = arith.constant 0 : i32
    %c0_i32_1 = arith.constant 0 : i32
    %c0_i32_2 = arith.constant 0 : i32
    return %c0_i32, %c0_i32_0, %c0_i32_1 : i32, i32, i32
  }
  func.func @transform_17(%arg0: i32) -> (i32, i32, i32) {
    %c0_i32 = arith.constant 0 : i32
    %c0_i32_0 = arith.constant 0 : i32
    %c0_i32_1 = arith.constant 0 : i32
    %c0_i32_2 = arith.constant 0 : i32
    return %c0_i32, %c0_i32_0, %c0_i32_1 : i32, i32, i32
  }
  func.func @transform_18(%arg0: i32) -> (i32, i32, i32) {
    %c0_i32 = arith.constant 0 : i32
    %c0_i32_0 = arith.constant 0 : i32
    %c0_i32_1 = arith.constant 0 : i32
    %c0_i32_2 = arith.constant 0 : i32
    return %c0_i32, %c0_i32_0, %c0_i32_1 : i32, i32, i32
  }
  func.func @transform_19(%arg0: i32) -> (i32, i32, i32) {
    %c0_i32 = arith.constant 0 : i32
    %c0_i32_0 = arith.constant 0 : i32
    %c0_i32_1 = arith.constant 0 : i32
    %c0_i32_2 = arith.constant 0 : i32
    return %c0_i32, %c0_i32_0, %c0_i32_1 : i32, i32, i32
  }
  func.func @transform_20(%arg0: i32) -> (i32, i32, i32) {
    %c0_i32 = arith.constant 0 : i32
    %c0_i32_0 = arith.constant 0 : i32
    %c0_i32_1 = arith.constant 0 : i32
    %c0_i32_2 = arith.constant 0 : i32
    return %c0_i32, %c0_i32_0, %c0_i32_1 : i32, i32, i32
  }
  func.func @transform_21(%arg0: i32) -> (i32, i32, i32) {
    %c0_i32 = arith.constant 0 : i32
    %c0_i32_0 = arith.constant 0 : i32
    %c0_i32_1 = arith.constant 0 : i32
    %c0_i32_2 = arith.constant 0 : i32
    return %c0_i32, %c0_i32_0, %c0_i32_1 : i32, i32, i32
  }
  func.func @transform_22(%arg0: i32) -> (i32, i32, i32) {
    %c0_i32 = arith.constant 0 : i32
    %c0_i32_0 = arith.constant 0 : i32
    %c0_i32_1 = arith.constant 0 : i32
    %c0_i32_2 = arith.constant 0 : i32
    return %c0_i32, %c0_i32_0, %c0_i32_1 : i32, i32, i32
  }
  func.func @transform_23(%arg0: i32) -> (i32, i32, i32) {
    %c0_i32 = arith.constant 0 : i32
    %c0_i32_0 = arith.constant 0 : i32
    %c0_i32_1 = arith.constant 0 : i32
    %c0_i32_2 = arith.constant 0 : i32
    return %c0_i32, %c0_i32_0, %c0_i32_1 : i32, i32, i32
  }
  func.func @transform_24(%arg0: i32) -> (i32, i32, i32) {
    %c0_i32 = arith.constant 0 : i32
    %c0_i32_0 = arith.constant 0 : i32
    %c0_i32_1 = arith.constant 0 : i32
    %c0_i32_2 = arith.constant 0 : i32
    return %c0_i32, %c0_i32_0, %c0_i32_1 : i32, i32, i32
  }
  func.func @transform_25(%arg0: i32) -> (i32, i32, i32) {
    %c0_i32 = arith.constant 0 : i32
    %c0_i32_0 = arith.constant 0 : i32
    %c0_i32_1 = arith.constant 0 : i32
    %c0_i32_2 = arith.constant 0 : i32
    return %c0_i32, %c0_i32_0, %c0_i32_1 : i32, i32, i32
  }
  func.func @transform_26(%arg0: i32) -> (i32, i32) {
    %c0_i32 = arith.constant 0 : i32
    %c0_i32_0 = arith.constant 0 : i32
    %c0_i32_1 = arith.constant 0 : i32
    return %c0_i32, %c0_i32_0 : i32, i32
  }
  func.func @transform_27(%arg0: i32) -> (i32, i32) {
    %c0_i32 = arith.constant 0 : i32
    %c0_i32_0 = arith.constant 0 : i32
    %c0_i32_1 = arith.constant 0 : i32
    return %c0_i32, %c0_i32_0 : i32, i32
  }
  func.func @transform_28(%arg0: i32) -> (i32, i32) {
    %c0_i32 = arith.constant 0 : i32
    %c0_i32_0 = arith.constant 0 : i32
    return %arg0, %c0_i32 : i32, i32
  }
  func.func @transform_29(%arg0: i32) -> (i32, i32) {
    %c0_i32 = arith.constant 0 : i32
    %c0_i32_0 = arith.constant 0 : i32
    return %arg0, %c0_i32 : i32, i32
  }
}

</mosaic_0001>

<bundles_post_ra>
// kernel: seq2seq_forward.1
= control target key start
LH: loop header
LB: loop body
LE: loop exit
PB: predicated region body
PF: predicated region fallthrough
CT: control target
= control target key end

     0   :  { %s6655_s6 = smov 1   ;;  %s6656_s10 = smov 2   ;;  %s7753_s0 = inlined_call_operand.smem [shape: u32[30], index: -1, kind: input, shape index: {}] }
   0x1   :  { %s6704_s5 = sld [smem:[%s7753_s0]]   ;;  %s6657_s14 = smov 3  }
   0x2   :  { %s6709_s9 = sld [smem:[%s7753_s0 + %s6655_s6]]   ;;  %s6658_s18 = smov 4  }
   0x3   :  { %s6714_s13 = sld [smem:[%s7753_s0 + %s6656_s10]]   ;;  %s6659_s22 = smov 5  }
   0x4   :  { %s6719_s17 = sld [smem:[%s7753_s0 + %s6657_s14]]   ;;  %s6660_s26 = smov 6  }
   0x5   :  { %s6724_s21 = sld [smem:[%s7753_s0 + %s6658_s18]]   ;;  %s6661_s30 = smov 7  }
   0x6   :  { %s6729_s25 = sld [smem:[%s7753_s0 + %s6659_s22]]   ;;  %s6662_s4 = smov 8  }
   0x7   :  { %7794 = sst [smem:[#allocation5_spill]] %s6704_s5  ;;  %s6663_s10 = smov 9  }
   0x8   :  { %7795 = sst [smem:[#allocation6_spill]] %s6709_s9  ;;  %s6664_s15 = smov 10  }
   0x9   :  { %7796 = sst [smem:[#allocation7_spill]] %s6714_s13  ;;  %s6665_s20 = smov 11  }
   0xa   :  { %7797 = sst [smem:[#allocation8_spill]] %s6719_s17  ;;  %s6667_s1 = smov 13  }
   0xb   :  { %7798 = sst [smem:[#allocation9_spill]] %s6724_s21  ;;  %s6668_s7 = smov 14  }
   0xc   :  { %7799 = sst [smem:[#allocation10_spill]] %s6729_s25  ;;  %s6670_s22 = smov 16  }
   0xd   :  { %s6734_s29 = sld [smem:[%s7753_s0 + %s6660_s26]]   ;;  %s6666_s26 = smov 12  }
   0xe   :  { %s6739_s3 = sld [smem:[%s7753_s0 + %s6661_s30]]   ;;  %s6671_s28 = smov 17  }
   0xf   :  { %s6744_s8 = sld [smem:[%s7753_s0 + %s6662_s4]]  }
  0x10   :  { %s6749_s14 = sld [smem:[%s7753_s0 + %s6663_s10]]  }
  0x11   :  { %s6754_s19 = sld [smem:[%s7753_s0 + %s6664_s15]]   ;;  %s6669_s15 = smov 15  }
  0x12   :  { %s6759_s24 = sld [smem:[%s7753_s0 + %s6665_s20]]  }
  0x13   :  { %7800 = sst [smem:[#allocation11_spill]] %s6734_s29 }
  0x14   :  { %s6764_s30 = sld [smem:[%s7753_s0 + %s6666_s26]]  }
  0x15   :  { %s6769_s6 = sld [smem:[%s7753_s0 + %s6667_s1]]  }
  0x16   :  { %7801 = sst [smem:[#allocation12_spill]] %s6749_s14 }
  0x17   :  { %7802 = sst [smem:[#allocation13_spill]] %s6754_s19 }
  0x18   :  { %7803 = sst [smem:[#allocation14_spill]] %s6759_s24 }
  0x19   :  { %s6774_s12 = sld [smem:[%s7753_s0 + %s6668_s7]]   ;;  %s6672_s7 = smov 18  }
  0x1a   :  { %7804 = sst [smem:[#allocation15_spill]] %s6764_s30 }
  0x1b   :  { %7805 = sst [smem:[#allocation16_spill]] %s6769_s6 }
  0x1c   :  { %s6779_s20 = sld [smem:[%s7753_s0 + %s6669_s15]]   ;;  %s6673_s15 = smov 19  }
  0x1d   :  { %s6784_s27 = sld [smem:[%s7753_s0 + %s6670_s22]]   ;;  %s6674_s22 = smov 20  }
  0x1e   :  { %s6789_s4 = sld [smem:[%s7753_s0 + %s6671_s28]]   ;;  %s6675_s28 = smov 21  }
  0x1f   :  { %7806 = sst [smem:[#allocation17_spill]] %s6774_s12 }
  0x20   :  { %s6794_s17 = sld [smem:[%s7753_s0 + %s6672_s7]]   ;;  %s6676_s7 = smov 22  }
  0x21   :  { %s6799_s29 = sld [smem:[%s7753_s0 + %s6673_s15]]   ;;  %s6677_s15 = smov 23  }
  0x22   :  { %7807 = sst [smem:[#allocation18_spill]] %s6779_s20 }
  0x23   :  { %s6804_s20 = sld [smem:[%s7753_s0 + %s6674_s22]]   ;;  %s6678_s22 = smov 24  }
  0x24   :  { %s6809_s25 = sld [smem:[%s7753_s0 + %s6675_s28]]   ;;  %s6679_s28 = smov 25  }
  0x26   :  { %7808 = sst [smem:[#allocation19_spill]] %s6794_s17 }
  0x27   :  { %7809 = sst [smem:[#allocation20_spill]] %s6799_s29 }
  0x28   :  { %s6814_s17 = sld [smem:[%s7753_s0 + %s6676_s7]]   ;;  %s6680_s7 = smov 26  }
  0x29   :  { %7810 = sst [smem:[#allocation21_spill]] %s6804_s20 }
  0x2a   :  { %7811 = sst [smem:[#allocation22_spill]] %s6809_s25 }
  0x2b   :  { %s6819_s29 = sld [smem:[%s7753_s0 + %s6677_s15]]   ;;  %s6681_s15 = smov 27  }
  0x2c   :  { %s6824_s20 = sld [smem:[%s7753_s0 + %s6678_s22]]   ;;  %s6682_s22 = smov 28  }
  0x2d   :  { %s6829_s25 = sld [smem:[%s7753_s0 + %s6679_s28]]   ;;  %s6683_s28 = smov 29  }
  0x2e   :  { %7812 = sst [smem:[#allocation23_spill]] %s6814_s17 }
  0x2f   :  { %s6834_s17 = sld [smem:[%s7753_s0 + %s6680_s7]]  }
  0x31   :  { %7813 = sst [smem:[#allocation24_spill]] %s6819_s29 }
  0x32   :  { %7814 = sst [smem:[#allocation25_spill]] %s6824_s20 }
  0x33   :  { %7815 = sst [smem:[#allocation26_spill]] %s6829_s25 }
  0x34   :  { %s6839_s29 = sld [smem:[%s7753_s0 + %s6681_s15]]  }
  0x35   :  { %s6844_s20 = sld [smem:[%s7753_s0 + %s6682_s22]]  }
  0x36   :  { %s6849_s25 = sld [smem:[%s7753_s0 + %s6683_s28]]  }
  0x3c   :  { %7816 = sst [smem:[#allocation27_spill]] %s6849_s25 }
  0x3d   :  { %65 = vsyncpa [#allocation3], 0 }
  0x3e   :  { %67 = vsyncpa [#allocation3 + $0x1], 0  ;;  %s6851_s7 = smov 0   ;;  %s6853_s10 = smov 0  }
  0x3f   :  { %s6855_s11 = smov 0   ;;  %s6857_s15 = smov 0  }
  0x40 LB: > { %s7817_s30 = sld [smem:[#allocation15_spill]]  ;;  %s7818_s12 = sld [smem:[#allocation17_spill]]  ;;  %s6653_s15 = sphi %s6857_s15, %s7859_s15   ;;  %s6649_s11 = sphi %s6855_s11, %s7861_s11   ;;  %s6645_s10 = sphi %s6853_s10, %s7863_s10   ;;  %s6641_s7 = sphi %s6851_s7, %s7862_s7  }
  0x41   : > { %s7819_s6 = sld [smem:[#allocation16_spill]]  ;;  %s7820_s24 = sld [smem:[#allocation14_spill]] }
  0x42   : > { %s7821_s21 = sld [smem:[#allocation9_spill]]  ;;  %s7822_s19 = sld [smem:[#allocation13_spill]] }
  0x43   : > { %s7823_s14 = sld [smem:[#allocation12_spill]]  ;;  %s7824_s9 = sld [smem:[#allocation6_spill]] }
  0x44   : > { %7825 = sst [smem:[#allocation28_spill]] %s6641_s7  ;;  %s6872_s0 = sadd.s32 4294967295, %s6653_s15  }
  0x45   : > { %7826 = sst [smem:[#allocation29_spill]] %s6649_s11  ;;  %s5276_s16 = sadd.s32 4294967294, %s6653_s15  }
  0x46   : > { %s6876_s18 = sadd.s32 1, %s6653_s15   ;;  %s683_s22 = sadd.s32 1, %s6649_s11 }
  0x47   : > { %7827 = sst [smem:[#allocation30_spill]] %s6876_s18  ;;  %s680_s23 = ssub.s32 %s6653_s15, %s6876_s18 }
  0x48   : > { %p693_p0 = scmp.ne.s32.totalorder %s6649_s11, %s6645_s10  ;;  %p681_p1 = scmp.eq.s32.totalorder %s680_s23, 0 }
  0x49   : > { %p694_p2 = scmp.eq.s32.totalorder %s6872_s0, 1  ;;  %p699_p3 = scmp.ne.s32.totalorder %s6645_s10, %s6641_s7 }
  0x4a   : > { %p700_p4 = scmp.eq.s32.totalorder %s5276_s16, 1  ;;  %p5279_p7 = scmp.ge.s32.totalorder %s6653_s15, 1 }
  0x4b   : > { %s6887_s26 = scalar_select %p681_p1, %s6649_s11, %s683_s22  }
  0x4c   : > { %p6889_p5 = por %p694_p2, %p693_p0  ;;  %p6893_p6 = por %p700_p4, %p699_p3 }
  0x4d   : > { %7828 = sst [smem:[#allocation31_spill]] %s6887_s26  ;;  %p841_p8 = scmp.lt.s32.totalorder %s6653_s15, 3 }
  0x4e   : > { %s7830_s1 = scalar_select %p6893_p6, 1, 0 }
  0x4f   : > { %p842_p9 = pnand %p5279_p7, %p841_p8 }
  0x50   : > { %7831 = sst [smem:[#allocation32_spill]] %s7830_s1  ;;  %v6303_v0 = vld [vmem:[%s7824_s9 + $0x40] sm:$0xff] (!%p842_p9)   ;;  %v6307_v4 = vld [vmem:[%s7824_s9 + $0x48] sm:$0xff] (!%p842_p9)   ;;  %v6311_v8 = vld [vmem:[%s7824_s9 + $0x50] sm:$0xff] (!%p842_p9)   ;;  %p929_p10 = scmp.lt.s32.totalorder (!%p842_p9), %s6872_s0, 1  ;;  %vm1315_vm0 = vcmask (!%p842_p9), 261120  }
  0x51   : > { %845 = sbr.rel (%p842_p9) target bundleno = 13491 (0x34b3), region = 132  ;;  %v6304_v1 = vld [vmem:[%s7824_s9 + $0xc0] sm:$0xff] (!%p842_p9)   ;;  %5588 = vmatprep.subr.bf16.mxu0 (!%p842_p9), %v6303_v0  ;;  %v6308_v5 = vld [vmem:[%s7824_s9 + $0xc8] sm:$0xff] (!%p842_p9)   ;;  %v6312_v9 = vld [vmem:[%s7824_s9 + $0xd0] sm:$0xff] (!%p842_p9)   ;;  %s7832_s5 = sld [smem:[#allocation5_spill]] (!%p842_p9)  ;;  %vm1342_vm1 = vcmask (!%p842_p9), 523264  }
  0x52   : > { %v6305_v2 = vld [vmem:[%s7824_s9] sm:$0xff] (!%p842_p9)   ;;  %5610 = vmatprep.subr.bf16.mxu1 (!%p842_p9), %v6304_v1  ;;  %v6309_v6 = vld [vmem:[%s7824_s9 + $0x8] sm:$0xff] (!%p842_p9)   ;;  %v6313_v10 = vld [vmem:[%s7824_s9 + $0x10] sm:$0xff] (!%p842_p9)   ;;  %s7764_s23 = smov (!%p842_p9), 96   ;;  %vm1344_vm2 = vcmask (!%p842_p9), 785408   ;;  %vm1477_vm3 = vcmask (!%p842_p9), 64512  }
  0x53   : > { %v6306_v3 = vld [vmem:[%s7824_s9 + $0x80] sm:$0xff] (!%p842_p9)   ;;  %5589 = vmatpush3.bf16.msra.mxu0 (!%p842_p9), %v6305_v2  ;;  %v6310_v7 = vld [vmem:[%s7824_s9 + $0x88] sm:$0xff] (!%p842_p9)   ;;  %v6314_v11 = vld [vmem:[%s7824_s9 + $0x90] sm:$0xff] (!%p842_p9)   ;;  %vm1695_vm4 = vcmask (!%p842_p9), 195584   ;;  %vm1690_vm5 = vcmask (!%p842_p9), 130048   ;;  %vm6693_vm6 = vmmov (!%p842_p9), 0  }
  0x54   : > { %5611 = vmatpush3.bf16.msra.mxu1 (!%p842_p9), %v6306_v3  ;;  %5590 = vmatprep.subr.bf16.mxu0 (!%p842_p9), %v6307_v4  ;;  %v6315_v12 = vld [vmem:[%s7824_s9 + $0x58] sm:$0xff] (!%p842_p9)   ;;  %v6319_v16 = vld [vmem:[%s7824_s9 + $0x60] sm:$0xff] (!%p842_p9)   ;;  %v6323_v20 = vld [vmem:[%s7824_s9 + $0x68] sm:$0xff] (!%p842_p9)   ;;  %s7840_s13 = sld [smem:[#allocation7_spill]] (!%p842_p9)  ;;  %s7850_s11 = sld [smem:[#allocation25_spill]] (!%p842_p9) }
  0x55   : > { %5612 = vmatprep.subr.bf16.mxu1 (!%p842_p9), %v6308_v5  ;;  %v6316_v13 = vld [vmem:[%s7824_s9 + $0xd8] sm:$0xff] (!%p842_p9)   ;;  %v6320_v17 = vld [vmem:[%s7824_s9 + $0xe0] sm:$0xff] (!%p842_p9)   ;;  %v6324_v21 = vld [vmem:[%s7824_s9 + $0xe8] sm:$0xff] (!%p842_p9)   ;;  %s7852_s1 = sld [smem:[#allocation24_spill]] (!%p842_p9)  ;;  %s7853_s7 = sld [smem:[#allocation26_spill]] (!%p842_p9) }
  0x56   : > { %v6317_v14 = vld [vmem:[%s7824_s9 + $0x18] sm:$0xff] (!%p842_p9)   ;;  %v6321_v18 = vld [vmem:[%s7824_s9 + $0x20] sm:$0xff] (!%p842_p9)   ;;  %v6325_v22 = vld [vmem:[%s7824_s9 + $0x28] sm:$0xff] (!%p842_p9)  }
  0x57   : > { %5591 = vmatpush3.bf16.msra.mxu0 (!%p842_p9), %v6309_v6  ;;  %v6318_v15 = vld [vmem:[%s7824_s9 + $0x98] sm:$0xff] (!%p842_p9)   ;;  %v6322_v19 = vld [vmem:[%s7824_s9 + $0xa0] sm:$0xff] (!%p842_p9)   ;;  %v6326_v23 = vld [vmem:[%s7824_s9 + $0xa8] sm:$0xff] (!%p842_p9)  }
  0x58   : > { %5613 = vmatpush3.bf16.msra.mxu1 %v6310_v7  ;;  %5592 = vmatprep.subr.bf16.mxu0 %v6311_v8  ;;  %s6924_s2 = scalar_select %p929_p10, %s6872_s0, 1  ;;  %v6327_v24 = vld [vmem:[%s7824_s9 + $0x70] sm:$0xff]   ;;  %v6331_v28 = vld [vmem:[%s7824_s9 + $0x78] sm:$0xff]   ;;  %v6335_v60 = vld [vmem:[%s7822_s19] sm:$0xff]  }
  0x59   : > { %5614 = vmatprep.subr.bf16.mxu1 %v6312_v9  ;;  %v6328_v25 = vld [vmem:[%s7824_s9 + $0xf0] sm:$0xff]   ;;  %v6332_v29 = vld [vmem:[%s7824_s9 + $0xf8] sm:$0xff]   ;;  %v6336_v61 = vld [vmem:[%s7822_s19 + $0x8] sm:$0xff]  }
  0x5a   : > { %v6329_v26 = vld [vmem:[%s7824_s9 + $0x30] sm:$0xff]   ;;  %s5587_s16 = sshll.u32 %s6924_s2, 5  ;;  %v6333_v30 = vld [vmem:[%s7824_s9 + $0x38] sm:$0xff]   ;;  %v6339_v0 = vld [vmem:[%s7822_s19 + $0x20] sm:$0xff]   ;;  %s7155_s26 = sshll.u32 %s6924_s2, 3 }
  0x5b   : > { %5593 = vmatpush3.bf16.msra.mxu0 %v6313_v10  ;;  %v6330_v27 = vld [vmem:[%s7824_s9 + $0xb0] sm:$0xff]   ;;  %s933_s22 = scalar_lea.vmem %s7832_s5, %s5587_s16  ;;  %v6334_v31 = vld [vmem:[%s7824_s9 + $0xb8] sm:$0xff]   ;;  %v6340_v4 = vld [vmem:[%s7822_s19 + $0x28] sm:$0xff]   ;;  %s7770_s16 = smov 32  }
  0x5c   : > { %5615 = vmatpush3.bf16.msra.mxu1 %v6314_v11  ;;  %5594 = vmatprep.subr.bf16.mxu0 %v6315_v12  ;;  %v956_v32 = vld [vmem:[%s933_s22 + $0x8] sm:$0xff]  ;;  %v958_v33 = vld [vmem:[%s933_s22 + $0x18] sm:$0xff]  ;;  %v955_v34 = vld [vmem:[%s933_s22] sm:$0xff]  ;;  %s7836_s5 = smov 120   ;;  %s7837_s9 = smov 112  }
  0x5d   : > { %5616 = vmatprep.subr.bf16.mxu1 %v6316_v13  ;;  %v960_v35 = vpack.c.bf16 %v956_v32, %v956_v32  ;;  %v962_v36 = vpack.c.bf16 %v958_v33, %v958_v33  ;;  %v959_v37 = vpack.c.bf16 %v955_v34, %v955_v34  ;;  %v957_v38 = vld [vmem:[%s933_s22 + $0x10] sm:$0xff]  ;;  %v6338_v63 = vld [vmem:[%s7822_s19 + $0x18] sm:$0xff]   ;;  %v5318_v7 = vld [vmem:[%s7823_s14] ss:$0 sm:$0xff]  ;;  %s7772_s22 = smov 64   ;;  %s7843_s2 = sld [smem:[#allocation19_spill]] }
  0x5e   : > { %v961_v39 = vpack.c.bf16 %v957_v38, %v957_v38  ;;  %v6337_v62 = vld [vmem:[%s7822_s19 + $0x10] sm:$0xff]   ;;  %v6342_v8 = vld [vmem:[%s7822_s19 + $0x38] sm:$0xff]   ;;  %v6957_v13 = vld [vmem:[%s6739_s3] sm:$0xff]  ;;  %s7851_s18 = smov %s7850_s11  ;;  %s7854_s25 = smov %s7853_s7 }
  0x5f   : > { %5595 = vmatpush3.bf16.msra.mxu0 %v6317_v14  ;;  %1251 = vmatprep.mubr.bf16.mxu0 %v960_v35  ;;  %v6341_v5 = vld [vmem:[%s7822_s19 + $0x30] sm:$0xff]   ;;  %v6995_v38 = vld [vmem:[%s7821_s21] sm:$0xff] }
  0x60   : > { %5617 = vmatpush3.bf16.msra.mxu1 %v6318_v15  ;;  %5596 = vmatprep.subr.bf16.mxu0 %v6319_v16  ;;  %v6961_v15 = vld [vmem:[%s6739_s3 + $0x8] sm:$0xff]  ;;  %v6964_v16 = vld [vmem:[%s6739_s3 + $0x10] sm:$0xff] }
  0x61   : > { %5618 = vmatprep.subr.bf16.mxu1 %v6320_v17  ;;  %1291 = vmatprep.mubr.bf16.mxu1 %v962_v36  ;;  %v6967_v17 = vld [vmem:[%s6739_s3 + $0x18] sm:$0xff] }
  0x63   : > { %5597 = vmatpush3.bf16.msra.mxu0 %v6321_v18 }
  0x64   : > { %5619 = vmatpush3.bf16.msra.mxu1 %v6322_v19  ;;  %5598 = vmatprep.subr.bf16.mxu0 %v6323_v20 }
  0x65   : > { %5620 = vmatprep.subr.bf16.mxu1 %v6324_v21 }
  0x67   : > { %5599 = vmatpush3.bf16.msra.mxu0 %v6325_v22 }
  0x68   : > { %5621 = vmatpush3.bf16.msra.mxu1 %v6326_v23  ;;  %5600 = vmatprep.subr.bf16.mxu0 %v6327_v24 }
  0x69   : > { %5622 = vmatprep.subr.bf16.mxu1 %v6328_v25 }
  0x6b   : > { %5601 = vmatpush3.bf16.msra.mxu0 %v6329_v26 }
  0x6c   : > { %5623 = vmatpush3.bf16.msra.mxu1 %v6330_v27  ;;  %5602 = vmatprep.subr.bf16.mxu0 %v6331_v28 }
  0x6d   : > { %5624 = vmatprep.subr.bf16.mxu1 %v6332_v29 }
  0x6f   : > { %5603 = vmatpush3.bf16.msra.mxu0 %v6333_v30 }
  0x70   : > { %5625 = vmatpush3.bf16.msra.mxu1 %v6334_v31  ;;  %5819 = vmatprep.subr.bf16.mxu0 %v6335_v60 }
  0x72   : > { %1252 = vmatmul.mubr.bf16.vlgmr.msra.gmra.mrb[0].mxu0 %v959_v37  ;;  %v6992_v37 = vld [vmem:[%s7821_s21 + $0x10] sm:$0xff] }
  0x73   : > { %1292 = vmatmul.mubr.bf16.vlgmr.msra.gmra.mrb[0].mxu1 %v961_v39  ;;  %5820 = vmatpush3.bf16.msra.mxu0 %v6335_v60 }
  0x74   : > { %5821 = vmatprep.subr.bf16.mxu0 %v6336_v61 }
  0x77   : > { %5822 = vmatpush3.bf16.msra.mxu0 %v6336_v61 }
  0x78   : > { %5823 = vmatprep.subr.bf16.mxu0 %v6337_v62 }
  0x7b   : > { %5824 = vmatpush3.bf16.msra.mxu0 %v6337_v62 }
  0x7c   : > { %5825 = vmatprep.subr.bf16.mxu0 %v6338_v63 }
  0x7f   : > { %5826 = vmatpush3.bf16.msra.mxu0 %v6338_v63 }
  0x80   : > { %5827 = vmatprep.subr.bf16.mxu0 %v6339_v0 }
  0x83   : > { %5828 = vmatpush3.bf16.msra.mxu0 %v6339_v0 }
  0x84   : > { %5829 = vmatprep.subr.bf16.mxu0 %v6340_v4 }
  0x87   : > { %5830 = vmatpush3.bf16.msra.mxu0 %v6340_v4 }
  0x88   : > { %5831 = vmatprep.subr.bf16.mxu0 %v6341_v5 }
  0x8b   : > { %5832 = vmatpush3.bf16.msra.mxu0 %v6341_v5 }
  0x8c   : > { %5833 = vmatprep.subr.bf16.mxu0 %v6342_v8 }
  0x8f   : > { %5834 = vmatpush3.bf16.msra.mxu0 %v6342_v8 }
 0x145   : > { %v5604_v40 = vpop.f32.mrb[0].mxu0 }
 0x146   : > { %v5626_v41 = vpop.f32.mrb[0].mxu1  ;;  %v5605_v42 = vpop.f32.mrb[1].mxu0 }
 0x147   : > { %v5627_v43 = vpop.f32.mrb[1].mxu1  ;;  %v5606_v44 = vadd.f32 %v5605_v42, %v5604_v40  ;;  %v5607_v46 = vpop.f32.mrb[2].mxu0  ;;  %v6999_v42 = vld [vmem:[%s7821_s21 + $0x8] sm:$0xff] }
 0x148   : > { %v5628_v45 = vadd.f32 %v5627_v43, %v5626_v41  ;;  %v5629_v47 = vpop.f32.mrb[2].mxu1  ;;  %v5608_v48 = vpop.f32.mrb[3].mxu0 }
 0x149   : > { %v5630_v49 = vpop.f32.mrb[3].mxu1  ;;  %v7004_v47 = vld [vmem:[%s7821_s21 + $0x18] sm:$0xff]  ;;  %s7841_s21 = smov 24  }
 0x14a   : > { %v1294_v50 = vadd.f32 %v5628_v45, %v5606_v44 }
 0x14c   : > { %v1299_v51 = vmul.f32 %v1294_v50, %v1294_v50 }
 0x14e   : > { %1301 = vrot.lane.b32.xlu0 %v1299_v51, %s7764_s23 }
 0x1c0   : > { %v1302_v52 = vpop.permute.xlu0 %1301 }
 0x1c1   : > { %v1304_v53 = vadd.f32 %v1302_v52, %v1299_v51 }
 0x1c3   : > { %v1305_v54 = vmax.f32 %v1304_v53, 1e-10 }
 0x1c5   : > { %6437 = vlog2.f32 %v1305_v54 }
 0x1cf   : > { %v6438_v55 = vpop.eup %6437 }
 0x1d0   : > { %v1307_v56 = vmul.f32 0.6931472, %v6438_v55 }
 0x1d2   : > { %v6938_v57 = vmul.f32 0.5, %v1307_v56 }
 0x1d4   : > { %v1314_v58 = vmul.f32 %v6938_v57, %v6938_v57 }
 0x1d6   : > { %v1316_v59 = vsel %vm1315_vm0, %v1314_v58, 0.0 }
 0x1d7   : > { %1317 = vadd.xlane.f32.xlu0 %v1316_v59 }
 0x264   : > { %v1318_v1 = vpop.xlane.xlu0 %1317 }
 0x265   : > { %v1320_v2 = vmul.f32 0.03125, %v1318_v1 }
 0x267   : > { %v1321_v3 = vadd.f32 1e-06, %v1320_v2 }
 0x269   : > { %6439 = vrsqrt.f32 %v1321_v3 }
 0x273   : > { %v6440_v6 = vpop.eup %6439 }
 0x274   : > { %v1323_v9 = vmul.f32 %v6440_v6, %v6938_v57 }
 0x276   : > { %v1330_v10 = vmul.f32 %v5318_v7, %v1323_v9 }
 0x278   : > { %1332 = vrot.lane.b32.xlu1 %v1330_v10, %s7770_s16  ;;  %s7776_s16 = smov 16  }
 0x27c   : > { %1335 = vrot.lane.b32.xlu1 %v1330_v10, %s7772_s22  ;;  %s7774_s22 = smov 24  }
 0x280   : > { %1338 = vrot.lane.b32.xlu1 %v1330_v10, %s7764_s23  ;;  %s7766_s23 = smov 120  }
 0x2ea   : > { %v1333_v11 = vpop.permute.xlu1 %1332 }
 0x2eb   : > { %v1341_v14 = vsel %vm1315_vm0, %v1330_v10, %v1333_v11 }
 0x2ee   : > { %v1336_v12 = vpop.permute.xlu1 %1335 }
 0x2ef   : > { %v1343_v18 = vsel %vm1342_vm1, %v1341_v14, %v1336_v12 }
 0x2f2   : > { %v1339_v19 = vpop.permute.xlu1 %1338 }
 0x2f3   : > { %v1345_v20 = vsel %vm1344_vm2, %v1343_v18, %v1339_v19 }
 0x2f4   : > { %v1346_v21 = vmul.f32 %v1345_v20, %v6957_v13  ;;  %v1347_v22 = vmul.f32 %v1345_v20, %v6961_v15  ;;  %v1348_v23 = vmul.f32 %v1345_v20, %v6964_v16  ;;  %v1349_v24 = vmul.f32 %v1345_v20, %v6967_v17 }
 0x2f6   : > { %v1350_v25 = vpack.c.bf16 %v1347_v22, %v1346_v21  ;;  %v1351_v26 = vpack.c.bf16 %v1349_v24, %v1348_v23 }
 0x2f8   : > { %5835 = vmatprep.mubr.bf16.mxu0 %v1350_v25 }
 0x2f9   : > { %5836 = vmatmul.mubr.bf16.vlgmr.msra.gmra.mrb[4].mxu0 %v1351_v26 }
 0x3cc   : > { %v5837_v27 = vpop.f32.mrb[4].mxu0 }
 0x3cd   : > { %v1450_v28 = vpop.f32.mrb[5].mxu0 }
 0x3ce   : > { %v5838_v29 = vpop.f32.mrb[6].mxu0 }
 0x3cf   : > { %v6975_v30 = vpack.c.bf16 %v5838_v29, %v5837_v27  ;;  %v1453_v31 = vpop.f32.mrb[7].mxu0 }
 0x3d0   : > { %v6977_v32 = vpack.c.bf16 %v1453_v31, %v1450_v28 }
 0x3d2   : > { %1473 = vrot.lane.b32.xlu1 %v6977_v32, %s7766_s23  ;;  %5843 = vmatprep.mubr.msk.bf16.mxu1 %vm1477_vm3, %v6977_v32 }
 0x3d6   : > { %1475 = vrot.lane.b32.xlu1 %v6975_v30, %s7766_s23  ;;  %s7768_s23 = smov 112  }
 0x444   : > { %v1474_v33 = vpop.permute.xlu1 %1473 }
 0x445   : > { %6211 = vmatprep.subr.msk.bf16.mxu1 %vm1477_vm3, %v1474_v33  ;;  %v1485_v34 = vsel %vm1477_vm3, %v1474_v33, 0 }
 0x446   : > { %5840 = vmatpush3.bf16.xpose.msra.mxu1 %v1485_v34  ;;  %v6343_v34 = vld [vmem:[%s7820_s24] sm:$0xff]  }
 0x448   : > { %v1476_v35 = vpop.permute.xlu1 %1475 }
 0x449   : > { %6212 = vmatprep.subr.msk.bf16.mxu1 %vm1477_vm3, %v1476_v35  ;;  %v1488_v36 = vsel %vm1477_vm3, %v1476_v35, 0  ;;  %v6344_v35 = vld [vmem:[%s7820_s24 + $0x8] sm:$0xff]  }
 0x44e   : > { %5842 = vmatpush3.bf16.xpose.msra.mxu1 %v1488_v36 }
 0x455   : > { %5844 = vmatmul.mubr.msk.bf16.vlgmr.msra.gmra.mrb[4].mxu1 %vm1477_vm3, %v6975_v30 }
 0x528   : > { %v5845_v39 = vpop.f32.mrb[4].mxu1 }
 0x529   : > { %v1533_v40 = vadd.f32 %v5845_v39, %v6992_v37  ;;  %v1524_v41 = vpop.f32.mrb[5].mxu1 }
 0x52a   : > { %v1525_v43 = vadd.f32 %v1524_v41, %v6995_v38  ;;  %v5846_v44 = vpop.f32.mrb[6].mxu1 }
 0x52b   : > { %v1527_v45 = vpop.f32.mrb[7].mxu1  ;;  %v1545_v46 = vsel %vm1315_vm0, %v1533_v40, -inf  ;;  %v1536_v51 = vadd.f32 %v5846_v44, %v7004_v47 }
 0x52c   : > { %v1528_v48 = vadd.f32 %v1527_v45, %v6999_v42  ;;  %1546 = vmax.xlane.f32.xlu0 %v1545_v46  ;;  %v1539_v49 = vsel %vm1315_vm0, %v1525_v43, -inf }
 0x52d   : > { %1540 = vmax.xlane.f32.xlu1 %v1539_v49  ;;  %v1548_v52 = vsel %vm1315_vm0, %v1536_v51, -inf }
 0x52e   : > { %v1542_v50 = vsel %vm1315_vm0, %v1528_v48, -inf }
 0x530   : > { %1543 = vmax.xlane.f32.xlu0 %v1542_v50 }
 0x534   : > { %1549 = vmax.xlane.f32.xlu0 %v1548_v52  ;;  %v7039_v52 = vld [vmem:[%s6744_s8] sm:$0xff] }
 0x5b9   : > { %v1547_v53 = vpop.xlane.xlu0 %1546 }
 0x5ba   : > { %v1553_v54 = vsub.f32 %v1533_v40, %v1547_v53  ;;  %v1541_v55 = vpop.xlane.xlu1 %1540 }
 0x5bb   : > { %v1551_v56 = vsub.f32 %v1525_v43, %v1541_v55 }
 0x5bc   : > { %v1559_v58 = vmul.f32 1.442695, %v1553_v54  ;;  %v7043_v54 = vld [vmem:[%s6744_s8 + $0x8] sm:$0xff] }
 0x5bd   : > { %v1555_v59 = vmul.f32 1.442695, %v1551_v56  ;;  %v1544_v60 = vpop.xlane.xlu0 %1543 }
 0x5be   : > { %6441 = vpow2.f32 %v1559_v58  ;;  %v1552_v61 = vsub.f32 %v1528_v48, %v1544_v60 }
 0x5bf   : > { %6443 = vpow2.f32 %v1555_v59 }
 0x5c0   : > { %v1557_v62 = vmul.f32 1.442695, %v1552_v61 }
 0x5c1   : > { %v1550_v63 = vpop.xlane.xlu0 %1549 }
 0x5c2   : > { %v1554_v0 = vsub.f32 %v1536_v51, %v1550_v63  ;;  %6445 = vpow2.f32 %v1557_v62 }
 0x5c4   : > { %v1561_v1 = vmul.f32 1.442695, %v1554_v0 }
 0x5c6   : > { %6447 = vpow2.f32 %v1561_v1  ;;  %v7053_v1 = vld [vmem:[%s6744_s8 + $0x10] sm:$0xff] }
 0x5c8   : > { %v6442_v2 = vpop.eup %6441 }
 0x5c9   : > { %v1569_v3 = vsel %vm1315_vm0, %v6442_v2, 0.0  ;;  %v6444_v4 = vpop.eup %6443 }
 0x5ca   : > { %1570 = vadd.xlane.f32.xlu0 %v1569_v3  ;;  %v1563_v5 = vsel %vm1315_vm0, %v6444_v4, 0.0  ;;  %v7057_v3 = vld [vmem:[%s6744_s8 + $0x18] sm:$0xff] }
 0x5cc   : > { %v6446_v6 = vpop.eup %6445 }
 0x5cd   : > { %v1566_v9 = vsel %vm1315_vm0, %v6446_v6, 0.0 }
 0x5ce   : > { %1564 = vadd.xlane.f32.xlu0 %v1563_v5 }
 0x5d0   : > { %v6448_v7 = vpop.eup %6447 }
 0x5d1   : > { %v1572_v8 = vsel %vm1315_vm0, %v6448_v7, 0.0 }
 0x5d2   : > { %1573 = vadd.xlane.f32.xlu1 %v1572_v8  ;;  %1567 = vadd.xlane.f32.xlu0 %v1566_v9 }
 0x5e3   : > { %1587 = vrot.lane.b32.xlu1 %v6975_v30, %s7768_s23 }
 0x5e8   : > { %1585 = vrot.lane.b32.xlu0 %v6977_v32, %s7768_s23  ;;  %s7778_s23 = smov 8  }
 0x657   : > { %v1571_v10 = vpop.xlane.xlu0 %1570 }
 0x65b   : > { %v1565_v11 = vpop.xlane.xlu0 %1564 }
 0x65c   : > { %6449 = vrcp.f32 %v1565_v11 }
 0x65d   : > { %6451 = vrcp.f32 %v1571_v10 }
 0x65f   : > { %v1568_v12 = vpop.xlane.xlu0 %1567  ;;  %v1574_v14 = vpop.xlane.xlu1 %1573 }
 0x660   : > { %6453 = vrcp.f32 %v1568_v12 }
 0x661   : > { %6455 = vrcp.f32 %v1574_v14 }
 0x663   : > { %v1586_v18 = vpop.permute.xlu0 %1585  ;;  %v1588_v19 = vpop.permute.xlu1 %1587 }
 0x664   : > { %5847 = vmatprep.subr.bf16.mxu1 %v1586_v18 }
 0x665   : > { %5848 = vmatpush3.bf16.msra.mxu1 %v1586_v18 }
 0x666   : > { %5849 = vmatprep.subr.bf16.mxu1 %v1588_v19  ;;  %v6450_v20 = vpop.eup %6449 }
 0x667   : > { %v6452_v21 = vpop.eup %6451  ;;  %v1579_v24 = vmul.f32 %v6450_v20, %v6444_v4 }
 0x668   : > { %v1581_v26 = vmul.f32 %v6452_v21, %v6442_v2 }
 0x669   : > { %5850 = vmatpush3.bf16.msra.mxu1 %v1588_v19 }
 0x66a   : > { %v6454_v22 = vpop.eup %6453  ;;  %5855 = vmatprep.subr.bf16.mxu1 %v6343_v34 }
 0x66b   : > { %v6456_v23 = vpop.eup %6455  ;;  %v1580_v25 = vmul.f32 %v6454_v22, %v6446_v6 }
 0x66c   : > { %v1582_v27 = vmul.f32 %v6456_v23, %v6448_v7 }
 0x66d   : > { %v1583_v28 = vpack.c.bf16 %v1580_v25, %v1579_v24  ;;  %v6345_v25 = vld [vmem:[%s7819_s6] sm:$0xff]  }
 0x66e   : > { %v1584_v29 = vpack.c.bf16 %v1582_v27, %v1581_v26  ;;  %v6692_v26 = vmov 0.0   ;;  %v6346_v27 = vld [vmem:[%s7819_s6 + $0x8] sm:$0xff]  }
 0x66f   : > { %5851 = vmatprep.mubr.msk.bf16.mxu1 %vm1315_vm0, %v1583_v28  ;;  %5863 = vmatprep.subr.bf16.mxu0 %v6692_v26 }
 0x670   : > { %5852 = vmatmul.mubr.msk.bf16.vlgmr.msra.gmra.mrb[8].mxu1 %vm1315_vm0, %v1584_v29  ;;  %5864 = vmatpush3.bf16.msra.mxu0 %v6345_v25 }
 0x671   : > { %5856 = vmatpush3.bf16.msra.mxu1 %v6343_v34  ;;  %5865 = vmatprep.subr.bf16.mxu0 %v6692_v26 }
 0x672   : > { %5857 = vmatprep.subr.bf16.mxu1 %v6344_v35  ;;  %5867 = vmatprep.mubr.msk.bf16.mxu0 %vm6693_vm6, %v6692_v26 }
 0x674   : > { %5866 = vmatpush3.bf16.msra.mxu0 %v6346_v27 }
 0x675   : > { %5858 = vmatpush3.bf16.msra.mxu1 %v6344_v35  ;;  %v6347_v35 = vld [vmem:[%s7818_s12] sm:$0xff]  }
 0x676   : > { %5871 = vmatprep.subr.bf16.mxu1 %v6692_v26 }
 0x743   : > { %v5853_v30 = vpop.f32.mrb[8].mxu1 }
 0x744   : > { %1654 = vrot.lane.b32.xlu1 %v5853_v30, %s7778_s23  ;;  %v1631_v31 = vpop.f32.mrb[9].mxu1 }
 0x745   : > { %v5854_v32 = vpop.f32.mrb[10].mxu1 }
 0x746   : > { %1656 = vrot.lane.b32.xlu0 %v5854_v32, %s7778_s23  ;;  %v1634_v33 = vpop.f32.mrb[11].mxu1 }
 0x748   : > { %1666 = vrot.lane.b32.xlu1 %v5853_v30, %s7776_s16 }
 0x74a   : > { %1668 = vrot.lane.b32.xlu0 %v5854_v32, %s7776_s16 }
 0x74c   : > { %1650 = vrot.lane.b32.xlu1 %v1631_v31, %s7778_s23 }
 0x74e   : > { %1652 = vrot.lane.b32.xlu0 %v1634_v33, %s7778_s23  ;;  %s7835_s23 = smov 96  }
 0x750   : > { %1662 = vrot.lane.b32.xlu1 %v1631_v31, %s7776_s16 }
 0x752   : > { %1664 = vrot.lane.b32.xlu0 %v1634_v33, %s7776_s16  ;;  %s7834_s16 = smov 32  }
 0x754   : > { %1674 = vrot.lane.b32.xlu1 %v1631_v31, %s7774_s22 }
 0x756   : > { %1676 = vrot.lane.b32.xlu0 %v1634_v33, %s7774_s22 }
 0x758   : > { %1678 = vrot.lane.b32.xlu1 %v5853_v30, %s7774_s22 }
 0x75a   : > { %1680 = vrot.lane.b32.xlu0 %v5854_v32, %s7774_s22  ;;  %s7833_s22 = smov 64  }
 0x7b6   : > { %v1655_v36 = vpop.permute.xlu1 %1654 }
 0x7b7   : > { %v1688_v58 = vsel %vm1477_vm3, %v5853_v30, %v1655_v36  ;;  %v6348_v36 = vld [vmem:[%s7818_s12 + $0x8] sm:$0xff]  }
 0x7b8   : > { %v1657_v39 = vpop.permute.xlu0 %1656 }
 0x7b9   : > { %v1689_v0 = vsel %vm1477_vm3, %v5854_v32, %v1657_v39  ;;  %v6349_v39 = vld [vmem:[%s7818_s12 + $0x10] sm:$0xff]  }
 0x7ba   : > { %v1667_v40 = vpop.permute.xlu1 %1666 }
 0x7bb   : > { %v1693_v60 = vsel %vm1690_vm5, %v1688_v58, %v1667_v40  ;;  %v6350_v40 = vld [vmem:[%s7818_s12 + $0x18] sm:$0xff]  }
 0x7bc   : > { %v1669_v41 = vpop.permute.xlu0 %1668 }
 0x7bd   : > { %v1694_v4 = vsel %vm1690_vm5, %v1689_v0, %v1669_v41 }
 0x7be   : > { %v1651_v43 = vpop.permute.xlu1 %1650 }
 0x7bf   : > { %v1686_v48 = vsel %vm1477_vm3, %v1631_v31, %v1651_v43  ;;  %v5335_v31 = vld [vmem:[%s7817_s30] ss:$0 sm:$0xff] }
 0x7c0   : > { %v1653_v44 = vpop.permute.xlu0 %1652 }
 0x7c1   : > { %v1687_v51 = vsel %vm1477_vm3, %v1634_v33, %v1653_v44 }
 0x7c2   : > { %v1663_v45 = vpop.permute.xlu1 %1662 }
 0x7c3   : > { %v1691_v49 = vsel %vm1690_vm5, %v1686_v48, %v1663_v45 }
 0x7c4   : > { %v1665_v46 = vpop.permute.xlu0 %1664 }
 0x7c5   : > { %v1692_v55 = vsel %vm1690_vm5, %v1687_v51, %v1665_v46 }
 0x7c6   : > { %v1675_v50 = vpop.permute.xlu1 %1674 }
 0x7c7   : > { %v1696_v53 = vsel %vm1695_vm4, %v1691_v49, %v1675_v50 }
 0x7c8   : > { %v1677_v56 = vpop.permute.xlu0 %1676  ;;  %v1700_v61 = vmul.f32 %v1696_v53, %v7039_v52 }
 0x7c9   : > { %v1697_v59 = vsel %vm1695_vm4, %v1692_v55, %v1677_v56 }
 0x7ca   : > { %v1701_v62 = vmul.f32 %v1697_v59, %v7043_v54  ;;  %v1679_v63 = vpop.permute.xlu1 %1678 }
 0x7cb   : > { %v1698_v2 = vsel %vm1695_vm4, %v1693_v60, %v1679_v63 }
 0x7cc   : > { %v1704_v5 = vpack.c.bf16 %v1701_v62, %v1700_v61  ;;  %v1681_v6 = vpop.permute.xlu0 %1680  ;;  %v1702_v8 = vmul.f32 %v1698_v2, %v7053_v1 }
 0x7cd   : > { %v1699_v7 = vsel %vm1695_vm4, %v1694_v4, %v1681_v6 }
 0x7ce   : > { %v1703_v9 = vmul.f32 %v1699_v7, %v7057_v3  ;;  %5859 = vmatprep.mubr.msk.bf16.mxu1 %vm1315_vm0, %v1704_v5  ;;  %v6351_v7 = vld [vmem:[%s7822_s19 + $0x40] sm:$0xff]  }
 0x7cf   : > { %5883 = vmatprep.subr.bf16.mxu0 %v6351_v7 }
 0x7d0   : > { %v1705_v10 = vpack.c.bf16 %v1703_v9, %v1702_v8  ;;  %v6352_v8 = vld [vmem:[%s7822_s19 + $0x48] sm:$0xff]   ;;  %v6353_v9 = vld [vmem:[%s7822_s19 + $0x50] sm:$0xff]  }
 0x7d2   : > { %5860 = vmatmul.mubr.msk.bf16.vlgmr.msra.gmra.mrb[12].mxu1 %vm1315_vm0, %v1705_v10  ;;  %v6354_v10 = vld [vmem:[%s7822_s19 + $0x58] sm:$0xff]  }
 0x7d3   : > { %5879 = vmatprep.mubr.msk.bf16.mxu1 %vm6693_vm6, %v6692_v26  ;;  %5872 = vmatpush3.bf16.msra.mxu1 %v6347_v35 }
 0x7d4   : > { %5873 = vmatprep.subr.bf16.mxu1 %v6692_v26 }
 0x7d7   : > { %5874 = vmatpush3.bf16.msra.mxu1 %v6348_v36 }
 0x7d8   : > { %5875 = vmatprep.subr.bf16.mxu1 %v6692_v26 }
 0x7db   : > { %5876 = vmatpush3.bf16.msra.mxu1 %v6349_v39 }
 0x7dc   : > { %5877 = vmatprep.subr.bf16.mxu1 %v6692_v26 }
 0x7df   : > { %5878 = vmatpush3.bf16.msra.mxu1 %v6350_v40 }
 0x8a5   : > { %v5861_v11 = vpop.f32.mrb[12].mxu1 }
 0x8a6   : > { %v1758_v12 = vpop.f32.mrb[13].mxu1 }
 0x8a7   : > { %v5862_v14 = vpop.f32.mrb[14].mxu1 }
 0x8a8   : > { %v1761_v18 = vpop.f32.mrb[15].mxu1 }
 0x8a9   : > { %v1773_v19 = vadd.f32 %v1761_v18, %v1758_v12  ;;  %v6356_v12 = vld [vmem:[%s7822_s19 + $0x68] sm:$0xff]  }
 0x8ab   : > { %v1774_v20 = vadd.f32 %v5861_v11, %v1773_v19  ;;  %v6355_v11 = vld [vmem:[%s7822_s19 + $0x60] sm:$0xff]  }
 0x8ad   : > { %v1775_v21 = vadd.f32 %v5862_v14, %v1774_v20  ;;  %v6357_v20 = vld [vmem:[%s7822_s19 + $0x70] sm:$0xff]  }
 0x8af   : > { %v1776_v22 = vadd.f32 %v1775_v21, %v6938_v57  ;;  %v6358_v21 = vld [vmem:[%s7822_s19 + $0x78] sm:$0xff]   ;;  %s7839_s19 = smov 16  }
 0x8b1   : > { %v1778_v23 = vmul.f32 %v1776_v22, %v1776_v22 }
 0x8b3   : > { %v1779_v24 = vsel %vm1315_vm0, %v1778_v23, 0.0  ;;  %v5345_v23 = vld [vmem:[%s7823_s14 + $0x1] ss:$0 sm:$0xff]  ;;  %s7838_s14 = smov 8  }
 0x8b4   : > { %1780 = vadd.xlane.f32.xlu1 %v1779_v24 }
 0x941   : > { %v1781_v57 = vpop.xlane.xlu1 %1780 }
 0x942   : > { %v1782_v28 = vmul.f32 0.03125, %v1781_v57 }
 0x944   : > { %v1783_v29 = vadd.f32 1e-06, %v1782_v28 }
 0x946   : > { %6457 = vrsqrt.f32 %v1783_v29 }
 0x950   : > { %v6458_v30 = vpop.eup %6457 }
 0x951   : > { %v1785_v32 = vmul.f32 %v6458_v30, %v1776_v22 }
 0x953   : > { %v1792_v33 = vmul.f32 %v5335_v31, %v1785_v32 }
 0x955   : > { %v1805_v34 = vpack.c.bf16 %v1792_v33, %v1792_v33 }
 0x957   : > { %5868 = vmatmul.mubr.msk.bf16.vlgmr.msra.gmra.mrb[8].mxu0 %vm1315_vm0, %v1805_v34 }
 0x958   : > { %5884 = vmatpush3.bf16.msra.mxu0 %v6351_v7 }
 0x959   : > { %5885 = vmatprep.subr.bf16.mxu0 %v6352_v8 }
 0x95c   : > { %5886 = vmatpush3.bf16.msra.mxu0 %v6352_v8 }
 0x95d   : > { %5887 = vmatprep.subr.bf16.mxu0 %v6353_v9 }
 0x960   : > { %5888 = vmatpush3.bf16.msra.mxu0 %v6353_v9 }
 0x961   : > { %5889 = vmatprep.subr.bf16.mxu0 %v6354_v10 }
 0x964   : > { %5890 = vmatpush3.bf16.msra.mxu0 %v6354_v10 }
 0x965   : > { %5891 = vmatprep.subr.bf16.mxu0 %v6355_v11 }
 0x968   : > { %5892 = vmatpush3.bf16.msra.mxu0 %v6355_v11 }
 0x969   : > { %5893 = vmatprep.subr.bf16.mxu0 %v6356_v12 }
 0x96c   : > { %5894 = vmatpush3.bf16.msra.mxu0 %v6356_v12 }
 0x96d   : > { %5895 = vmatprep.subr.bf16.mxu0 %v6357_v20 }
 0x970   : > { %5896 = vmatpush3.bf16.msra.mxu0 %v6357_v20 }
 0x971   : > { %5897 = vmatprep.subr.bf16.mxu0 %v6358_v21 }
 0x974   : > { %5898 = vmatpush3.bf16.msra.mxu0 %v6358_v21 }
 0xa2a   : > { %v1855_v41 = vpop.f32.mrb[8].mxu0 }
 0xa2b   : > { %1871 = vrot.lane.b32.xlu0 %v1855_v41, %s7833_s22  ;;  %v5869_v43 = vpop.f32.mrb[9].mxu0  ;;  %v1862_v46 = vmul.f32 0.044715, %v1855_v41  ;;  %v1861_v56 = vmul.f32 0.5, %v1855_v41 }
 0xa2c   : > { %v1858_v44 = vpop.f32.mrb[10].mxu0 }
 0xa2d   : > { %v5870_v45 = vpop.f32.mrb[11].mxu0  ;;  %v1863_v48 = vmul.f32 %v1862_v46, %v1855_v41 }
 0xa2f   : > { %v1864_v49 = vmul.f32 %v1863_v48, %v1855_v41 }
 0xa31   : > { %v1865_v50 = vadd.f32 %v1864_v49, %v1855_v41 }
 0xa33   : > { %v1866_v51 = vmul.f32 0.7978846, %v1865_v50 }
 0xa35   : > { %6459 = vtanh.f32 %v1866_v51 }
 0xa3f   : > { %v6460_v53 = vpop.eup %6459 }
 0xa40   : > { %v1868_v55 = vadd.f32 1.0, %v6460_v53 }
 0xa42   : > { %v1869_v58 = vmul.f32 %v1868_v55, %v1861_v56 }
 0xa9d   : > { %v1872_v59 = vpop.permute.xlu0 %1871 }
 0xa9e   : > { %v1874_v60 = vmul.f32 %v1872_v59, %v1869_v58 }
 0xaa0   : > { %v1875_v61 = vpack.c.bf16 %v1874_v60, %v1874_v60 }
 0xaa2   : > { %5880 = vmatmul.mubr.msk.bf16.vlgmr.msra.gmra.mrb[16].mxu1 %vm1342_vm1, %v1875_v61 }
 0xb75   : > { %v1937_v62 = vpop.f32.mrb[16].mxu1 }
 0xb76   : > { %v7087_v63 = vadd.f32 %v1937_v62, %v1776_v22  ;;  %v5881_v0 = vpop.f32.mrb[17].mxu1 }
 0xb77   : > { %v1940_v2 = vpop.f32.mrb[18].mxu1 }
 0xb78   : > { %v5882_v4 = vpop.f32.mrb[19].mxu1  ;;  %v1946_v5 = vmul.f32 %v7087_v63, %v7087_v63 }
 0xb7a   : > { %v1947_v6 = vsel %vm1315_vm0, %v1946_v5, 0.0 }
 0xb7b   : > { %1948 = vadd.xlane.f32.xlu0 %v1947_v6 }
 0xc08   : > { %v1949_v14 = vpop.xlane.xlu0 %1948 }
 0xc09   : > { %v1950_v18 = vmul.f32 0.03125, %v1949_v14 }
 0xc0b   : > { %v1951_v19 = vadd.f32 1e-06, %v1950_v18 }
 0xc0d   : > { %6461 = vrsqrt.f32 %v1951_v19 }
 0xc17   : > { %v6462_v22 = vpop.eup %6461 }
 0xc18   : > { %v1953_v24 = vmul.f32 %v6462_v22, %v7087_v63 }
 0xc1a   : > { %v1960_v25 = vmul.f32 %v5345_v23, %v1953_v24 }
 0xc1c   : > { %1965 = vrot.lane.b32.xlu0 %v1960_v25, %s7833_s22  ;;  %1962 = vrot.lane.b32.xlu1 %v1960_v25, %s7834_s16 }
 0xc20   : > { %1968 = vrot.lane.b32.xlu1 %v1960_v25, %s7835_s23 }
 0xc8e   : > { %v1963_v27 = vpop.permute.xlu1 %1962  ;;  %v1966_v57 = vpop.permute.xlu0 %1965 }
 0xc8f   : > { %v1971_v28 = vsel %vm1315_vm0, %v1960_v25, %v1963_v27 }
 0xc90   : > { %v1972_v29 = vsel %vm1342_vm1, %v1971_v28, %v1966_v57 }
 0xc92   : > { %v1969_v30 = vpop.permute.xlu1 %1968 }
 0xc93   : > { %v1973_v31 = vsel %vm1344_vm2, %v1972_v29, %v1969_v30 }
 0xc94   : > { %v1974_v32 = vmul.f32 %v1973_v31, %v6957_v13  ;;  %v1975_v33 = vmul.f32 %v1973_v31, %v6961_v15  ;;  %v1976_v34 = vmul.f32 %v1973_v31, %v6964_v16  ;;  %v1977_v35 = vmul.f32 %v1973_v31, %v6967_v17 }
 0xc96   : > { %v1978_v36 = vpack.c.bf16 %v1975_v33, %v1974_v32  ;;  %v1979_v39 = vpack.c.bf16 %v1977_v35, %v1976_v34 }
 0xc98   : > { %5899 = vmatprep.mubr.bf16.mxu0 %v1978_v36 }
 0xc99   : > { %5900 = vmatmul.mubr.bf16.vlgmr.msra.gmra.mrb[12].mxu0 %v1979_v39 }
 0xd6c   : > { %v5901_v40 = vpop.f32.mrb[12].mxu0 }
 0xd6d   : > { %v2079_v41 = vpop.f32.mrb[13].mxu0 }
 0xd6e   : > { %v5902_v43 = vpop.f32.mrb[14].mxu0 }
 0xd6f   : > { %v2100_v44 = vpack.c.bf16 %v5902_v43, %v5901_v40  ;;  %v2082_v45 = vpop.f32.mrb[15].mxu0 }
 0xd70   : > { %v2099_v46 = vpack.c.bf16 %v2082_v45, %v2079_v41 }
 0xd71   : > { %2105 = vrot.lane.b32.xlu0 %v2100_v44, %s7836_s5 }
 0xd72   : > { %2103 = vrot.lane.b32.xlu1 %v2099_v46, %s7836_s5  ;;  %5907 = vmatprep.mubr.msk.bf16.mxu1 %vm1477_vm3, %v2099_v46 }
 0xde3   : > { %v2106_v17 = vpop.permute.xlu0 %2105 }
 0xde4   : > { %v2104_v48 = vpop.permute.xlu1 %2103  ;;  %v2117_v49 = vsel %vm1477_vm3, %v2106_v17, 0 }
 0xde5   : > { %6213 = vmatprep.subr.msk.bf16.mxu1 %vm1477_vm3, %v2104_v48  ;;  %v2114_v16 = vsel %vm1477_vm3, %v2104_v48, 0  ;;  %v6359_v48 = vld [vmem:[%s7820_s24 + $0x10] sm:$0xff]  }
 0xde6   : > { %5904 = vmatpush3.bf16.xpose.msra.mxu1 %v2114_v16  ;;  %5919 = vmatprep.subr.bf16.mxu0 %v6359_v48  ;;  %v6360_v16 = vld [vmem:[%s7820_s24 + $0x18] sm:$0xff]   ;;  %s937_s24 = scalar_lea.vmem %s7840_s13, %s7155_s26  ;;  %s7847_s13 = sld [smem:[#allocation20_spill]] }
 0xde7   : > { %6214 = vmatprep.subr.msk.bf16.mxu1 %vm1477_vm3, %v2106_v17  ;;  %5920 = vmatpush3.bf16.msra.mxu0 %v6359_v48  ;;  %v7159_v17 = vld [vmem:[%s937_s24] sm:$0xff]  ;;  %s7842_s24 = sld [smem:[#allocation10_spill]] }
 0xde8   : > { %5921 = vmatprep.subr.bf16.mxu0 %v6360_v16 }
 0xdeb   : > { %5922 = vmatpush3.bf16.msra.mxu0 %v6360_v16 }
 0xdec   : > { %5935 = vmatprep.subr.bf16.mxu0 %v6692_v26 }
 0xdee   : > { %5906 = vmatpush3.bf16.xpose.msra.mxu1 %v2117_v49  ;;  %v2619_v49 = vmul.f32 %v7159_v17, %v7159_v17 }
 0xdf5   : > { %5908 = vmatmul.mubr.msk.bf16.vlgmr.msra.gmra.mrb[20].mxu1 %vm1477_vm3, %v2100_v44 }
 0xec8   : > { %v5909_v50 = vpop.f32.mrb[20].mxu1 }
 0xec9   : > { %v2153_v51 = vpop.f32.mrb[21].mxu1  ;;  %v2162_v61 = vadd.f32 %v5909_v50, %v6992_v37  ;;  %v2620_v50 = vsel %vm1315_vm0, %v2619_v49, 0.0 }
 0xeca   : > { %v2154_v53 = vadd.f32 %v2153_v51, %v6995_v38  ;;  %v5910_v55 = vpop.f32.mrb[22].mxu1 }
 0xecb   : > { %v2156_v56 = vpop.f32.mrb[23].mxu1  ;;  %v2165_v58 = vadd.f32 %v5910_v55, %v7004_v47  ;;  %v2174_v2 = vsel %vm1315_vm0, %v2162_v61, -inf }
 0xecc   : > { %v2157_v59 = vadd.f32 %v2156_v56, %v6999_v42  ;;  %v2168_v60 = vsel %vm1315_vm0, %v2154_v53, -inf }
 0xecd   : > { %2169 = vmax.xlane.f32.xlu1 %v2168_v60  ;;  %v2177_v0 = vsel %vm1315_vm0, %v2165_v58, -inf }
 0xece   : > { %v2171_v62 = vsel %vm1315_vm0, %v2157_v59, -inf }
 0xecf   : > { %2172 = vmax.xlane.f32.xlu0 %v2171_v62 }
 0xed1   : > { %2178 = vmax.xlane.f32.xlu1 %v2177_v0 }
 0xed3   : > { %2175 = vmax.xlane.f32.xlu0 %v2174_v2 }
 0xf5a   : > { %v2170_v38 = vpop.xlane.xlu1 %2169 }
 0xf5b   : > { %v2180_v6 = vsub.f32 %v2154_v53, %v2170_v38 }
 0xf5c   : > { %v2173_v4 = vpop.xlane.xlu0 %2172 }
 0xf5d   : > { %v2181_v5 = vsub.f32 %v2157_v59, %v2173_v4  ;;  %v2184_v37 = vmul.f32 1.442695, %v2180_v6 }
 0xf5e   : > { %v2179_v47 = vpop.xlane.xlu1 %2178 }
 0xf5f   : > { %v2183_v42 = vsub.f32 %v2165_v58, %v2179_v47  ;;  %v2186_v7 = vmul.f32 1.442695, %v2181_v5 }
 0xf60   : > { %v2176_v8 = vpop.xlane.xlu0 %2175 }
 0xf61   : > { %v2190_v9 = vmul.f32 1.442695, %v2183_v42  ;;  %v2182_v10 = vsub.f32 %v2162_v61, %v2176_v8 }
 0xf63   : > { %6463 = vpow2.f32 %v2190_v9  ;;  %v2188_v11 = vmul.f32 1.442695, %v2182_v10 }
 0xf64   : > { %6465 = vpow2.f32 %v2186_v7 }
 0xf65   : > { %6467 = vpow2.f32 %v2188_v11 }
 0xf66   : > { %6469 = vpow2.f32 %v2184_v37 }
 0xf6d   : > { %v6464_v12 = vpop.eup %6463 }
 0xf6e   : > { %v6466_v14 = vpop.eup %6465  ;;  %v2201_v18 = vsel %vm1315_vm0, %v6464_v12, 0.0 }
 0xf6f   : > { %v6468_v19 = vpop.eup %6467  ;;  %2202 = vadd.xlane.f32.xlu1 %v2201_v18  ;;  %v2195_v22 = vsel %vm1315_vm0, %v6466_v14, 0.0 }
 0xf70   : > { %v2198_v20 = vsel %vm1315_vm0, %v6468_v19, 0.0  ;;  %v6470_v21 = vpop.eup %6469 }
 0xf71   : > { %2199 = vadd.xlane.f32.xlu0 %v2198_v20  ;;  %v2192_v23 = vsel %vm1315_vm0, %v6470_v21, 0.0 }
 0xf73   : > { %2196 = vadd.xlane.f32.xlu1 %v2195_v22 }
 0xf75   : > { %2193 = vadd.xlane.f32.xlu0 %v2192_v23 }
 0xf84   : > { %2216 = vrot.lane.b32.xlu1 %v2100_v44, %s7837_s9 }
 0xf8b   : > { %2214 = vrot.lane.b32.xlu0 %v2099_v46, %s7837_s9 }
 0xffc   : > { %v2203_v24 = vpop.xlane.xlu1 %2202 }
 0xffe   : > { %v2200_v25 = vpop.xlane.xlu0 %2199 }
 0xfff   : > { %6471 = vrcp.f32 %v2200_v25  ;;  %v5405_v25 = vld [vmem:[%s6784_s27] ss:$0 sm:$0xff] }
0x1000   : > { %v2197_v27 = vpop.xlane.xlu1 %2196 }
0x1001   : > { %6473 = vrcp.f32 %v2197_v27 }
0x1002   : > { %6475 = vrcp.f32 %v2203_v24  ;;  %v2194_v57 = vpop.xlane.xlu0 %2193 }
0x1003   : > { %6477 = vrcp.f32 %v2194_v57 }
0x1004   : > { %v2217_v29 = vpop.permute.xlu1 %2216 }
0x1006   : > { %v2215_v28 = vpop.permute.xlu0 %2214 }
0x1007   : > { %5911 = vmatprep.subr.bf16.mxu1 %v2215_v28 }
0x1008   : > { %5912 = vmatpush3.bf16.msra.mxu1 %v2215_v28 }
0x1009   : > { %5913 = vmatprep.subr.bf16.mxu1 %v2217_v29  ;;  %v6472_v30 = vpop.eup %6471 }
0x100a   : > { %v2210_v34 = vmul.f32 %v6472_v30, %v6468_v19 }
0x100b   : > { %v6474_v31 = vpop.eup %6473 }
0x100c   : > { %v6476_v32 = vpop.eup %6475  ;;  %5914 = vmatpush3.bf16.msra.mxu1 %v2217_v29  ;;  %v2209_v36 = vmul.f32 %v6474_v31, %v6466_v14 }
0x100d   : > { %v6478_v33 = vpop.eup %6477  ;;  %5927 = vmatprep.subr.bf16.mxu1 %v6692_v26  ;;  %v2211_v39 = vmul.f32 %v6476_v32, %v6464_v12 }
0x100e   : > { %v2208_v35 = vmul.f32 %v6478_v33, %v6470_v21 }
0x100f   : > { %v2213_v41 = vpack.c.bf16 %v2211_v39, %v2210_v34  ;;  %v6362_v39 = vld [vmem:[%s7819_s6 + $0x18] sm:$0xff]  }
0x1010   : > { %v2212_v40 = vpack.c.bf16 %v2209_v36, %v2208_v35  ;;  %v6361_v36 = vld [vmem:[%s7819_s6 + $0x10] sm:$0xff]   ;;  %s7844_s6 = sld [smem:[#allocation18_spill]] }
0x1012   : > { %5915 = vmatprep.mubr.msk.bf16.mxu1 %vm1315_vm0, %v2212_v40  ;;  %v6363_v40 = vld [vmem:[%s6789_s4] sm:$0xff]  }
0x1013   : > { %5916 = vmatmul.mubr.msk.bf16.vlgmr.msra.gmra.mrb[24].mxu1 %vm1315_vm0, %v2213_v41 }
0x1014   : > { %5931 = vmatprep.mubr.msk.bf16.mxu1 %vm6693_vm6, %v6692_v26  ;;  %5928 = vmatpush3.bf16.msra.mxu1 %v6361_v36 }
0x1015   : > { %5929 = vmatprep.subr.bf16.mxu1 %v6692_v26 }
0x1018   : > { %5930 = vmatpush3.bf16.msra.mxu1 %v6362_v39 }
0x1019   : > { %5947 = vmatprep.subr.bf16.mxu1 %v6363_v40 }
0x10e6   : > { %v5917_v43 = vpop.f32.mrb[24].mxu1 }
0x10e7   : > { %2283 = vrot.lane.b32.xlu1 %v5917_v43, %s7838_s14  ;;  %v2260_v44 = vpop.f32.mrb[25].mxu1 }
0x10e8   : > { %v5918_v45 = vpop.f32.mrb[26].mxu1 }
0x10e9   : > { %2285 = vrot.lane.b32.xlu0 %v5918_v45, %s7838_s14  ;;  %v2263_v46 = vpop.f32.mrb[27].mxu1 }
0x10eb   : > { %2295 = vrot.lane.b32.xlu1 %v5917_v43, %s7839_s19 }
0x10ed   : > { %2297 = vrot.lane.b32.xlu0 %v5918_v45, %s7839_s19 }
0x10ef   : > { %2279 = vrot.lane.b32.xlu1 %v2260_v44, %s7838_s14 }
0x10f1   : > { %2281 = vrot.lane.b32.xlu0 %v2263_v46, %s7838_s14 }
0x10f3   : > { %2291 = vrot.lane.b32.xlu1 %v2260_v44, %s7839_s19 }
0x10f5   : > { %2293 = vrot.lane.b32.xlu0 %v2263_v46, %s7839_s19 }
0x10f7   : > { %2303 = vrot.lane.b32.xlu1 %v2260_v44, %s7841_s21 }
0x10f9   : > { %2305 = vrot.lane.b32.xlu0 %v2263_v46, %s7841_s21 }
0x10fb   : > { %2307 = vrot.lane.b32.xlu1 %v5917_v43, %s7841_s21 }
0x10fd   : > { %2309 = vrot.lane.b32.xlu0 %v5918_v45, %s7841_s21 }
0x111f   : > { %2621 = vadd.xlane.f32.xlu1 %v2620_v50 }
0x1159   : > { %v2284_v51 = vpop.permute.xlu1 %2283 }
0x115a   : > { %v2317_v6 = vsel %vm1477_vm3, %v5917_v43, %v2284_v51  ;;  %v5383_v51 = vld [vmem:[%s7817_s30 + $0x1] ss:$0 sm:$0xff]  ;;  %s7848_s30 = sld [smem:[#allocation11_spill]] }
0x115b   : > { %v2286_v53 = vpop.permute.xlu0 %2285 }
0x115c   : > { %v2318_v37 = vsel %vm1477_vm3, %v5918_v45, %v2286_v53 }
0x115d   : > { %v2296_v55 = vpop.permute.xlu1 %2295 }
0x115e   : > { %v2321_v7 = vsel %vm1690_vm5, %v2317_v6, %v2296_v55 }
0x115f   : > { %v2298_v56 = vpop.permute.xlu0 %2297 }
0x1160   : > { %v2322_v12 = vsel %vm1690_vm5, %v2318_v37, %v2298_v56 }
0x1161   : > { %v2280_v58 = vpop.permute.xlu1 %2279 }
0x1162   : > { %v2315_v62 = vsel %vm1477_vm3, %v2260_v44, %v2280_v58 }
0x1163   : > { %v2282_v59 = vpop.permute.xlu0 %2281 }
0x1164   : > { %v2316_v38 = vsel %vm1477_vm3, %v2263_v46, %v2282_v59 }
0x1165   : > { %v2292_v60 = vpop.permute.xlu1 %2291 }
0x1166   : > { %v2319_v0 = vsel %vm1690_vm5, %v2315_v62, %v2292_v60  ;;  %v6364_v60 = vld [vmem:[%s6789_s4 + $0x8] sm:$0xff]   ;;  %v6365_v62 = vld [vmem:[%s6789_s4 + $0x10] sm:$0xff]  }
0x1167   : > { %v2294_v61 = vpop.permute.xlu0 %2293 }
0x1168   : > { %v2320_v5 = vsel %vm1690_vm5, %v2316_v38, %v2294_v61  ;;  %v6370_v38 = vld [vmem:[%s6789_s4 + $0x38] sm:$0xff]  }
0x1169   : > { %v2304_v2 = vpop.permute.xlu1 %2303 }
0x116a   : > { %v2323_v4 = vsel %vm1695_vm4, %v2319_v0, %v2304_v2  ;;  %v6368_v0 = vld [vmem:[%s6789_s4 + $0x28] sm:$0xff]   ;;  %v6369_v2 = vld [vmem:[%s6789_s4 + $0x30] sm:$0xff]  }
0x116b   : > { %v2306_v47 = vpop.permute.xlu0 %2305  ;;  %v2327_v8 = vmul.f32 %v2323_v4, %v7039_v52  ;;  %v7215_v4 = vld [vmem:[%s6739_s3 + $0x10] sm:$0xff] }
0x116c   : > { %v2324_v42 = vsel %vm1695_vm4, %v2320_v5, %v2306_v47  ;;  %v7219_v47 = vld [vmem:[%s6739_s3 + $0x18] sm:$0xff] }
0x116d   : > { %v2328_v9 = vmul.f32 %v2324_v42, %v7043_v54  ;;  %v2308_v10 = vpop.permute.xlu1 %2307 }
0x116e   : > { %v2325_v11 = vsel %vm1695_vm4, %v2321_v7, %v2308_v10  ;;  %v6371_v7 = vld [vmem:[%s7818_s12 + $0x20] sm:$0xff]   ;;  %v6374_v10 = vld [vmem:[%s7818_s12 + $0x38] sm:$0xff]  }
0x116f   : > { %v2331_v14 = vpack.c.bf16 %v2328_v9, %v2327_v8  ;;  %v2310_v18 = vpop.permute.xlu0 %2309  ;;  %v2329_v20 = vmul.f32 %v2325_v11, %v7053_v1  ;;  %v6372_v8 = vld [vmem:[%s7818_s12 + $0x28] sm:$0xff]   ;;  %v6373_v9 = vld [vmem:[%s7818_s12 + $0x30] sm:$0xff]   ;;  %s7845_s12 = sld [smem:[#allocation22_spill]] }
0x1170   : > { %v2326_v19 = vsel %vm1695_vm4, %v2322_v12, %v2310_v18 }
0x1171   : > { %v2330_v21 = vmul.f32 %v2326_v19, %v7057_v3  ;;  %5923 = vmatprep.mubr.msk.bf16.mxu0 %vm1315_vm0, %v2331_v14 }
0x1173   : > { %v2332_v52 = vpack.c.bf16 %v2330_v21, %v2329_v20 }
0x1175   : > { %5924 = vmatmul.mubr.msk.bf16.vlgmr.msra.gmra.mrb[16].mxu0 %vm1315_vm0, %v2332_v52 }
0x1176   : > { %5943 = vmatprep.mubr.msk.bf16.mxu0 %vm6693_vm6, %v6692_v26  ;;  %5936 = vmatpush3.bf16.msra.mxu0 %v6371_v7 }
0x1177   : > { %5937 = vmatprep.subr.bf16.mxu0 %v6692_v26 }
0x117a   : > { %5938 = vmatpush3.bf16.msra.mxu0 %v6372_v8 }
0x117b   : > { %5939 = vmatprep.subr.bf16.mxu0 %v6692_v26 }
0x117e   : > { %5940 = vmatpush3.bf16.msra.mxu0 %v6373_v9 }
0x117f   : > { %5941 = vmatprep.subr.bf16.mxu0 %v6692_v26 }
0x1182   : > { %5942 = vmatpush3.bf16.msra.mxu0 %v6374_v10 }
0x11ac   : > { %v2622_v54 = vpop.xlane.xlu1 %2621 }
0x11ad   : > { %v2623_v22 = vmul.f32 0.03125, %v2622_v54 }
0x11af   : > { %v2624_v23 = vadd.f32 1e-06, %v2623_v22 }
0x11b1   : > { %6479 = vrsqrt.f32 %v2624_v23 }
0x11bb   : > { %v6480_v24 = vpop.eup %6479 }
0x11bc   : > { %v2626_v27 = vmul.f32 %v6480_v24, %v7159_v17 }
0x11be   : > { %v2633_v1 = vmul.f32 %v5405_v25, %v2626_v27 }
0x11c0   : > { %2638 = vrot.lane.b32.xlu1 %v2633_v1, %s7833_s22 }
0x11c4   : > { %2641 = vrot.lane.b32.xlu1 %v2633_v1, %s7835_s23 }
0x1232   : > { %v2639_v44 = vpop.permute.xlu1 %2638 }
0x1236   : > { %v2642_v48 = vpop.permute.xlu1 %2641 }
0x1248   : > { %v5925_v3 = vpop.f32.mrb[16].mxu0 }
0x1249   : > { %v2385_v57 = vpop.f32.mrb[17].mxu0 }
0x124a   : > { %v5926_v28 = vpop.f32.mrb[18].mxu0 }
0x124b   : > { %v2388_v29 = vpop.f32.mrb[19].mxu0 }
0x124c   : > { %v2400_v30 = vadd.f32 %v2388_v29, %v2385_v57 }
0x124e   : > { %v2401_v31 = vadd.f32 %v5925_v3, %v2400_v30 }
0x1250   : > { %v2402_v32 = vadd.f32 %v5926_v28, %v2401_v31 }
0x1252   : > { %v7189_v33 = vadd.f32 %v2402_v32, %v7087_v63 }
0x1254   : > { %v2406_v34 = vmul.f32 %v7189_v33, %v7189_v33 }
0x1256   : > { %v2407_v35 = vsel %vm1315_vm0, %v2406_v34, 0.0 }
0x1257   : > { %2408 = vadd.xlane.f32.xlu0 %v2407_v35 }
0x126d   : > { %2635 = vrot.lane.b32.xlu0 %v2633_v1, %s7834_s16 }
0x12e4   : > { %v2409_v41 = vpop.xlane.xlu0 %2408 }
0x12e5   : > { %v2410_v63 = vmul.f32 0.03125, %v2409_v41 }
0x12e7   : > { %v2411_v43 = vadd.f32 1e-06, %v2410_v63 }
0x12e8   : > { %v2636_v45 = vpop.permute.xlu0 %2635 }
0x12e9   : > { %6481 = vrsqrt.f32 %v2411_v43  ;;  %v2644_v46 = vsel %vm1315_vm0, %v2633_v1, %v2636_v45  ;;  %v2609_v43 = vld [vmem:[%s7842_s24] sm:$0xff] }
0x12ea   : > { %v2645_v16 = vsel %vm1342_vm1, %v2644_v46, %v2639_v44  ;;  %v2612_v46 = vld [vmem:[%s7842_s24 + $0x18] sm:$0xff] }
0x12eb   : > { %v2646_v49 = vsel %vm1344_vm2, %v2645_v16, %v2642_v48  ;;  %v2610_v48 = vld [vmem:[%s7842_s24 + $0x8] sm:$0xff] }
0x12ec   : > { %v2647_v55 = vmul.f32 %v2646_v49, %v6957_v13  ;;  %v2648_v56 = vmul.f32 %v2646_v49, %v6961_v15  ;;  %v6366_v13 = vld [vmem:[%s6789_s4 + $0x18] sm:$0xff]   ;;  %v6367_v15 = vld [vmem:[%s6789_s4 + $0x20] sm:$0xff]   ;;  %v2649_v5 = vmul.f32 %v7215_v4, %v2646_v49  ;;  %v2650_v6 = vmul.f32 %v7219_v47, %v2646_v49 }
0x12ee   : > { %v2651_v61 = vpack.c.bf16 %v2648_v56, %v2647_v55  ;;  %v2652_v42 = vpack.c.bf16 %v2650_v6, %v2649_v5 }
0x12f3   : > { %v6482_v50 = vpop.eup %6481 }
0x12f4   : > { %v2413_v53 = vmul.f32 %v6482_v50, %v7189_v33  ;;  %v2611_v50 = vld [vmem:[%s7842_s24 + $0x10] sm:$0xff] }
0x12f6   : > { %v2420_v58 = vmul.f32 %v5383_v51, %v2413_v53 }
0x12f8   : > { %v2435_v59 = vpack.c.bf16 %v2420_v58, %v2420_v58 }
0x12fa   : > { %5932 = vmatmul.mubr.msk.bf16.vlgmr.msra.gmra.mrb[28].mxu1 %vm1315_vm0, %v2435_v59 }
0x12fb   : > { %5948 = vmatpush3.bf16.msra.mxu1 %v6363_v40  ;;  %5963 = vmatprep.mubr.bf16.mxu1 %v2651_v61 }
0x12fc   : > { %5949 = vmatprep.subr.bf16.mxu1 %v6364_v60 }
0x12ff   : > { %5950 = vmatpush3.bf16.msra.mxu1 %v6364_v60 }
0x1300   : > { %5951 = vmatprep.subr.bf16.mxu1 %v6365_v62 }
0x1303   : > { %5952 = vmatpush3.bf16.msra.mxu1 %v6365_v62 }
0x1304   : > { %5953 = vmatprep.subr.bf16.mxu1 %v6366_v13 }
0x1307   : > { %5954 = vmatpush3.bf16.msra.mxu1 %v6366_v13 }
0x1308   : > { %5955 = vmatprep.subr.bf16.mxu1 %v6367_v15 }
0x130b   : > { %5956 = vmatpush3.bf16.msra.mxu1 %v6367_v15 }
0x130c   : > { %5957 = vmatprep.subr.bf16.mxu1 %v6368_v0 }
0x130f   : > { %5958 = vmatpush3.bf16.msra.mxu1 %v6368_v0 }
0x1310   : > { %5959 = vmatprep.subr.bf16.mxu1 %v6369_v2 }
0x1313   : > { %5960 = vmatpush3.bf16.msra.mxu1 %v6369_v2 }
0x1314   : > { %5961 = vmatprep.subr.bf16.mxu1 %v6370_v38 }
0x1317   : > { %5962 = vmatpush3.bf16.msra.mxu1 %v6370_v38 }
0x131a   : > { %5964 = vmatmul.mubr.bf16.vlgmr.msra.gmra.mrb[32].mxu1 %v2652_v42 }
0x13cd   : > { %v2485_v37 = vpop.f32.mrb[28].mxu1 }
0x13ce   : > { %2501 = vrot.lane.b32.xlu0 %v2485_v37, %s7833_s22  ;;  %v5933_v11 = vpop.f32.mrb[29].mxu1  ;;  %v2492_v22 = vmul.f32 0.044715, %v2485_v37  ;;  %v2491_v57 = vmul.f32 0.5, %v2485_v37 }
0x13cf   : > { %v2488_v12 = vpop.f32.mrb[30].mxu1 }
0x13d0   : > { %v5934_v14 = vpop.f32.mrb[31].mxu1  ;;  %v2493_v23 = vmul.f32 %v2492_v22, %v2485_v37 }
0x13d2   : > { %v2494_v24 = vmul.f32 %v2493_v23, %v2485_v37 }
0x13d4   : > { %v2495_v25 = vadd.f32 %v2494_v24, %v2485_v37 }
0x13d6   : > { %v2496_v27 = vmul.f32 0.7978846, %v2495_v25 }
0x13d8   : > { %6483 = vtanh.f32 %v2496_v27 }
0x13e2   : > { %v6484_v1 = vpop.eup %6483 }
0x13e3   : > { %v2498_v3 = vadd.f32 1.0, %v6484_v1 }
0x13e5   : > { %v2499_v28 = vmul.f32 %v2498_v3, %v2491_v57 }
0x13ed   : > { %v5965_v18 = vpop.f32.mrb[32].mxu1 }
0x13ee   : > { %v2751_v19 = vpop.f32.mrb[33].mxu1 }
0x13ef   : > { %v5966_v20 = vpop.f32.mrb[34].mxu1 }
0x13f0   : > { %v7230_v21 = vpack.c.bf16 %v5966_v20, %v5965_v18  ;;  %v2754_v52 = vpop.f32.mrb[35].mxu1 }
0x13f1   : > { %v7232_v54 = vpack.c.bf16 %v2754_v52, %v2751_v19 }
0x13f2   : > { %2776 = vrot.lane.b32.xlu0 %v7230_v21, %s7836_s5 }
0x13f3   : > { %2774 = vrot.lane.b32.xlu1 %v7232_v54, %s7836_s5 }
0x1440   : > { %v2502_v29 = vpop.permute.xlu0 %2501 }
0x1441   : > { %v2504_v30 = vmul.f32 %v2502_v29, %v2499_v28 }
0x1443   : > { %v2505_v31 = vpack.c.bf16 %v2504_v30, %v2504_v30 }
0x1445   : > { %5944 = vmatmul.mubr.msk.bf16.vlgmr.msra.gmra.mrb[20].mxu0 %vm1342_vm1, %v2505_v31 }
0x1446   : > { %5971 = vmatprep.mubr.msk.bf16.mxu0 %vm1477_vm3, %v7232_v54 }
0x1464   : > { %v2777_v35 = vpop.permute.xlu0 %2776 }
0x1465   : > { %v2775_v32 = vpop.permute.xlu1 %2774  ;;  %v2788_v36 = vsel %vm1477_vm3, %v2777_v35, 0 }
0x1466   : > { %6215 = vmatprep.subr.msk.bf16.mxu0 %vm1477_vm3, %v2775_v32  ;;  %v2785_v34 = vsel %vm1477_vm3, %v2775_v32, 0 }
0x1467   : > { %5968 = vmatpush3.bf16.xpose.msra.mxu0 %v2785_v34 }
0x1468   : > { %6216 = vmatprep.subr.msk.bf16.mxu0 %vm1477_vm3, %v2777_v35 }
0x146f   : > { %5970 = vmatpush3.bf16.xpose.msra.mxu0 %v2788_v36 }
0x1476   : > { %5972 = vmatmul.mubr.msk.bf16.vlgmr.msra.gmra.mrb[24].mxu0 %vm1477_vm3, %v7230_v21 }
0x1518   : > { %v7247_v39 = vpop.f32.mrb[20].mxu0 }
0x1519   : > { %v5945_v40 = vpop.f32.mrb[21].mxu0 }
0x151a   : > { %v2570_v41 = vpop.f32.mrb[22].mxu0 }
0x151b   : > { %v5946_v63 = vpop.f32.mrb[23].mxu0  ;;  %v6375_v41 = vld [vmem:[%s7843_s2] sm:$0xff]  }
0x151c   : > { %5983 = vmatprep.subr.bf16.mxu1 %v6375_v41  ;;  %v6376_v63 = vld [vmem:[%s7843_s2 + $0x8] sm:$0xff]  }
0x151d   : > { %5984 = vmatpush3.bf16.msra.mxu1 %v6375_v41 }
0x151e   : > { %5985 = vmatprep.subr.bf16.mxu1 %v6376_v63 }
0x1521   : > { %5986 = vmatpush3.bf16.msra.mxu1 %v6376_v63  ;;  %v6382_v63 = vld [vmem:[%s7845_s12 + $0x28] sm:$0xff]  }
0x1549   : > { %v5973_v44 = vpop.f32.mrb[24].mxu0 }
0x154a   : > { %v2824_v45 = vpop.f32.mrb[25].mxu0  ;;  %v2833_v58 = vadd.f32 %v5973_v44, %v2611_v50 }
0x154b   : > { %v2825_v16 = vadd.f32 %v2824_v45, %v2609_v43  ;;  %v5974_v49 = vpop.f32.mrb[26].mxu0  ;;  %v2573_v43 = vadd.f32 %v7247_v39, %v7189_v33 }
0x154c   : > { %v2827_v51 = vpop.f32.mrb[27].mxu0  ;;  %v2836_v53 = vadd.f32 %v5974_v49, %v2612_v46  ;;  %v2845_v61 = vsel %vm1315_vm0, %v2833_v58, -inf }
0x154d   : > { %v2828_v55 = vadd.f32 %v2827_v51, %v2610_v48  ;;  %v2839_v56 = vsel %vm1315_vm0, %v2825_v16, -inf  ;;  %v2575_v44 = vmul.f32 %v2573_v43, %v2573_v43 }
0x154e   : > { %2840 = vmax.xlane.f32.xlu1 %v2839_v56  ;;  %v2848_v60 = vsel %vm1315_vm0, %v2836_v53, -inf }
0x154f   : > { %v2842_v59 = vsel %vm1315_vm0, %v2828_v55, -inf  ;;  %v2576_v45 = vsel %vm1315_vm0, %v2575_v44, 0.0  ;;  %v6384_v44 = vld [vmem:[%s7845_s12 + $0x38] sm:$0xff]  }
0x1550   : > { %2843 = vmax.xlane.f32.xlu0 %v2842_v59 }
0x1552   : > { %2849 = vmax.xlane.f32.xlu1 %v2848_v60 }
0x1554   : > { %2846 = vmax.xlane.f32.xlu0 %v2845_v61 }
0x15db   : > { %v2841_v62 = vpop.xlane.xlu1 %2840 }
0x15dc   : > { %v2851_v2 = vsub.f32 %v2825_v16, %v2841_v62 }
0x15dd   : > { %v2844_v13 = vpop.xlane.xlu0 %2843 }
0x15de   : > { %v2852_v15 = vsub.f32 %v2828_v55, %v2844_v13  ;;  %v2855_v8 = vmul.f32 1.442695, %v2851_v2 }
0x15df   : > { %v2850_v0 = vpop.xlane.xlu1 %2849 }
0x15e0   : > { %v2854_v38 = vsub.f32 %v2836_v53, %v2850_v0  ;;  %v2857_v5 = vmul.f32 1.442695, %v2852_v15  ;;  %v7293_v0 = vld [vmem:[%s6744_s8] sm:$0xff] }
0x15e1   : > { %v2847_v6 = vpop.xlane.xlu0 %2846 }
0x15e2   : > { %v2861_v42 = vmul.f32 1.442695, %v2854_v38  ;;  %v2853_v7 = vsub.f32 %v2833_v58, %v2847_v6  ;;  %v7297_v38 = vld [vmem:[%s6744_s8 + $0x8] sm:$0xff] }
0x15e4   : > { %6485 = vpow2.f32 %v2861_v42  ;;  %v2859_v9 = vmul.f32 1.442695, %v2853_v7 }
0x15e5   : > { %6487 = vpow2.f32 %v2857_v5 }
0x15e6   : > { %6489 = vpow2.f32 %v2859_v9 }
0x15e7   : > { %6491 = vpow2.f32 %v2855_v8 }
0x15ee   : > { %v6486_v10 = vpop.eup %6485 }
0x15ef   : > { %v6488_v37 = vpop.eup %6487  ;;  %v2872_v11 = vsel %vm1315_vm0, %v6486_v10, 0.0 }
0x15f0   : > { %v6490_v12 = vpop.eup %6489  ;;  %2873 = vadd.xlane.f32.xlu1 %v2872_v11  ;;  %v2866_v19 = vsel %vm1315_vm0, %v6488_v37, 0.0  ;;  %v7305_v11 = vld [vmem:[%s6744_s8 + $0x10] sm:$0xff] }
0x15f1   : > { %v2869_v14 = vsel %vm1315_vm0, %v6490_v12, 0.0  ;;  %v6492_v18 = vpop.eup %6491 }
0x15f2   : > { %2870 = vadd.xlane.f32.xlu0 %v2869_v14  ;;  %v2863_v20 = vsel %vm1315_vm0, %v6492_v18, 0.0  ;;  %v7309_v14 = vld [vmem:[%s6744_s8 + $0x18] sm:$0xff] }
0x15f4   : > { %2867 = vadd.xlane.f32.xlu1 %v2866_v19 }
0x15f6   : > { %2864 = vadd.xlane.f32.xlu0 %v2863_v20 }
0x1605   : > { %2887 = vrot.lane.b32.xlu1 %v7230_v21, %s7837_s9 }
0x160c   : > { %2885 = vrot.lane.b32.xlu0 %v7232_v54, %s7837_s9 }
0x167d   : > { %v2874_v52 = vpop.xlane.xlu1 %2873 }
0x167f   : > { %v2871_v22 = vpop.xlane.xlu0 %2870 }
0x1680   : > { %6493 = vrcp.f32 %v2871_v22 }
0x1681   : > { %v2868_v23 = vpop.xlane.xlu1 %2867 }
0x1682   : > { %6495 = vrcp.f32 %v2868_v23 }
0x1683   : > { %6497 = vrcp.f32 %v2874_v52  ;;  %v2865_v24 = vpop.xlane.xlu0 %2864 }
0x1684   : > { %6499 = vrcp.f32 %v2865_v24  ;;  %v5404_v24 = vld [vmem:[%s7844_s6] ss:$0 sm:$0xff]  ;;  %s7846_s6 = sld [smem:[#allocation21_spill]] }
0x1685   : > { %v2888_v27 = vpop.permute.xlu1 %2887 }
0x1687   : > { %v2886_v25 = vpop.permute.xlu0 %2885 }
0x1688   : > { %5975 = vmatprep.subr.bf16.mxu0 %v2886_v25 }
0x1689   : > { %5976 = vmatpush3.bf16.msra.mxu0 %v2886_v25 }
0x168a   : > { %5977 = vmatprep.subr.bf16.mxu0 %v2888_v27  ;;  %v6494_v1 = vpop.eup %6493 }
0x168b   : > { %v2881_v54 = vmul.f32 %v6494_v1, %v6490_v12  ;;  %v6377_v1 = vld [vmem:[%s7845_s12] sm:$0xff]  }
0x168c   : > { %v6496_v3 = vpop.eup %6495  ;;  %6011 = vmatprep.subr.bf16.mxu1 %v6377_v1 }
0x168d   : > { %v6498_v57 = vpop.eup %6497  ;;  %5978 = vmatpush3.bf16.msra.mxu0 %v2888_v27  ;;  %v2880_v29 = vmul.f32 %v6496_v3, %v6488_v37  ;;  %v6378_v3 = vld [vmem:[%s7845_s12 + $0x8] sm:$0xff]  }
0x168e   : > { %v6500_v21 = vpop.eup %6499  ;;  %v2882_v30 = vmul.f32 %v6498_v57, %v6486_v10  ;;  %v6379_v57 = vld [vmem:[%s7845_s12 + $0x10] sm:$0xff]  }
0x168f   : > { %v2879_v28 = vmul.f32 %v6500_v21, %v6492_v18  ;;  %v6380_v21 = vld [vmem:[%s7845_s12 + $0x18] sm:$0xff]  }
0x1690   : > { %v2884_v32 = vpack.c.bf16 %v2882_v30, %v2881_v54  ;;  %v6381_v54 = vld [vmem:[%s7845_s12 + $0x20] sm:$0xff]  }
0x1691   : > { %v2883_v31 = vpack.c.bf16 %v2880_v29, %v2879_v28 }
0x1693   : > { %5979 = vmatprep.mubr.msk.bf16.mxu0 %vm1315_vm0, %v2883_v31 }
0x1694   : > { %5980 = vmatmul.mubr.msk.bf16.vlgmr.msra.gmra.mrb[28].mxu0 %vm1315_vm0, %v2884_v32 }
0x1767   : > { %v5981_v34 = vpop.f32.mrb[28].mxu0 }
0x1768   : > { %2954 = vrot.lane.b32.xlu1 %v5981_v34, %s7838_s14  ;;  %v2931_v35 = vpop.f32.mrb[29].mxu0 }
0x1769   : > { %v5982_v36 = vpop.f32.mrb[30].mxu0 }
0x176a   : > { %2956 = vrot.lane.b32.xlu0 %v5982_v36, %s7838_s14  ;;  %v2934_v40 = vpop.f32.mrb[31].mxu0 }
0x176c   : > { %2966 = vrot.lane.b32.xlu1 %v5981_v34, %s7839_s19 }
0x176e   : > { %2968 = vrot.lane.b32.xlu0 %v5982_v36, %s7839_s19 }
0x1770   : > { %2950 = vrot.lane.b32.xlu1 %v2931_v35, %s7838_s14 }
0x1772   : > { %2952 = vrot.lane.b32.xlu0 %v2934_v40, %s7838_s14 }
0x1774   : > { %2962 = vrot.lane.b32.xlu1 %v2931_v35, %s7839_s19 }
0x1776   : > { %2964 = vrot.lane.b32.xlu0 %v2934_v40, %s7839_s19 }
0x1778   : > { %2974 = vrot.lane.b32.xlu1 %v2931_v35, %s7841_s21 }
0x177a   : > { %2976 = vrot.lane.b32.xlu0 %v2934_v40, %s7841_s21 }
0x177c   : > { %2978 = vrot.lane.b32.xlu1 %v5981_v34, %s7841_s21 }
0x177e   : > { %2980 = vrot.lane.b32.xlu0 %v5982_v36, %s7841_s21 }
0x17a0   : > { %2577 = vadd.xlane.f32.xlu1 %v2576_v45  ;;  %v6386_v45 = vld [vmem:[%s7846_s6 + $0x8] sm:$0xff]  }
0x17da   : > { %v2955_v46 = vpop.permute.xlu1 %2954 }
0x17db   : > { %v2988_v62 = vsel %vm1477_vm3, %v5981_v34, %v2955_v46  ;;  %v6387_v46 = vld [vmem:[%s7846_s6 + $0x10] sm:$0xff]  }
0x17dc   : > { %v2957_v48 = vpop.permute.xlu0 %2956 }
0x17dd   : > { %v2989_v42 = vsel %vm1477_vm3, %v5982_v36, %v2957_v48  ;;  %v6388_v48 = vld [vmem:[%s7846_s6 + $0x18] sm:$0xff]  }
0x17de   : > { %v2967_v16 = vpop.permute.xlu1 %2966 }
0x17df   : > { %v2992_v15 = vsel %vm1690_vm5, %v2988_v62, %v2967_v16  ;;  %v6389_v16 = vld [vmem:[%s7846_s6 + $0x20] sm:$0xff]  }
0x17e0   : > { %v2969_v49 = vpop.permute.xlu0 %2968 }
0x17e1   : > { %v2993_v8 = vsel %vm1690_vm5, %v2989_v42, %v2969_v49  ;;  %v6390_v49 = vld [vmem:[%s7846_s6 + $0x28] sm:$0xff]  }
0x17e2   : > { %v2951_v50 = vpop.permute.xlu1 %2950 }
0x17e3   : > { %v2986_v56 = vsel %vm1477_vm3, %v2931_v35, %v2951_v50 }
0x17e4   : > { %v2953_v51 = vpop.permute.xlu0 %2952 }
0x17e5   : > { %v2987_v33 = vsel %vm1477_vm3, %v2934_v40, %v2953_v51 }
0x17e6   : > { %v2963_v53 = vpop.permute.xlu1 %2962 }
0x17e7   : > { %v2990_v58 = vsel %vm1690_vm5, %v2986_v56, %v2963_v53 }
0x17e8   : > { %v2965_v55 = vpop.permute.xlu0 %2964 }
0x17e9   : > { %v2991_v60 = vsel %vm1690_vm5, %v2987_v33, %v2965_v55 }
0x17ea   : > { %v2975_v59 = vpop.permute.xlu1 %2974 }
0x17eb   : > { %v2994_v39 = vsel %vm1695_vm4, %v2990_v58, %v2975_v59 }
0x17ec   : > { %v2977_v61 = vpop.permute.xlu0 %2976  ;;  %v2998_v2 = vmul.f32 %v7293_v0, %v2994_v39 }
0x17ed   : > { %v2995_v13 = vsel %vm1695_vm4, %v2991_v60, %v2977_v61  ;;  %v6391_v60 = vld [vmem:[%s7846_s6 + $0x30] sm:$0xff]   ;;  %v7349_v61 = vld [vmem:[%s6739_s3] sm:$0xff] }
0x17ee   : > { %v2999_v5 = vmul.f32 %v7297_v38, %v2995_v13  ;;  %v2979_v6 = vpop.permute.xlu1 %2978  ;;  %v7353_v13 = vld [vmem:[%s6739_s3 + $0x8] sm:$0xff] }
0x17ef   : > { %v2996_v7 = vsel %vm1695_vm4, %v2992_v15, %v2979_v6 }
0x17f0   : > { %v3002_v9 = vpack.c.bf16 %v2999_v5, %v2998_v2  ;;  %v2981_v10 = vpop.permute.xlu0 %2980  ;;  %v3000_v12 = vmul.f32 %v7305_v11, %v2996_v7  ;;  %v6392_v7 = vld [vmem:[%s7846_s6 + $0x38] sm:$0xff]  }
0x17f1   : > { %v2997_v37 = vsel %vm1695_vm4, %v2993_v8, %v2981_v10 }
0x17f2   : > { %v3001_v18 = vmul.f32 %v7309_v14, %v2997_v37  ;;  %5987 = vmatprep.mubr.msk.bf16.mxu1 %vm1315_vm0, %v3002_v9  ;;  %v5422_v9 = vld [vmem:[%s7847_s13] ss:$0 sm:$0xff] }
0x17f4   : > { %v3003_v19 = vpack.c.bf16 %v3001_v18, %v3000_v12 }
0x17f6   : > { %5988 = vmatmul.mubr.msk.bf16.vlgmr.msra.gmra.mrb[36].mxu1 %vm1315_vm0, %v3003_v19 }
0x17f7   : > { %6012 = vmatpush3.bf16.msra.mxu1 %v6377_v1 }
0x17f8   : > { %6013 = vmatprep.subr.bf16.mxu1 %v6378_v3 }
0x17fb   : > { %6014 = vmatpush3.bf16.msra.mxu1 %v6378_v3 }
0x17fc   : > { %6015 = vmatprep.subr.bf16.mxu1 %v6379_v57 }
0x17ff   : > { %6016 = vmatpush3.bf16.msra.mxu1 %v6379_v57 }
0x1800   : > { %6017 = vmatprep.subr.bf16.mxu1 %v6380_v21 }
0x1803   : > { %6018 = vmatpush3.bf16.msra.mxu1 %v6380_v21 }
0x1804   : > { %6019 = vmatprep.subr.bf16.mxu1 %v6381_v54 }
0x1807   : > { %6020 = vmatpush3.bf16.msra.mxu1 %v6381_v54 }
0x1808   : > { %6021 = vmatprep.subr.bf16.mxu1 %v6382_v63 }
0x180b   : > { %6022 = vmatpush3.bf16.msra.mxu1 %v6382_v63  ;;  %v7395_v63 = vld [vmem:[%s7848_s30] sm:$0xff] }
0x182d   : > { %v2578_v20 = vpop.xlane.xlu1 %2577 }
0x182e   : > { %v2579_v52 = vmul.f32 0.03125, %v2578_v20 }
0x1830   : > { %v2580_v22 = vadd.f32 1e-06, %v2579_v52 }
0x1832   : > { %6501 = vrsqrt.f32 %v2580_v22 }
0x183c   : > { %v6502_v23 = vpop.eup %6501 }
0x183d   : > { %v2582_v25 = vmul.f32 %v6502_v23, %v2573_v43  ;;  %v6383_v43 = vld [vmem:[%s7845_s12 + $0x30] sm:$0xff]  }
0x183e   : > { %6023 = vmatprep.subr.bf16.mxu1 %v6383_v43 }
0x183f   : > { %v7315_v27 = vmul.f32 %v5404_v24, %v2582_v25  ;;  %6024 = vmatpush3.bf16.msra.mxu1 %v6383_v43 }
0x1840   : > { %6025 = vmatprep.subr.bf16.mxu1 %v6384_v44 }
0x1841   : > { %2594 = vrot.lane.b32.xlu1 %v7315_v27, %s7833_s22 }
0x1843   : > { %6026 = vmatpush3.bf16.msra.mxu1 %v6384_v44 }
0x1845   : > { %2597 = vrot.lane.b32.xlu1 %v7315_v27, %s7835_s23 }
0x18b3   : > { %v2595_v50 = vpop.permute.xlu1 %2594 }
0x18b7   : > { %v2598_v59 = vpop.permute.xlu1 %2597 }
0x18c9   : > { %v5989_v28 = vpop.f32.mrb[36].mxu1 }
0x18ca   : > { %v3056_v29 = vpop.f32.mrb[37].mxu1 }
0x18cb   : > { %v5990_v30 = vpop.f32.mrb[38].mxu1 }
0x18cc   : > { %v3059_v31 = vpop.f32.mrb[39].mxu1 }
0x18cd   : > { %v3071_v32 = vadd.f32 %v3059_v31, %v3056_v29 }
0x18cf   : > { %v3072_v34 = vadd.f32 %v5989_v28, %v3071_v32 }
0x18d1   : > { %v3073_v35 = vadd.f32 %v5990_v30, %v3072_v34 }
0x18d3   : > { %v7327_v36 = vadd.f32 %v3073_v35, %v7159_v17  ;;  %v6385_v17 = vld [vmem:[%s7846_s6] sm:$0xff]  }
0x18d4   : > { %5991 = vmatprep.subr.bf16.mxu0 %v6385_v17 }
0x18d5   : > { %v3076_v40 = vmul.f32 %v7327_v36, %v7327_v36  ;;  %5992 = vmatpush3.bf16.msra.mxu0 %v6385_v17  ;;  %v7398_v17 = vld [vmem:[%s7848_s30 + $0x18] sm:$0xff] }
0x18d6   : > { %5993 = vmatprep.subr.bf16.mxu0 %v6386_v45 }
0x18d7   : > { %v3077_v41 = vsel %vm1315_vm0, %v3076_v40, 0.0 }
0x18d8   : > { %3078 = vadd.xlane.f32.xlu0 %v3077_v41 }
0x18d9   : > { %5994 = vmatpush3.bf16.msra.mxu0 %v6386_v45  ;;  %v7401_v45 = vld [vmem:[%s7848_s30 + $0x8] sm:$0xff] }
0x18da   : > { %5995 = vmatprep.subr.bf16.mxu0 %v6387_v46 }
0x18dd   : > { %5996 = vmatpush3.bf16.msra.mxu0 %v6387_v46 }
0x18de   : > { %5997 = vmatprep.subr.bf16.mxu0 %v6388_v48 }
0x18e1   : > { %5998 = vmatpush3.bf16.msra.mxu0 %v6388_v48 }
0x18e2   : > { %5999 = vmatprep.subr.bf16.mxu0 %v6389_v16 }
0x18e5   : > { %6000 = vmatpush3.bf16.msra.mxu0 %v6389_v16  ;;  %v7405_v16 = vld [vmem:[%s7848_s30 + $0x10] sm:$0xff]  ;;  %s7849_s30 = sld [smem:[#allocation23_spill]] }
0x18e6   : > { %6001 = vmatprep.subr.bf16.mxu0 %v6390_v49 }
0x18e9   : > { %6002 = vmatpush3.bf16.msra.mxu0 %v6390_v49 }
0x18ea   : > { %6003 = vmatprep.subr.bf16.mxu0 %v6391_v60 }
0x18ed   : > { %6004 = vmatpush3.bf16.msra.mxu0 %v6391_v60 }
0x18ee   : > { %2591 = vrot.lane.b32.xlu0 %v7315_v27, %s7834_s16  ;;  %6005 = vmatprep.subr.bf16.mxu0 %v6392_v7 }
0x18f1   : > { %6006 = vmatpush3.bf16.msra.mxu0 %v6392_v7 }
0x1965   : > { %v3079_v51 = vpop.xlane.xlu0 %3078 }
0x1966   : > { %v3080_v53 = vmul.f32 0.03125, %v3079_v51 }
0x1968   : > { %v3081_v55 = vadd.f32 1e-06, %v3080_v53 }
0x1969   : > { %v2592_v56 = vpop.permute.xlu0 %2591 }
0x196a   : > { %6503 = vrsqrt.f32 %v3081_v55  ;;  %v2600_v58 = vsel %vm1315_vm0, %v7315_v27, %v2592_v56 }
0x196b   : > { %v2601_v33 = vsel %vm1342_vm1, %v2600_v58, %v2595_v50 }
0x196c   : > { %v2602_v39 = vsel %vm1344_vm2, %v2601_v33, %v2598_v59 }
0x196d   : > { %v2603_v62 = vmul.f32 %v7349_v61, %v2602_v39  ;;  %v2604_v15 = vmul.f32 %v7353_v13, %v2602_v39  ;;  %v2605_v2 = vmul.f32 %v7215_v4, %v2602_v39  ;;  %v2606_v5 = vmul.f32 %v7219_v47, %v2602_v39 }
0x196f   : > { %v7358_v6 = vpack.c.bf16 %v2604_v15, %v2603_v62  ;;  %v7360_v42 = vpack.c.bf16 %v2606_v5, %v2605_v2 }
0x1971   : > { %6027 = vmatprep.mubr.bf16.mxu1 %v7358_v6 }
0x1972   : > { %6028 = vmatmul.mubr.bf16.vlgmr.msra.gmra.mrb[40].mxu1 %v7360_v42 }
0x1974   : > { %v6504_v8 = vpop.eup %6503 }
0x1975   : > { %v3083_v10 = vmul.f32 %v6504_v8, %v7327_v36 }
0x1977   : > { %v3090_v37 = vmul.f32 %v5422_v9, %v3083_v10 }
0x1979   : > { %3095 = vrot.lane.b32.xlu1 %v3090_v37, %s7833_s22  ;;  %3092 = vrot.lane.b32.xlu0 %v3090_v37, %s7834_s16 }
0x197d   : > { %3098 = vrot.lane.b32.xlu0 %v3090_v37, %s7835_s23 }
0x19eb   : > { %v3093_v12 = vpop.permute.xlu0 %3092  ;;  %v3096_v18 = vpop.permute.xlu1 %3095 }
0x19ec   : > { %v3101_v19 = vsel %vm1315_vm0, %v3090_v37, %v3093_v12 }
0x19ed   : > { %v3102_v20 = vsel %vm1342_vm1, %v3101_v19, %v3096_v18 }
0x19ef   : > { %v3099_v52 = vpop.permute.xlu0 %3098 }
0x19f0   : > { %v3103_v22 = vsel %vm1344_vm2, %v3102_v20, %v3099_v52 }
0x19f1   : > { %v3104_v23 = vmul.f32 %v7349_v61, %v3103_v22  ;;  %v3105_v24 = vmul.f32 %v7353_v13, %v3103_v22  ;;  %v3106_v25 = vmul.f32 %v7215_v4, %v3103_v22  ;;  %v3107_v27 = vmul.f32 %v7219_v47, %v3103_v22 }
0x19f3   : > { %v3108_v1 = vpack.c.bf16 %v3105_v24, %v3104_v23  ;;  %v3109_v3 = vpack.c.bf16 %v3107_v27, %v3106_v25 }
0x19f5   : > { %6007 = vmatprep.mubr.bf16.mxu0 %v3108_v1 }
0x19f6   : > { %6008 = vmatmul.mubr.bf16.vlgmr.msra.gmra.mrb[32].mxu0 %v3109_v3 }
0x1a45   : > { %v6029_v57 = vpop.f32.mrb[40].mxu1 }
0x1a46   : > { %v3321_v21 = vpop.f32.mrb[41].mxu1 }
0x1a47   : > { %v6030_v54 = vpop.f32.mrb[42].mxu1 }
0x1a48   : > { %v7377_v28 = vpack.c.bf16 %v6030_v54, %v6029_v57  ;;  %v3324_v29 = vpop.f32.mrb[43].mxu1 }
0x1a49   : > { %v7379_v30 = vpack.c.bf16 %v3324_v29, %v3321_v21 }
0x1a4a   : > { %v3354_v47 = vsel %vm1477_vm3, %v7377_v28, 0 }
0x1a4b   : > { %6217 = vmatprep.subr.msk.bf16.mxu0 %vm1477_vm3, %v7379_v30  ;;  %v3351_v4 = vsel %vm1477_vm3, %v7379_v30, 0 }
0x1a4c   : > { %6032 = vmatpush3.bf16.xpose.msra.mxu0 %v3351_v4 }
0x1a4d   : > { %6218 = vmatprep.subr.msk.bf16.mxu0 %vm1477_vm3, %v7377_v28 }
0x1a54   : > { %6034 = vmatpush3.bf16.xpose.msra.mxu0 %v3354_v47 }
0x1a55   : > { %6055 = vmatprep.subr.bf16.mxu0 %v6692_v26 }
0x1ac9   : > { %v6009_v31 = vpop.f32.mrb[32].mxu0 }
0x1aca   : > { %v3208_v32 = vpop.f32.mrb[33].mxu0 }
0x1acb   : > { %v6010_v34 = vpop.f32.mrb[34].mxu0 }
0x1acc   : > { %v3341_v35 = vpack.c.bf16 %v6010_v34, %v6009_v31  ;;  %v3211_v40 = vpop.f32.mrb[35].mxu0 }
0x1acd   : > { %v3340_v41 = vpack.c.bf16 %v3211_v40, %v3208_v32 }
0x1acf   : > { %6035 = vmatprep.mubr.msk.bf16.mxu0 %vm1477_vm3, %v3340_v41 }
0x1ad0   : > { %6036 = vmatmul.mubr.msk.bf16.vlgmr.msra.gmra.mrb[36].mxu0 %vm1477_vm3, %v3341_v35 }
0x1ad1   : > { %6059 = vmatprep.mubr.msk.bf16.mxu0 %vm6693_vm6, %v6692_v26 }
0x1ba3   : > { %v6037_v43 = vpop.f32.mrb[36].mxu0 }
0x1ba4   : > { %v3390_v44 = vpop.f32.mrb[37].mxu0  ;;  %v3399_v55 = vadd.f32 %v6037_v43, %v7405_v16 }
0x1ba5   : > { %v3391_v46 = vadd.f32 %v3390_v44, %v7395_v63  ;;  %v6038_v48 = vpop.f32.mrb[38].mxu0 }
0x1ba6   : > { %v3393_v49 = vpop.f32.mrb[39].mxu0  ;;  %v3402_v50 = vadd.f32 %v6038_v48, %v7398_v17  ;;  %v3411_v59 = vsel %vm1315_vm0, %v3399_v55, -inf  ;;  %v6394_v48 = vld [vmem:[%s7849_s30 + $0x8] sm:$0xff]  }
0x1ba7   : > { %v3394_v51 = vadd.f32 %v3393_v49, %v7401_v45  ;;  %v3405_v53 = vsel %vm1315_vm0, %v3391_v46, -inf }
0x1ba8   : > { %3406 = vmax.xlane.f32.xlu1 %v3405_v53  ;;  %v3414_v58 = vsel %vm1315_vm0, %v3402_v50, -inf }
0x1ba9   : > { %v3408_v56 = vsel %vm1315_vm0, %v3394_v51, -inf }
0x1baa   : > { %3409 = vmax.xlane.f32.xlu0 %v3408_v56 }
0x1bac   : > { %3415 = vmax.xlane.f32.xlu1 %v3414_v58 }
0x1bae   : > { %3412 = vmax.xlane.f32.xlu0 %v3411_v59 }
0x1c35   : > { %v3407_v33 = vpop.xlane.xlu1 %3406 }
0x1c36   : > { %v3417_v15 = vsub.f32 %v3391_v46, %v3407_v33  ;;  %v6393_v46 = vld [vmem:[%s7849_s30] sm:$0xff]  }
0x1c37   : > { %v3410_v39 = vpop.xlane.xlu0 %3409 }
0x1c38   : > { %v3418_v60 = vsub.f32 %v3394_v51, %v3410_v39  ;;  %v3421_v10 = vmul.f32 1.442695, %v3417_v15 }
0x1c39   : > { %v3416_v62 = vpop.xlane.xlu1 %3415 }
0x1c3a   : > { %v3420_v2 = vsub.f32 %v3402_v50, %v3416_v62  ;;  %v3423_v5 = vmul.f32 1.442695, %v3418_v60 }
0x1c3b   : > { %v3413_v7 = vpop.xlane.xlu0 %3412 }
0x1c3c   : > { %v3427_v8 = vmul.f32 1.442695, %v3420_v2  ;;  %v3419_v9 = vsub.f32 %v3399_v55, %v3413_v7 }
0x1c3e   : > { %6505 = vpow2.f32 %v3427_v8  ;;  %v3425_v37 = vmul.f32 1.442695, %v3419_v9 }
0x1c3f   : > { %6507 = vpow2.f32 %v3423_v5 }
0x1c40   : > { %6509 = vpow2.f32 %v3425_v37 }
0x1c41   : > { %6511 = vpow2.f32 %v3421_v10 }
0x1c48   : > { %v6506_v12 = vpop.eup %6505 }
0x1c49   : > { %v6508_v18 = vpop.eup %6507  ;;  %v3438_v19 = vsel %vm1315_vm0, %v6506_v12, 0.0 }
0x1c4a   : > { %v6510_v20 = vpop.eup %6509  ;;  %3439 = vadd.xlane.f32.xlu1 %v3438_v19  ;;  %v3432_v23 = vsel %vm1315_vm0, %v6508_v18, 0.0 }
0x1c4b   : > { %v3435_v52 = vsel %vm1315_vm0, %v6510_v20, 0.0  ;;  %v6512_v22 = vpop.eup %6511 }
0x1c4c   : > { %3436 = vadd.xlane.f32.xlu0 %v3435_v52  ;;  %v3429_v24 = vsel %vm1315_vm0, %v6512_v22, 0.0 }
0x1c4e   : > { %3433 = vadd.xlane.f32.xlu1 %v3432_v23 }
0x1c50   : > { %3430 = vadd.xlane.f32.xlu0 %v3429_v24 }
0x1c5f   : > { %3455 = vrot.lane.b32.xlu1 %v7377_v28, %s7836_s5 }
0x1c66   : > { %3453 = vrot.lane.b32.xlu0 %v7379_v30, %s7836_s5 }
0x1cd7   : > { %v3440_v25 = vpop.xlane.xlu1 %3439 }
0x1cd9   : > { %v3437_v27 = vpop.xlane.xlu0 %3436 }
0x1cda   : > { %6513 = vrcp.f32 %v3437_v27 }
0x1cdb   : > { %v3434_v1 = vpop.xlane.xlu1 %3433 }
0x1cdc   : > { %6515 = vrcp.f32 %v3434_v1 }
0x1cdd   : > { %6517 = vrcp.f32 %v3440_v25  ;;  %v3431_v3 = vpop.xlane.xlu0 %3430 }
0x1cde   : > { %6519 = vrcp.f32 %v3431_v3 }
0x1cdf   : > { %v3456_v21 = vpop.permute.xlu1 %3455 }
0x1ce1   : > { %v3454_v57 = vpop.permute.xlu0 %3453 }
0x1ce2   : > { %6039 = vmatprep.subr.bf16.mxu1 %v3454_v57 }
0x1ce3   : > { %6040 = vmatpush3.bf16.msra.mxu1 %v3454_v57 }
0x1ce4   : > { %6041 = vmatprep.subr.bf16.mxu1 %v3456_v21  ;;  %v6514_v54 = vpop.eup %6513 }
0x1ce5   : > { %v3447_v30 = vmul.f32 %v6514_v54, %v6510_v20 }
0x1ce6   : > { %v6516_v29 = vpop.eup %6515 }
0x1ce7   : > { %v6518_v4 = vpop.eup %6517  ;;  %6042 = vmatpush3.bf16.msra.mxu1 %v3456_v21  ;;  %v3446_v31 = vmul.f32 %v6516_v29, %v6508_v18 }
0x1ce8   : > { %v6520_v28 = vpop.eup %6519  ;;  %v3448_v32 = vmul.f32 %v6518_v4, %v6506_v12  ;;  %6047 = vmatprep.subr.bf16.mxu1 %v6393_v46  ;;  %v6395_v4 = vld [vmem:[%s7850_s11] sm:$0xff]  }
0x1ce9   : > { %v3445_v47 = vmul.f32 %v6520_v28, %v6512_v22  ;;  %6056 = vmatpush3.bf16.msra.mxu0 %v6395_v4  ;;  %v6396_v28 = vld [vmem:[%s7851_s18 + $0x8] sm:$0xff]  }
0x1cea   : > { %v3450_v35 = vpack.c.bf16 %v3448_v32, %v3447_v30  ;;  %6057 = vmatprep.subr.bf16.mxu0 %v6692_v26 }
0x1ceb   : > { %v3449_v34 = vpack.c.bf16 %v3446_v31, %v3445_v47 }
0x1ced   : > { %6043 = vmatprep.mubr.msk.bf16.mxu1 %vm1315_vm0, %v3449_v34  ;;  %6058 = vmatpush3.bf16.msra.mxu0 %v6396_v28 }
0x1cee   : > { %6044 = vmatmul.mubr.msk.bf16.vlgmr.msra.gmra.mrb[44].mxu1 %vm1315_vm0, %v3450_v35 }
0x1cef   : > { %6048 = vmatpush3.bf16.msra.mxu1 %v6393_v46  ;;  %v6400_v46 = vld [vmem:[%s7854_s25 + $0x18] sm:$0xff]  }
0x1cf0   : > { %6049 = vmatprep.subr.bf16.mxu1 %v6394_v48 }
0x1cf3   : > { %6050 = vmatpush3.bf16.msra.mxu1 %v6394_v48 }
0x1cf4   : > { %6063 = vmatprep.subr.bf16.mxu1 %v6692_v26 }
0x1dc1   : > { %v6045_v40 = vpop.f32.mrb[44].mxu1 }
0x1dc2   : > { %3522 = vrot.lane.b32.xlu1 %v6045_v40, %s7838_s14  ;;  %v3499_v41 = vpop.f32.mrb[45].mxu1 }
0x1dc3   : > { %v6046_v43 = vpop.f32.mrb[46].mxu1 }
0x1dc4   : > { %3524 = vrot.lane.b32.xlu0 %v6046_v43, %s7838_s14  ;;  %v3502_v44 = vpop.f32.mrb[47].mxu1 }
0x1dc6   : > { %3534 = vrot.lane.b32.xlu1 %v6045_v40, %s7839_s19 }
0x1dc8   : > { %3536 = vrot.lane.b32.xlu0 %v6046_v43, %s7839_s19 }
0x1dca   : > { %3518 = vrot.lane.b32.xlu1 %v3499_v41, %s7838_s14 }
0x1dcc   : > { %3520 = vrot.lane.b32.xlu0 %v3502_v44, %s7838_s14 }
0x1dce   : > { %3530 = vrot.lane.b32.xlu1 %v3499_v41, %s7839_s19 }
0x1dd0   : > { %3532 = vrot.lane.b32.xlu0 %v3502_v44, %s7839_s19 }
0x1dd2   : > { %3542 = vrot.lane.b32.xlu1 %v3499_v41, %s7841_s21 }
0x1dd4   : > { %3544 = vrot.lane.b32.xlu0 %v3502_v44, %s7841_s21 }
0x1dd6   : > { %3546 = vrot.lane.b32.xlu1 %v6045_v40, %s7841_s21 }
0x1dd8   : > { %3548 = vrot.lane.b32.xlu0 %v6046_v43, %s7841_s21 }
0x1e34   : > { %v3523_v49 = vpop.permute.xlu1 %3522 }
0x1e35   : > { %v3556_v7 = vsel %vm1477_vm3, %v6045_v40, %v3523_v49 }
0x1e36   : > { %v3525_v50 = vpop.permute.xlu0 %3524 }
0x1e37   : > { %v3557_v18 = vsel %vm1477_vm3, %v6046_v43, %v3525_v50  ;;  %v6398_v43 = vld [vmem:[%s7854_s25 + $0x8] sm:$0xff]  }
0x1e38   : > { %v3535_v51 = vpop.permute.xlu1 %3534 }
0x1e39   : > { %v3560_v9 = vsel %vm1690_vm5, %v3556_v7, %v3535_v51 }
0x1e3a   : > { %v3537_v53 = vpop.permute.xlu0 %3536 }
0x1e3b   : > { %v3561_v20 = vsel %vm1690_vm5, %v3557_v18, %v3537_v53 }
0x1e3c   : > { %v3519_v55 = vpop.permute.xlu1 %3518 }
0x1e3d   : > { %v3554_v33 = vsel %vm1477_vm3, %v3499_v41, %v3519_v55  ;;  %v6397_v41 = vld [vmem:[%s7853_s7] sm:$0xff]   ;;  %s5584_s7 = sshll.u32 %s6872_s0, 7 }
0x1e3e   : > { %v3521_v56 = vpop.permute.xlu0 %3520 }
0x1e3f   : > { %v3555_v62 = vsel %vm1477_vm3, %v3502_v44, %v3521_v56  ;;  %v6399_v44 = vld [vmem:[%s7854_s25 + $0x10] sm:$0xff]  }
0x1e40   : > { %v3531_v58 = vpop.permute.xlu1 %3530 }
0x1e41   : > { %v3558_v39 = vsel %vm1690_vm5, %v3554_v33, %v3531_v58 }
0x1e42   : > { %v3533_v59 = vpop.permute.xlu0 %3532 }
0x1e43   : > { %v3559_v2 = vsel %vm1690_vm5, %v3555_v62, %v3533_v59 }
0x1e44   : > { %v3543_v60 = vpop.permute.xlu1 %3542 }
0x1e45   : > { %v3562_v15 = vsel %vm1695_vm4, %v3558_v39, %v3543_v60 }
0x1e46   : > { %v3545_v5 = vpop.permute.xlu0 %3544  ;;  %v3566_v10 = vmul.f32 %v7293_v0, %v3562_v15 }
0x1e47   : > { %v3563_v8 = vsel %vm1695_vm4, %v3559_v2, %v3545_v5 }
0x1e48   : > { %v3567_v37 = vmul.f32 %v7297_v38, %v3563_v8  ;;  %v3547_v12 = vpop.permute.xlu1 %3546 }
0x1e49   : > { %v3564_v19 = vsel %vm1695_vm4, %v3560_v9, %v3547_v12 }
0x1e4a   : > { %v3570_v52 = vpack.c.bf16 %v3567_v37, %v3566_v10  ;;  %v3549_v22 = vpop.permute.xlu0 %3548  ;;  %v3568_v24 = vmul.f32 %v7305_v11, %v3564_v19  ;;  %v6401_v19 = vld [vmem:[%s6789_s4 + $0x40] sm:$0xff]  }
0x1e4b   : > { %v3565_v23 = vsel %vm1695_vm4, %v3561_v20, %v3549_v22  ;;  %v6402_v20 = vld [vmem:[%s6789_s4 + $0x48] sm:$0xff]   ;;  %6075 = vmatprep.subr.bf16.mxu0 %v6401_v19  ;;  %v6404_v22 = vld [vmem:[%s6789_s4 + $0x58] sm:$0xff]  }
0x1e4c   : > { %v3569_v25 = vmul.f32 %v7309_v14, %v3565_v23  ;;  %6051 = vmatprep.mubr.msk.bf16.mxu1 %vm1315_vm0, %v3570_v52  ;;  %v6403_v52 = vld [vmem:[%s6789_s4 + $0x50] sm:$0xff]   ;;  %v6405_v23 = vld [vmem:[%s6789_s4 + $0x60] sm:$0xff]  }
0x1e4e   : > { %v3571_v0 = vpack.c.bf16 %v3569_v25, %v3568_v24  ;;  %v6406_v24 = vld [vmem:[%s6789_s4 + $0x68] sm:$0xff]  }
0x1e50   : > { %6052 = vmatmul.mubr.msk.bf16.vlgmr.msra.gmra.mrb[48].mxu1 %vm1315_vm0, %v3571_v0 }
0x1e51   : > { %6071 = vmatprep.mubr.msk.bf16.mxu1 %vm6693_vm6, %v6692_v26  ;;  %6064 = vmatpush3.bf16.msra.mxu1 %v6397_v41 }
0x1e52   : > { %6065 = vmatprep.subr.bf16.mxu1 %v6692_v26 }
0x1e55   : > { %6066 = vmatpush3.bf16.msra.mxu1 %v6398_v43 }
0x1e56   : > { %6067 = vmatprep.subr.bf16.mxu1 %v6692_v26 }
0x1e59   : > { %6068 = vmatpush3.bf16.msra.mxu1 %v6399_v44 }
0x1e5a   : > { %6069 = vmatprep.subr.bf16.mxu1 %v6692_v26 }
0x1e5d   : > { %6070 = vmatpush3.bf16.msra.mxu1 %v6400_v46 }
0x1f23   : > { %v6053_v38 = vpop.f32.mrb[48].mxu1 }
0x1f24   : > { %v3624_v27 = vpop.f32.mrb[49].mxu1 }
0x1f25   : > { %v6054_v1 = vpop.f32.mrb[50].mxu1 }
0x1f26   : > { %v3627_v3 = vpop.f32.mrb[51].mxu1 }
0x1f27   : > { %v3639_v57 = vadd.f32 %v3627_v3, %v3624_v27  ;;  %v6407_v27 = vld [vmem:[%s6789_s4 + $0x70] sm:$0xff]  }
0x1f29   : > { %v3640_v21 = vadd.f32 %v6053_v38, %v3639_v57  ;;  %v5457_v57 = vld [vmem:[%s6784_s27 + $0x1] ss:$0 sm:$0xff] }
0x1f2b   : > { %v3641_v11 = vadd.f32 %v6054_v1, %v3640_v21  ;;  %v6408_v1 = vld [vmem:[%s6789_s4 + $0x78] sm:$0xff]  }
0x1f2d   : > { %v3642_v14 = vadd.f32 %v3641_v11, %v7327_v36  ;;  %v5447_v36 = vld [vmem:[%s7852_s1] ss:$0 sm:$0xff] }
0x1f2f   : > { %v3644_v54 = vmul.f32 %v3642_v14, %v3642_v14 }
0x1f31   : > { %v3645_v29 = vsel %vm1315_vm0, %v3644_v54, 0.0 }
0x1f32   : > { %3646 = vadd.xlane.f32.xlu1 %v3645_v29 }
0x1fbf   : > { %v3647_v30 = vpop.xlane.xlu1 %3646 }
0x1fc0   : > { %v3648_v47 = vmul.f32 0.03125, %v3647_v30 }
0x1fc2   : > { %v3649_v31 = vadd.f32 1e-06, %v3648_v47 }
0x1fc4   : > { %6521 = vrsqrt.f32 %v3649_v31 }
0x1fce   : > { %v6522_v32 = vpop.eup %6521 }
0x1fcf   : > { %v3651_v34 = vmul.f32 %v6522_v32, %v3642_v14  ;;  %v7499_v32 = vld [vmem:[%s6739_s3 + $0x10] sm:$0xff] }
0x1fd1   : > { %v3658_v35 = vmul.f32 %v5447_v36, %v3651_v34  ;;  %v7503_v34 = vld [vmem:[%s6739_s3 + $0x18] sm:$0xff] }
0x1fd3   : > { %v3671_v40 = vpack.c.bf16 %v3658_v35, %v3658_v35 }
0x1fd5   : > { %6060 = vmatmul.mubr.msk.bf16.vlgmr.msra.gmra.mrb[40].mxu0 %vm1315_vm0, %v3671_v40 }
0x1fd6   : > { %6076 = vmatpush3.bf16.msra.mxu0 %v6401_v19 }
0x1fd7   : > { %6077 = vmatprep.subr.bf16.mxu0 %v6402_v20 }
0x1fda   : > { %6078 = vmatpush3.bf16.msra.mxu0 %v6402_v20 }
0x1fdb   : > { %6079 = vmatprep.subr.bf16.mxu0 %v6403_v52 }
0x1fde   : > { %6080 = vmatpush3.bf16.msra.mxu0 %v6403_v52 }
0x1fdf   : > { %6081 = vmatprep.subr.bf16.mxu0 %v6404_v22 }
0x1fe2   : > { %6082 = vmatpush3.bf16.msra.mxu0 %v6404_v22 }
0x1fe3   : > { %6083 = vmatprep.subr.bf16.mxu0 %v6405_v23 }
0x1fe6   : > { %6084 = vmatpush3.bf16.msra.mxu0 %v6405_v23 }
0x1fe7   : > { %6085 = vmatprep.subr.bf16.mxu0 %v6406_v24 }
0x1fea   : > { %6086 = vmatpush3.bf16.msra.mxu0 %v6406_v24 }
0x1feb   : > { %6087 = vmatprep.subr.bf16.mxu0 %v6407_v27 }
0x1fee   : > { %6088 = vmatpush3.bf16.msra.mxu0 %v6407_v27 }
0x1fef   : > { %6089 = vmatprep.subr.bf16.mxu0 %v6408_v1 }
0x1ff2   : > { %6090 = vmatpush3.bf16.msra.mxu0 %v6408_v1 }
0x20a8   : > { %v3721_v48 = vpop.f32.mrb[40].mxu0 }
0x20a9   : > { %3737 = vrot.lane.b32.xlu0 %v3721_v48, %s7833_s22  ;;  %v6061_v49 = vpop.f32.mrb[41].mxu0  ;;  %v3728_v53 = vmul.f32 0.044715, %v3721_v48  ;;  %v3727_v60 = vmul.f32 0.5, %v3721_v48 }
0x20aa   : > { %v3724_v50 = vpop.f32.mrb[42].mxu0 }
0x20ab   : > { %v6062_v51 = vpop.f32.mrb[43].mxu0  ;;  %v3729_v55 = vmul.f32 %v3728_v53, %v3721_v48 }
0x20ad   : > { %v3730_v56 = vmul.f32 %v3729_v55, %v3721_v48 }
0x20af   : > { %v3731_v58 = vadd.f32 %v3730_v56, %v3721_v48 }
0x20b1   : > { %v3732_v59 = vmul.f32 0.7978846, %v3731_v58  ;;  %v6581_v58 = vld [vmem:[%s7842_s24] sm:$0xff] }
0x20b3   : > { %6523 = vtanh.f32 %v3732_v59 }
0x20bd   : > { %v6524_v33 = vpop.eup %6523 }
0x20be   : > { %v3734_v39 = vadd.f32 1.0, %v6524_v33 }
0x20c0   : > { %v3735_v62 = vmul.f32 %v3734_v39, %v3727_v60  ;;  %v6582_v60 = vld [vmem:[%s7842_s24 + $0x18] sm:$0xff] }
0x211b   : > { %v3738_v15 = vpop.permute.xlu0 %3737 }
0x211c   : > { %v3740_v2 = vmul.f32 %v3738_v15, %v3735_v62  ;;  %v6583_v15 = vld [vmem:[%s7842_s24 + $0x8] sm:$0xff] }
0x211e   : > { %v3741_v5 = vpack.c.bf16 %v3740_v2, %v3740_v2 }
0x2120   : > { %6072 = vmatmul.mubr.msk.bf16.vlgmr.msra.gmra.mrb[52].mxu1 %vm1342_vm1, %v3741_v5 }
0x21f3   : > { %v3803_v7 = vpop.f32.mrb[52].mxu1 }
0x21f4   : > { %v7475_v8 = vadd.f32 %v3803_v7, %v3642_v14  ;;  %v6073_v9 = vpop.f32.mrb[53].mxu1  ;;  %v6584_v7 = vld [vmem:[%s7842_s24 + $0x10] sm:$0xff] }
0x21f5   : > { %v3806_v10 = vpop.f32.mrb[54].mxu1 }
0x21f6   : > { %v6074_v37 = vpop.f32.mrb[55].mxu1  ;;  %v3812_v12 = vmul.f32 %v7475_v8, %v7475_v8 }
0x21f8   : > { %v3813_v18 = vsel %vm1315_vm0, %v3812_v12, 0.0 }
0x21f9   : > { %3814 = vadd.xlane.f32.xlu0 %v3813_v18 }
0x2286   : > { %v3815_v25 = vpop.xlane.xlu0 %3814 }
0x2287   : > { %v3816_v0 = vmul.f32 0.03125, %v3815_v25 }
0x2289   : > { %v3817_v38 = vadd.f32 1e-06, %v3816_v0 }
0x228b   : > { %6525 = vrsqrt.f32 %v3817_v38 }
0x2295   : > { %v6526_v3 = vpop.eup %6525 }
0x2296   : > { %v3819_v21 = vmul.f32 %v6526_v3, %v7475_v8 }
0x2298   : > { %v3826_v11 = vmul.f32 %v5457_v57, %v3819_v21 }
0x229a   : > { %3831 = vrot.lane.b32.xlu0 %v3826_v11, %s7833_s22  ;;  %3828 = vrot.lane.b32.xlu1 %v3826_v11, %s7834_s16 }
0x229e   : > { %3834 = vrot.lane.b32.xlu1 %v3826_v11, %s7835_s23 }
0x230c   : > { %v3829_v14 = vpop.permute.xlu1 %3828  ;;  %v3832_v54 = vpop.permute.xlu0 %3831 }
0x230d   : > { %v3837_v29 = vsel %vm1315_vm0, %v3826_v11, %v3829_v14 }
0x230e   : > { %v3838_v4 = vsel %vm1342_vm1, %v3837_v29, %v3832_v54 }
0x2310   : > { %v3835_v28 = vpop.permute.xlu1 %3834 }
0x2311   : > { %v3839_v30 = vsel %vm1344_vm2, %v3838_v4, %v3835_v28 }
0x2312   : > { %v3840_v47 = vmul.f32 %v7349_v61, %v3839_v30  ;;  %v3841_v31 = vmul.f32 %v7353_v13, %v3839_v30  ;;  %v3842_v36 = vmul.f32 %v7499_v32, %v3839_v30  ;;  %v3843_v35 = vmul.f32 %v7503_v34, %v3839_v30 }
0x2314   : > { %v3844_v40 = vpack.c.bf16 %v3841_v31, %v3840_v47  ;;  %v3845_v41 = vpack.c.bf16 %v3843_v35, %v3842_v36 }
0x2316   : > { %6091 = vmatprep.mubr.bf16.mxu0 %v3844_v40 }
0x2317   : > { %6092 = vmatmul.mubr.bf16.vlgmr.msra.gmra.mrb[44].mxu0 %v3845_v41 }
0x23ea   : > { %v6093_v43 = vpop.f32.mrb[44].mxu0 }
0x23eb   : > { %v3945_v44 = vpop.f32.mrb[45].mxu0 }
0x23ec   : > { %v6094_v46 = vpop.f32.mrb[46].mxu0 }
0x23ed   : > { %v3966_v48 = vpack.c.bf16 %v6094_v46, %v6093_v43  ;;  %v3948_v49 = vpop.f32.mrb[47].mxu0 }
0x23ee   : > { %v3965_v61 = vpack.c.bf16 %v3948_v49, %v3945_v44 }
0x23ef   : > { %3971 = vrot.lane.b32.xlu0 %v3966_v48, %s7836_s5 }
0x23f0   : > { %3969 = vrot.lane.b32.xlu1 %v3965_v61, %s7836_s5  ;;  %6099 = vmatprep.mubr.msk.bf16.mxu1 %vm1477_vm3, %v3965_v61 }
0x2461   : > { %v3972_v51 = vpop.permute.xlu0 %3971 }
0x2462   : > { %v3970_v13 = vpop.permute.xlu1 %3969  ;;  %v3983_v53 = vsel %vm1477_vm3, %v3972_v51, 0 }
0x2463   : > { %v3980_v50 = vsel %vm1477_vm3, %v3970_v13, 0  ;;  %6219 = vmatprep.subr.msk.bf16.mxu1 %vm1477_vm3, %v3970_v13 }
0x2464   : > { %6096 = vmatpush3.bf16.xpose.msra.mxu1 %v3980_v50 }
0x2465   : > { %6220 = vmatprep.subr.msk.bf16.mxu1 %vm1477_vm3, %v3972_v51 }
0x246c   : > { %6098 = vmatpush3.bf16.xpose.msra.mxu1 %v3983_v53 }
0x2473   : > { %6100 = vmatmul.mubr.msk.bf16.vlgmr.msra.gmra.mrb[56].mxu1 %vm1477_vm3, %v3966_v48 }
0x2546   : > { %v6101_v55 = vpop.f32.mrb[56].mxu1 }
0x2547   : > { %v4019_v56 = vpop.f32.mrb[57].mxu1  ;;  %v4028_v9 = vadd.f32 %v6584_v7, %v6101_v55 }
0x2548   : > { %v4020_v59 = vadd.f32 %v6581_v58, %v4019_v56  ;;  %v6102_v33 = vpop.f32.mrb[58].mxu1  ;;  %v6409_v58 = vld [vmem:[%s7843_s2 + $0x10] sm:$0xff]  }
0x2549   : > { %v4022_v39 = vpop.f32.mrb[59].mxu1  ;;  %v4031_v62 = vadd.f32 %v6582_v60, %v6102_v33  ;;  %v4040_v12 = vsel %vm1315_vm0, %v4028_v9, -inf  ;;  %6111 = vmatprep.subr.bf16.mxu0 %v6409_v58  ;;  %v6411_v33 = vld [vmem:[%s7845_s12 + $0x40] sm:$0xff]  }
0x254a   : > { %v4023_v2 = vadd.f32 %v6583_v15, %v4022_v39  ;;  %v4034_v5 = vsel %vm1315_vm0, %v4020_v59, -inf  ;;  %6112 = vmatpush3.bf16.msra.mxu0 %v6409_v58 }
0x254b   : > { %4035 = vmax.xlane.f32.xlu1 %v4034_v5  ;;  %v4043_v37 = vsel %vm1315_vm0, %v4031_v62, -inf }
0x254c   : > { %v4037_v10 = vsel %vm1315_vm0, %v4023_v2, -inf }
0x254d   : > { %4038 = vmax.xlane.f32.xlu0 %v4037_v10 }
0x254f   : > { %4044 = vmax.xlane.f32.xlu1 %v4043_v37 }
0x2551   : > { %4041 = vmax.xlane.f32.xlu0 %v4040_v12 }
0x25d8   : > { %v4036_v18 = vpop.xlane.xlu1 %4035 }
0x25d9   : > { %v4046_v22 = vsub.f32 %v4020_v59, %v4036_v18  ;;  %v6410_v59 = vld [vmem:[%s7843_s2 + $0x18] sm:$0xff]  }
0x25da   : > { %v4039_v19 = vpop.xlane.xlu0 %4038  ;;  %6113 = vmatprep.subr.bf16.mxu0 %v6410_v59 }
0x25db   : > { %v4047_v20 = vsub.f32 %v4023_v2, %v4039_v19  ;;  %v4050_v27 = vmul.f32 1.442695, %v4046_v22  ;;  %6114 = vmatpush3.bf16.msra.mxu0 %v6410_v59 }
0x25dc   : > { %v4045_v52 = vpop.xlane.xlu1 %4044  ;;  %6139 = vmatprep.subr.bf16.mxu0 %v6411_v33 }
0x25dd   : > { %v4049_v23 = vsub.f32 %v4031_v62, %v4045_v52  ;;  %v4052_v24 = vmul.f32 1.442695, %v4047_v20 }
0x25de   : > { %v4042_v25 = vpop.xlane.xlu0 %4041 }
0x25df   : > { %v4056_v0 = vmul.f32 1.442695, %v4049_v23  ;;  %v4048_v38 = vsub.f32 %v4028_v9, %v4042_v25  ;;  %v7554_v25 = vld [vmem:[%s6744_s8] sm:$0xff] }
0x25e1   : > { %6527 = vpow2.f32 %v4056_v0  ;;  %v4054_v1 = vmul.f32 1.442695, %v4048_v38  ;;  %v7558_v38 = vld [vmem:[%s6744_s8 + $0x8] sm:$0xff] }
0x25e2   : > { %6529 = vpow2.f32 %v4052_v24 }
0x25e3   : > { %6531 = vpow2.f32 %v4054_v1 }
0x25e4   : > { %6533 = vpow2.f32 %v4050_v27 }
0x25eb   : > { %v6528_v3 = vpop.eup %6527 }
0x25ec   : > { %v6530_v57 = vpop.eup %6529  ;;  %v4067_v21 = vsel %vm1315_vm0, %v6528_v3, 0.0 }
0x25ed   : > { %v6532_v11 = vpop.eup %6531  ;;  %4068 = vadd.xlane.f32.xlu1 %v4067_v21  ;;  %v4061_v29 = vsel %vm1315_vm0, %v6530_v57, 0.0 }
0x25ee   : > { %v4064_v14 = vsel %vm1315_vm0, %v6532_v11, 0.0  ;;  %v6534_v54 = vpop.eup %6533 }
0x25ef   : > { %4065 = vadd.xlane.f32.xlu0 %v4064_v14  ;;  %v4058_v4 = vsel %vm1315_vm0, %v6534_v54, 0.0 }
0x25f1   : > { %4062 = vadd.xlane.f32.xlu1 %v4061_v29  ;;  %v7566_v29 = vld [vmem:[%s6744_s8 + $0x10] sm:$0xff] }
0x25f3   : > { %4059 = vadd.xlane.f32.xlu0 %v4058_v4 }
0x2602   : > { %4082 = vrot.lane.b32.xlu1 %v3966_v48, %s7837_s9 }
0x2609   : > { %4080 = vrot.lane.b32.xlu0 %v3965_v61, %s7837_s9 }
0x267a   : > { %v4069_v28 = vpop.xlane.xlu1 %4068 }
0x267c   : > { %v4066_v30 = vpop.xlane.xlu0 %4065 }
0x267d   : > { %6535 = vrcp.f32 %v4066_v30 }
0x267e   : > { %v4063_v47 = vpop.xlane.xlu1 %4062 }
0x267f   : > { %6537 = vrcp.f32 %v4063_v47 }
0x2680   : > { %6539 = vrcp.f32 %v4069_v28  ;;  %v4060_v31 = vpop.xlane.xlu0 %4059  ;;  %v7570_v28 = vld [vmem:[%s6744_s8 + $0x18] sm:$0xff] }
0x2681   : > { %6541 = vrcp.f32 %v4060_v31  ;;  %v6412_v31 = vld [vmem:[%s7845_s12 + $0x48] sm:$0xff]  }
0x2682   : > { %v4083_v35 = vpop.permute.xlu1 %4082 }
0x2684   : > { %v4081_v36 = vpop.permute.xlu0 %4080 }
0x2685   : > { %6103 = vmatprep.subr.bf16.mxu1 %v4081_v36 }
0x2686   : > { %6104 = vmatpush3.bf16.msra.mxu1 %v4081_v36  ;;  %v6413_v36 = vld [vmem:[%s7845_s12 + $0x50] sm:$0xff]  }
0x2687   : > { %6105 = vmatprep.subr.bf16.mxu1 %v4083_v35  ;;  %v6536_v40 = vpop.eup %6535 }
0x2688   : > { %v4076_v46 = vmul.f32 %v6536_v40, %v6532_v11  ;;  %v6415_v40 = vld [vmem:[%s7845_s12 + $0x60] sm:$0xff]  }
0x2689   : > { %v6538_v41 = vpop.eup %6537 }
0x268a   : > { %v6540_v43 = vpop.eup %6539  ;;  %6106 = vmatpush3.bf16.msra.mxu1 %v4083_v35  ;;  %v4075_v49 = vmul.f32 %v6538_v41, %v6530_v57  ;;  %v6414_v35 = vld [vmem:[%s7845_s12 + $0x58] sm:$0xff]   ;;  %v6416_v41 = vld [vmem:[%s7845_s12 + $0x68] sm:$0xff]  }
0x268b   : > { %v6542_v44 = vpop.eup %6541  ;;  %v4077_v61 = vmul.f32 %v6540_v43, %v6528_v3  ;;  %v6417_v43 = vld [vmem:[%s7845_s12 + $0x70] sm:$0xff]  }
0x268c   : > { %v4074_v48 = vmul.f32 %v6542_v44, %v6534_v54  ;;  %v6419_v44 = vld [vmem:[%s7846_s6 + $0x40] sm:$0xff]  }
0x268d   : > { %v4079_v50 = vpack.c.bf16 %v4077_v61, %v4076_v46  ;;  %6119 = vmatprep.subr.bf16.mxu1 %v6419_v44  ;;  %v6420_v46 = vld [vmem:[%s7846_s6 + $0x48] sm:$0xff]   ;;  %v6423_v61 = vld [vmem:[%s7846_s6 + $0x60] sm:$0xff]  }
0x268e   : > { %v4078_v13 = vpack.c.bf16 %v4075_v49, %v4074_v48  ;;  %v6421_v48 = vld [vmem:[%s7846_s6 + $0x50] sm:$0xff]   ;;  %v6422_v49 = vld [vmem:[%s7846_s6 + $0x58] sm:$0xff]  }
0x2690   : > { %6107 = vmatprep.mubr.msk.bf16.mxu1 %vm1315_vm0, %v4078_v13  ;;  %v6424_v13 = vld [vmem:[%s7846_s6 + $0x68] sm:$0xff]  }
0x2691   : > { %6108 = vmatmul.mubr.msk.bf16.vlgmr.msra.gmra.mrb[60].mxu1 %vm1315_vm0, %v4079_v50  ;;  %v6426_v50 = vld [vmem:[%s7846_s6 + $0x78] sm:$0xff]  }
0x2692   : > { %6120 = vmatpush3.bf16.msra.mxu1 %v6419_v44 }
0x2693   : > { %6121 = vmatprep.subr.bf16.mxu1 %v6420_v46 }
0x2696   : > { %6122 = vmatpush3.bf16.msra.mxu1 %v6420_v46 }
0x2697   : > { %6123 = vmatprep.subr.bf16.mxu1 %v6421_v48 }
0x269a   : > { %6124 = vmatpush3.bf16.msra.mxu1 %v6421_v48 }
0x269b   : > { %6125 = vmatprep.subr.bf16.mxu1 %v6422_v49 }
0x269e   : > { %6126 = vmatpush3.bf16.msra.mxu1 %v6422_v49 }
0x269f   : > { %6127 = vmatprep.subr.bf16.mxu1 %v6423_v61 }
0x26a2   : > { %6128 = vmatpush3.bf16.msra.mxu1 %v6423_v61 }
0x26a3   : > { %6129 = vmatprep.subr.bf16.mxu1 %v6424_v13 }
0x26a6   : > { %6130 = vmatpush3.bf16.msra.mxu1 %v6424_v13 }
0x2764   : > { %v6109_v51 = vpop.f32.mrb[60].mxu1 }
0x2765   : > { %4149 = vrot.lane.b32.xlu1 %v6109_v51, %s7838_s14  ;;  %v4126_v53 = vpop.f32.mrb[61].mxu1 }
0x2766   : > { %v6110_v55 = vpop.f32.mrb[62].mxu1 }
0x2767   : > { %4151 = vrot.lane.b32.xlu0 %v6110_v55, %s7838_s14  ;;  %v4129_v56 = vpop.f32.mrb[63].mxu1 }
0x2769   : > { %4161 = vrot.lane.b32.xlu1 %v6109_v51, %s7839_s19 }
0x276b   : > { %4163 = vrot.lane.b32.xlu0 %v6110_v55, %s7839_s19 }
0x276d   : > { %4145 = vrot.lane.b32.xlu1 %v4126_v53, %s7838_s14 }
0x276f   : > { %4147 = vrot.lane.b32.xlu0 %v4129_v56, %s7838_s14 }
0x2771   : > { %4157 = vrot.lane.b32.xlu1 %v4126_v53, %s7839_s19 }
0x2773   : > { %4159 = vrot.lane.b32.xlu0 %v4129_v56, %s7839_s19 }
0x2775   : > { %4169 = vrot.lane.b32.xlu1 %v4126_v53, %s7841_s21 }
0x2777   : > { %4171 = vrot.lane.b32.xlu0 %v4129_v56, %s7841_s21 }
0x2779   : > { %4173 = vrot.lane.b32.xlu1 %v6109_v51, %s7841_s21 }
0x277b   : > { %4175 = vrot.lane.b32.xlu0 %v6110_v55, %s7841_s21 }
0x27d7   : > { %v4150_v39 = vpop.permute.xlu1 %4149 }
0x27d8   : > { %v4183_v22 = vsel %vm1477_vm3, %v6109_v51, %v4150_v39 }
0x27d9   : > { %v4152_v60 = vpop.permute.xlu0 %4151 }
0x27da   : > { %v4184_v3 = vsel %vm1477_vm3, %v6110_v55, %v4152_v60 }
0x27db   : > { %v4162_v62 = vpop.permute.xlu1 %4161 }
0x27dc   : > { %v4187_v24 = vsel %vm1690_vm5, %v4183_v22, %v4162_v62 }
0x27dd   : > { %v4164_v15 = vpop.permute.xlu0 %4163 }
0x27de   : > { %v4188_v21 = vsel %vm1690_vm5, %v4184_v3, %v4164_v15  ;;  %v6589_v3 = vld [vmem:[%s6739_s3] sm:$0xff] }
0x27df   : > { %v4146_v2 = vpop.permute.xlu1 %4145 }
0x27e0   : > { %v4181_v10 = vsel %vm1477_vm3, %v4126_v53, %v4146_v2 }
0x27e1   : > { %v4148_v5 = vpop.permute.xlu0 %4147 }
0x27e2   : > { %v4182_v18 = vsel %vm1477_vm3, %v4129_v56, %v4148_v5 }
0x27e3   : > { %v4158_v7 = vpop.permute.xlu1 %4157 }
0x27e4   : > { %v4185_v37 = vsel %vm1690_vm5, %v4181_v10, %v4158_v7 }
0x27e5   : > { %v4160_v9 = vpop.permute.xlu0 %4159 }
0x27e6   : > { %v4186_v20 = vsel %vm1690_vm5, %v4182_v18, %v4160_v9 }
0x27e7   : > { %v4170_v12 = vpop.permute.xlu1 %4169 }
0x27e8   : > { %v4189_v19 = vsel %vm1695_vm4, %v4185_v37, %v4170_v12 }
0x27e9   : > { %v4172_v52 = vpop.permute.xlu0 %4171  ;;  %v4193_v0 = vmul.f32 %v7554_v25, %v4189_v19  ;;  %v5495_v19 = vld [vmem:[%s7847_s13 + $0x1] ss:$0 sm:$0xff] }
0x27ea   : > { %v4190_v23 = vsel %vm1695_vm4, %v4186_v20, %v4172_v52 }
0x27eb   : > { %v4194_v27 = vmul.f32 %v7558_v38, %v4190_v23  ;;  %v4174_v1 = vpop.permute.xlu1 %4173 }
0x27ec   : > { %v4191_v57 = vsel %vm1695_vm4, %v4187_v24, %v4174_v1 }
0x27ed   : > { %v4197_v11 = vpack.c.bf16 %v4194_v27, %v4193_v0  ;;  %v4176_v14 = vpop.permute.xlu0 %4175  ;;  %v4195_v4 = vmul.f32 %v7566_v29, %v4191_v57 }
0x27ee   : > { %v4192_v54 = vsel %vm1695_vm4, %v4188_v21, %v4176_v14  ;;  %v6590_v21 = vld [vmem:[%s6739_s3 + $0x8] sm:$0xff] }
0x27ef   : > { %v4196_v30 = vmul.f32 %v7570_v28, %v4192_v54  ;;  %6115 = vmatprep.mubr.msk.bf16.mxu0 %vm1315_vm0, %v4197_v11 }
0x27f1   : > { %v4198_v47 = vpack.c.bf16 %v4196_v30, %v4195_v4 }
0x27f3   : > { %6116 = vmatmul.mubr.msk.bf16.vlgmr.msra.gmra.mrb[48].mxu0 %vm1315_vm0, %v4198_v47 }
0x27f4   : > { %6140 = vmatpush3.bf16.msra.mxu0 %v6411_v33  ;;  %6155 = vmatprep.mubr.bf16.mxu0 %v7358_v6  ;;  %v6418_v6 = vld [vmem:[%s7845_s12 + $0x78] sm:$0xff]  }
0x27f5   : > { %6141 = vmatprep.subr.bf16.mxu0 %v6412_v31 }
0x27f8   : > { %6142 = vmatpush3.bf16.msra.mxu0 %v6412_v31 }
0x27f9   : > { %6143 = vmatprep.subr.bf16.mxu0 %v6413_v36 }
0x27fc   : > { %6144 = vmatpush3.bf16.msra.mxu0 %v6413_v36 }
0x27fd   : > { %6145 = vmatprep.subr.bf16.mxu0 %v6414_v35 }
0x2800   : > { %6146 = vmatpush3.bf16.msra.mxu0 %v6414_v35 }
0x2801   : > { %6147 = vmatprep.subr.bf16.mxu0 %v6415_v40 }
0x2804   : > { %6148 = vmatpush3.bf16.msra.mxu0 %v6415_v40 }
0x2805   : > { %6149 = vmatprep.subr.bf16.mxu0 %v6416_v41 }
0x2808   : > { %6150 = vmatpush3.bf16.msra.mxu0 %v6416_v41 }
0x2809   : > { %6151 = vmatprep.subr.bf16.mxu0 %v6417_v43 }
0x280c   : > { %6152 = vmatpush3.bf16.msra.mxu0 %v6417_v43 }
0x280d   : > { %6153 = vmatprep.subr.bf16.mxu0 %v6418_v6 }
0x2810   : > { %6154 = vmatpush3.bf16.msra.mxu0 %v6418_v6 }
0x2813   : > { %6156 = vmatmul.mubr.bf16.vlgmr.msra.gmra.mrb[52].mxu0 %v7360_v42  ;;  %v6425_v42 = vld [vmem:[%s7846_s6 + $0x70] sm:$0xff]  }
0x2814   : > { %6131 = vmatprep.subr.bf16.mxu1 %v6425_v42 }
0x2815   : > { %6132 = vmatpush3.bf16.msra.mxu1 %v6425_v42 }
0x2816   : > { %6133 = vmatprep.subr.bf16.mxu1 %v6426_v50 }
0x2819   : > { %6134 = vmatpush3.bf16.msra.mxu1 %v6426_v50 }
0x28c6   : > { %v6117_v51 = vpop.f32.mrb[48].mxu0 }
0x28c7   : > { %v4251_v53 = vpop.f32.mrb[49].mxu0 }
0x28c8   : > { %v6118_v55 = vpop.f32.mrb[50].mxu0 }
0x28c9   : > { %v4254_v56 = vpop.f32.mrb[51].mxu0 }
0x28ca   : > { %v4266_v58 = vadd.f32 %v4254_v56, %v4251_v53 }
0x28cc   : > { %v4267_v59 = vadd.f32 %v6117_v51, %v4266_v58 }
0x28ce   : > { %v4268_v33 = vadd.f32 %v6118_v55, %v4267_v59 }
0x28d0   : > { %v7593_v39 = vadd.f32 %v4268_v33, %v7475_v8 }
0x28d2   : > { %v4272_v60 = vmul.f32 %v7593_v39, %v7593_v39 }
0x28d4   : > { %v4273_v62 = vsel %vm1315_vm0, %v4272_v60, 0.0 }
0x28d5   : > { %4274 = vadd.xlane.f32.xlu1 %v4273_v62 }
0x28e6   : > { %v6157_v15 = vpop.f32.mrb[52].mxu0 }
0x28e7   : > { %v4519_v2 = vpop.f32.mrb[53].mxu0 }
0x28e8   : > { %v6158_v5 = vpop.f32.mrb[54].mxu0 }
0x28e9   : > { %v7598_v7 = vpack.c.bf16 %v6158_v5, %v6157_v15  ;;  %v4522_v9 = vpop.f32.mrb[55].mxu0 }
0x28ea   : > { %v7600_v10 = vpack.c.bf16 %v4522_v9, %v4519_v2 }
0x28eb   : > { %v4553_v31 = vsel %vm1477_vm3, %v7598_v7, 0 }
0x28ec   : > { %6221 = vmatprep.subr.msk.bf16.mxu1 %vm1477_vm3, %v7600_v10  ;;  %v4550_v47 = vsel %vm1477_vm3, %v7600_v10, 0 }
0x2962   : > { %v4275_v8 = vpop.xlane.xlu1 %4274 }
0x2963   : > { %v4276_v37 = vmul.f32 0.03125, %v4275_v8 }
0x2965   : > { %v4277_v12 = vadd.f32 1e-06, %v4276_v37 }
0x2967   : > { %6543 = vrsqrt.f32 %v4277_v12 }
0x2971   : > { %v6544_v18 = vpop.eup %6543 }
0x2972   : > { %v4279_v20 = vmul.f32 %v6544_v18, %v7593_v39 }
0x2974   : > { %v4286_v52 = vmul.f32 %v5495_v19, %v4279_v20 }
0x2976   : > { %4288 = vrot.lane.b32.xlu0 %v4286_v52, %s7834_s16 }
0x297a   : > { %4291 = vrot.lane.b32.xlu0 %v4286_v52, %s7833_s22 }
0x297e   : > { %4294 = vrot.lane.b32.xlu0 %v4286_v52, %s7835_s23  ;;  %s7717_s23 = scalar_lea.hbm %s6844_s20, %s5584_s7 }
0x29e8   : > { %v4289_v22 = vpop.permute.xlu0 %4288 }
0x29e9   : > { %v4297_v24 = vsel %vm1315_vm0, %v4286_v52, %v4289_v22 }
0x29ec   : > { %v4292_v23 = vpop.permute.xlu0 %4291 }
0x29ed   : > { %v4298_v0 = vsel %vm1342_vm1, %v4297_v24, %v4292_v23 }
0x29f0   : > { %v4295_v27 = vpop.permute.xlu0 %4294 }
0x29f1   : > { %v4299_v1 = vsel %vm1344_vm2, %v4298_v0, %v4295_v27 }
0x29f2   : > { %v4300_v57 = vmul.f32 %v6589_v3, %v4299_v1  ;;  %v4301_v11 = vmul.f32 %v6590_v21, %v4299_v1  ;;  %v4302_v14 = vmul.f32 %v7499_v32, %v4299_v1  ;;  %v4303_v54 = vmul.f32 %v7503_v34, %v4299_v1 }
0x29f4   : > { %v4304_v4 = vpack.c.bf16 %v4301_v11, %v4300_v57  ;;  %v4305_v30 = vpack.c.bf16 %v4303_v54, %v4302_v14 }
0x29f6   : > { %6135 = vmatprep.mubr.bf16.mxu1 %v4304_v4 }
0x29f7   : > { %6136 = vmatmul.mubr.bf16.vlgmr.msra.gmra.mrb[64].mxu1 %v4305_v30 }
0x29f8   : > { %6160 = vmatpush3.bf16.xpose.msra.mxu1 %v4550_v47 }
0x29f9   : > { %6222 = vmatprep.subr.msk.bf16.mxu1 %vm1477_vm3, %v7598_v7 }
0x2a00   : > { %6162 = vmatpush3.bf16.xpose.msra.mxu1 %v4553_v31 }
0x2a01   : > { %6183 = vmatprep.subr.bf16.mxu1 %v6692_v26 }
0x2aca   : > { %v6137_v32 = vpop.f32.mrb[64].mxu1 }
0x2acb   : > { %v4405_v36 = vpop.f32.mrb[65].mxu1 }
0x2acc   : > { %v6138_v34 = vpop.f32.mrb[66].mxu1 }
0x2acd   : > { %v4540_v35 = vpack.c.bf16 %v6138_v34, %v6137_v32  ;;  %v4408_v40 = vpop.f32.mrb[67].mxu1  ;;  %v6427_v32 = vld [vmem:[%s7849_s30 + $0x10] sm:$0xff]  }
0x2ace   : > { %v4539_v41 = vpack.c.bf16 %v4408_v40, %v4405_v36  ;;  %v6428_v36 = vld [vmem:[%s7849_s30 + $0x18] sm:$0xff]  }
0x2ad0   : > { %6163 = vmatprep.mubr.msk.bf16.mxu1 %vm1477_vm3, %v4539_v41 }
0x2ad1   : > { %6164 = vmatmul.mubr.msk.bf16.vlgmr.msra.gmra.mrb[68].mxu1 %vm1477_vm3, %v4540_v35 }
0x2ad2   : > { %6187 = vmatprep.mubr.msk.bf16.mxu1 %vm6693_vm6, %v6692_v26 }
0x2ba4   : > { %v6165_v43 = vpop.f32.mrb[68].mxu1 }
0x2ba5   : > { %v4598_v6 = vadd.f32 %v6165_v43, %v7405_v16  ;;  %v4589_v44 = vpop.f32.mrb[69].mxu1 }
0x2ba6   : > { %v4590_v46 = vadd.f32 %v4589_v44, %v7395_v63  ;;  %v6166_v48 = vpop.f32.mrb[70].mxu1 }
0x2ba7   : > { %v4592_v49 = vpop.f32.mrb[71].mxu1  ;;  %v4610_v61 = vsel %vm1315_vm0, %v4598_v6, -inf  ;;  %v4601_v51 = vadd.f32 %v6166_v48, %v7398_v17 }
0x2ba8   : > { %v4593_v13 = vadd.f32 %v4592_v49, %v7401_v45  ;;  %4611 = vmax.xlane.f32.xlu1 %v4610_v61  ;;  %v4604_v42 = vsel %vm1315_vm0, %v4590_v46, -inf }
0x2ba9   : > { %4605 = vmax.xlane.f32.xlu0 %v4604_v42  ;;  %v4613_v16 = vsel %vm1315_vm0, %v4601_v51, -inf }
0x2baa   : > { %v4607_v50 = vsel %vm1315_vm0, %v4593_v13, -inf }
0x2bac   : > { %4608 = vmax.xlane.f32.xlu1 %v4607_v50 }
0x2bb0   : > { %4614 = vmax.xlane.f32.xlu1 %v4613_v16 }
0x2c35   : > { %v4612_v53 = vpop.xlane.xlu1 %4611 }
0x2c36   : > { %v4618_v63 = vsub.f32 %v4598_v6, %v4612_v53  ;;  %v4606_v55 = vpop.xlane.xlu0 %4605 }
0x2c37   : > { %v4616_v56 = vsub.f32 %v4590_v46, %v4606_v55 }
0x2c38   : > { %v4624_v58 = vmul.f32 1.442695, %v4618_v63 }
0x2c39   : > { %v4620_v59 = vmul.f32 1.442695, %v4616_v56  ;;  %v4609_v33 = vpop.xlane.xlu1 %4608 }
0x2c3a   : > { %6545 = vpow2.f32 %v4624_v58  ;;  %v4617_v45 = vsub.f32 %v4593_v13, %v4609_v33 }
0x2c3b   : > { %6547 = vpow2.f32 %v4620_v59 }
0x2c3c   : > { %v4622_v15 = vmul.f32 1.442695, %v4617_v45 }
0x2c3d   : > { %v4615_v60 = vpop.xlane.xlu1 %4614 }
0x2c3e   : > { %v4619_v62 = vsub.f32 %v4601_v51, %v4615_v60 }
0x2c40   : > { %v4626_v2 = vmul.f32 1.442695, %v4619_v62 }
0x2c42   : > { %6549 = vpow2.f32 %v4626_v2 }
0x2c43   : > { %6551 = vpow2.f32 %v4622_v15 }
0x2c44   : > { %v6546_v17 = vpop.eup %6545 }
0x2c45   : > { %v4634_v5 = vsel %vm1315_vm0, %v6546_v17, 0.0  ;;  %v6548_v9 = vpop.eup %6547 }
0x2c46   : > { %4635 = vadd.xlane.f32.xlu0 %v4634_v5  ;;  %v4628_v8 = vsel %vm1315_vm0, %v6548_v9, 0.0 }
0x2c4a   : > { %4629 = vadd.xlane.f32.xlu0 %v4628_v8 }
0x2c4c   : > { %v6550_v37 = vpop.eup %6549 }
0x2c4d   : > { %v4637_v12 = vsel %vm1315_vm0, %v6550_v37, 0.0  ;;  %v6552_v18 = vpop.eup %6551 }
0x2c4e   : > { %4638 = vadd.xlane.f32.xlu1 %v4637_v12  ;;  %v4631_v19 = vsel %vm1315_vm0, %v6552_v18, 0.0 }
0x2c52   : > { %4632 = vadd.xlane.f32.xlu1 %v4631_v19 }
0x2c60   : > { %4652 = vrot.lane.b32.xlu0 %v7600_v10, %s7836_s5 }
0x2c63   : > { %4654 = vrot.lane.b32.xlu1 %v7598_v7, %s7836_s5  ;;  %s7855_s5 = sld [smem:[#allocation8_spill]] }
0x2c69   : > { %s941_s9 = scalar_lea.vmem %s7855_s5, %s7155_s26  ;;  %s6695_s5 = smov [#allocation2]  }
0x2cd3   : > { %v4636_v20 = vpop.xlane.xlu0 %4635 }
0x2cd7   : > { %v4630_v52 = vpop.xlane.xlu0 %4629 }
0x2cdb   : > { %v4639_v22 = vpop.xlane.xlu1 %4638  ;;  %v4653_v23 = vpop.permute.xlu0 %4652 }
0x2cdc   : > { %6167 = vmatprep.subr.bf16.mxu0 %v4653_v23  ;;  %6553 = vrcp.f32 %v4639_v22 }
0x2cdd   : > { %6168 = vmatpush3.bf16.msra.mxu0 %v4653_v23  ;;  %6555 = vrcp.f32 %v4630_v52  ;;  %v6430_v52 = vld [vmem:[%s7851_s18 + $0x18] sm:$0xff]  }
0x2cde   : > { %6557 = vrcp.f32 %v4636_v20  ;;  %v6429_v20 = vld [vmem:[%s7851_s18 + $0x10] sm:$0xff]  }
0x2cdf   : > { %v4633_v24 = vpop.xlane.xlu1 %4632  ;;  %6184 = vmatpush3.bf16.msra.mxu1 %v6429_v20 }
0x2ce0   : > { %6559 = vrcp.f32 %v4633_v24  ;;  %6185 = vmatprep.subr.bf16.mxu1 %v6692_v26 }
0x2ce3   : > { %v4655_v0 = vpop.permute.xlu1 %4654  ;;  %6186 = vmatpush3.bf16.msra.mxu1 %v6430_v52 }
0x2ce4   : > { %6169 = vmatprep.subr.bf16.mxu0 %v4655_v0  ;;  %6203 = vmatprep.subr.bf16.mxu1 %v6692_v26 }
0x2ce5   : > { %6170 = vmatpush3.bf16.msra.mxu0 %v4655_v0  ;;  %v5557_v0 = vld [vmem:[%s7852_s1 + $0x1] ss:$0 sm:$0xff] }
0x2ce6   : > { %v6554_v27 = vpop.eup %6553  ;;  %6175 = vmatprep.subr.bf16.mxu0 %v6427_v32 }
0x2ce7   : > { %v6556_v1 = vpop.eup %6555  ;;  %v4647_v7 = vmul.f32 %v6554_v27, %v6550_v37 }
0x2ce8   : > { %v6558_v10 = vpop.eup %6557  ;;  %v4644_v57 = vmul.f32 %v6556_v1, %v6548_v9 }
0x2ce9   : > { %v4646_v11 = vmul.f32 %v6558_v10, %v6546_v17 }
0x2cea   : > { %v6560_v3 = vpop.eup %6559 }
0x2ceb   : > { %v4645_v21 = vmul.f32 %v6560_v3, %v6552_v18  ;;  %v4649_v54 = vpack.c.bf16 %v4647_v7, %v4646_v11  ;;  %v6431_v3 = vld [vmem:[%s7854_s25 + $0x20] sm:$0xff]   ;;  %v6432_v7 = vld [vmem:[%s7854_s25 + $0x28] sm:$0xff]  }
0x2ced   : > { %v4648_v14 = vpack.c.bf16 %v4645_v21, %v4644_v57  ;;  %v6433_v57 = vld [vmem:[%s7854_s25 + $0x30] sm:$0xff]   ;;  %v6434_v21 = vld [vmem:[%s7854_s25 + $0x38] sm:$0xff]  }
0x2cef   : > { %6171 = vmatprep.mubr.msk.bf16.mxu0 %vm1315_vm0, %v4648_v14 }
0x2cf0   : > { %6172 = vmatmul.mubr.msk.bf16.vlgmr.msra.gmra.mrb[56].mxu0 %vm1315_vm0, %v4649_v54 }
0x2cf1   : > { %6176 = vmatpush3.bf16.msra.mxu0 %v6427_v32 }
0x2cf2   : > { %6177 = vmatprep.subr.bf16.mxu0 %v6428_v36 }
0x2cf5   : > { %6178 = vmatpush3.bf16.msra.mxu0 %v6428_v36 }
0x2cf6   : > { %6191 = vmatprep.subr.bf16.mxu0 %v6692_v26 }
0x2dc3   : > { %v6173_v4 = vpop.f32.mrb[56].mxu0 }
0x2dc4   : > { %4721 = vrot.lane.b32.xlu1 %v6173_v4, %s7838_s14  ;;  %v4698_v30 = vpop.f32.mrb[57].mxu0 }
0x2dc5   : > { %v6174_v47 = vpop.f32.mrb[58].mxu0 }
0x2dc6   : > { %4723 = vrot.lane.b32.xlu0 %v6174_v47, %s7838_s14  ;;  %v4701_v31 = vpop.f32.mrb[59].mxu0 }
0x2dc8   : > { %4733 = vrot.lane.b32.xlu1 %v6173_v4, %s7839_s19 }
0x2dca   : > { %4735 = vrot.lane.b32.xlu0 %v6174_v47, %s7839_s19 }
0x2dcc   : > { %4717 = vrot.lane.b32.xlu1 %v4698_v30, %s7838_s14 }
0x2dce   : > { %4719 = vrot.lane.b32.xlu0 %v4701_v31, %s7838_s14 }
0x2dd0   : > { %4729 = vrot.lane.b32.xlu1 %v4698_v30, %s7839_s19 }
0x2dd2   : > { %4731 = vrot.lane.b32.xlu0 %v4701_v31, %s7839_s19 }
0x2dd4   : > { %4741 = vrot.lane.b32.xlu1 %v4698_v30, %s7841_s21 }
0x2dd6   : > { %4743 = vrot.lane.b32.xlu0 %v4701_v31, %s7841_s21 }
0x2dd8   : > { %4745 = vrot.lane.b32.xlu1 %v6173_v4, %s7841_s21 }
0x2dda   : > { %4747 = vrot.lane.b32.xlu0 %v6174_v47, %s7841_s21  ;;  %s920_s21 = sand.u32 1, %s6645_s10  }
0x2ddb   : > { %s5280_s14 = sshll.u32 %s920_s21, 3  ;;  %s5120_s16 = scalar_lea.sflag [#allocation3], %s920_s21 }
0x2ddc   : > { %s922_s19 = scalar_lea.vmem [#allocation2], %s5280_s14 }
0x2ddd   : > { %s5137_s11 = sshll.u32 %s922_s19, 4  ;;  %s5138_s11 = int_to_ptr.vmem [resolvable:$true] %s5137_s11 }
0x2e36   : > { %v4722_v34 = vpop.permute.xlu1 %4721 }
0x2e37   : > { %v4755_v16 = vsel %vm1477_vm3, %v6173_v4, %v4722_v34 }
0x2e38   : > { %v4724_v35 = vpop.permute.xlu0 %4723 }
0x2e39   : > { %v4756_v59 = vsel %vm1477_vm3, %v6174_v47, %v4724_v35 }
0x2e3a   : > { %v4734_v40 = vpop.permute.xlu1 %4733 }
0x2e3b   : > { %v4759_v63 = vsel %vm1690_vm5, %v4755_v16, %v4734_v40  ;;  %v6436_v16 = vld [vmem:[%s6839_s29 + $0x8] sm:$0xff]  }
0x2e3c   : > { %v4736_v41 = vpop.permute.xlu0 %4735 }
0x2e3d   : > { %v4760_v45 = vsel %vm1690_vm5, %v4756_v59, %v4736_v41 }
0x2e3e   : > { %v4718_v43 = vpop.permute.xlu1 %4717 }
0x2e3f   : > { %v4753_v48 = vsel %vm1477_vm3, %v4698_v30, %v4718_v43 }
0x2e40   : > { %v4720_v6 = vpop.permute.xlu0 %4719 }
0x2e41   : > { %v4754_v13 = vsel %vm1477_vm3, %v4701_v31, %v4720_v6 }
0x2e42   : > { %v4730_v44 = vpop.permute.xlu1 %4729 }
0x2e43   : > { %v4757_v49 = vsel %vm1690_vm5, %v4753_v48, %v4730_v44 }
0x2e44   : > { %v4732_v46 = vpop.permute.xlu0 %4731 }
0x2e45   : > { %v4758_v50 = vsel %vm1690_vm5, %v4754_v13, %v4732_v46 }
0x2e46   : > { %v4742_v61 = vpop.permute.xlu1 %4741 }
0x2e47   : > { %v4761_v42 = vsel %vm1695_vm4, %v4757_v49, %v4742_v61 }
0x2e48   : > { %v4744_v51 = vpop.permute.xlu0 %4743  ;;  %v4765_v55 = vmul.f32 %v7554_v25, %v4761_v42 }
0x2e49   : > { %v4762_v53 = vsel %vm1695_vm4, %v4758_v50, %v4744_v51  ;;  %v6435_v51 = vld [vmem:[%s6839_s29] sm:$0xff]  }
0x2e4a   : > { %v4766_v56 = vmul.f32 %v7558_v38, %v4762_v53  ;;  %v4746_v58 = vpop.permute.xlu1 %4745  ;;  %v6694_v53 = vmov 0  }
0x2e4b   : > { %v4763_v33 = vsel %vm1695_vm4, %v4759_v63, %v4746_v58  ;;  %6302 = vset.pattern.permute.xlu0 %v6694_v53  ;;  %v7705_v63 = vld [vmem:[%s941_s9] sm:$0xff]  ;;  %s6595_s9 = sshll.u32 %s6695_s5, 4  ;;  %s6596_s9 = int_to_ptr.vmem [resolvable:$false] %s6595_s9 }
0x2e4c   : > { %v4769_v60 = vpack.c.bf16 %v4766_v56, %v4765_v55  ;;  %v4748_v62 = vpop.permute.xlu0 %4747  ;;  %v4767_v2 = vmul.f32 %v7566_v29, %v4763_v33  ;;  %v5578_v33 = vld [vmem:[%s6834_s17] ss:$0 sm:$0xff]  ;;  %s6597_s14 = scalar_lea.vmem %s6596_s9, 256  ;;  %p6598_p0 = scmp.lt.s32.totalorder %s5138_s11, %s6596_s9 }
0x2e4d   : > { %v4764_v15 = vsel %vm1695_vm4, %v4760_v45, %v4748_v62 }
0x2e4e   : > { %v4768_v17 = vmul.f32 %v7570_v28, %v4764_v15  ;;  %6179 = vmatprep.mubr.msk.bf16.mxu0 %vm1315_vm0, %v4769_v60 }
0x2e50   : > { %v4770_v25 = vpack.c.bf16 %v4768_v17, %v4767_v2 }
0x2e52   : > { %6180 = vmatmul.mubr.msk.bf16.vlgmr.msra.gmra.mrb[60].mxu0 %vm1315_vm0, %v4770_v25 }
0x2e53   : > { %6199 = vmatprep.mubr.msk.bf16.mxu0 %vm6693_vm6, %v6692_v26  ;;  %6192 = vmatpush3.bf16.msra.mxu0 %v6431_v3 }
0x2e54   : > { %6193 = vmatprep.subr.bf16.mxu0 %v6692_v26 }
0x2e57   : > { %6194 = vmatpush3.bf16.msra.mxu0 %v6432_v7 }
0x2e58   : > { %6195 = vmatprep.subr.bf16.mxu0 %v6692_v26 }
0x2e5b   : > { %6196 = vmatpush3.bf16.msra.mxu0 %v6433_v57 }
0x2e5c   : > { %6197 = vmatprep.subr.bf16.mxu0 %v6692_v26 }
0x2e5f   : > { %6198 = vmatpush3.bf16.msra.mxu0 %v6434_v21 }
0x2f25   : > { %v6181_v38 = vpop.f32.mrb[60].mxu0 }
0x2f26   : > { %v4823_v5 = vpop.f32.mrb[61].mxu0 }
0x2f27   : > { %v6182_v9 = vpop.f32.mrb[62].mxu0 }
0x2f28   : > { %v4826_v8 = vpop.f32.mrb[63].mxu0 }
0x2f29   : > { %v4838_v37 = vadd.f32 %v4826_v8, %v4823_v5 }
0x2f2b   : > { %v4839_v12 = vadd.f32 %v6181_v38, %v4838_v37  ;;  %v5102_v37 = vlaneseq }
0x2f2d   : > { %v4840_v18 = vadd.f32 %v6182_v9, %v4839_v12  ;;  %v5103_v12 = vand.u32 127, %v5102_v37 }
0x2f2f   : > { %v4841_v29 = vadd.f32 %v4840_v18, %v7593_v39 }
0x2f31   : > { %v4844_v28 = vmul.f32 %v4841_v29, %v4841_v29 }
0x2f33   : > { %v4845_v19 = vsel %vm1315_vm0, %v4844_v28, 0.0 }
0x2f34   : > { %4846 = vadd.xlane.f32.xlu1 %v4845_v19 }
0x2fc1   : > { %v4847_v22 = vpop.xlane.xlu1 %4846 }
0x2fc2   : > { %v4848_v23 = vmul.f32 0.03125, %v4847_v22 }
0x2fc4   : > { %v4849_v24 = vadd.f32 1e-06, %v4848_v23 }
0x2fc6   : > { %6561 = vrsqrt.f32 %v4849_v24 }
0x2fd0   : > { %v6562_v39 = vpop.eup %6561 }
0x2fd1   : > { %v4851_v27 = vmul.f32 %v6562_v39, %v4841_v29 }
0x2fd3   : > { %v4858_v1 = vmul.f32 %v5557_v0, %v4851_v27 }
0x2fd5   : > { %v4873_v10 = vpack.c.bf16 %v4858_v1, %v4858_v1 }
0x2fd7   : > { %6188 = vmatmul.mubr.msk.bf16.vlgmr.msra.gmra.mrb[72].mxu1 %vm1315_vm0, %v4873_v10 }
0x2fd8   : > { %6207 = vmatprep.mubr.msk.bf16.mxu1 %vm6693_vm6, %v6692_v26  ;;  %6204 = vmatpush3.bf16.msra.mxu1 %v6435_v51 }
0x2fd9   : > { %6205 = vmatprep.subr.bf16.mxu1 %v6692_v26 }
0x2fdc   : > { %6206 = vmatpush3.bf16.msra.mxu1 %v6436_v16 }
0x30aa   : > { %v4923_v11 = vpop.f32.mrb[72].mxu1 }
0x30ab   : > { %4939 = vrot.lane.b32.xlu0 %v4923_v11, %s7833_s22  ;;  %v6189_v14 = vpop.f32.mrb[73].mxu1  ;;  %v4930_v30 = vmul.f32 0.044715, %v4923_v11  ;;  %v4929_v40 = vmul.f32 0.5, %v4923_v11  ;;  %s6591_s22 = scalar_lea.vmem %s5138_s11, 128 }
0x30ac   : > { %v4926_v54 = vpop.f32.mrb[74].mxu1  ;;  %p6592_p11 = scmp.ne.s32.totalorder %s5138_s11, %s6591_s22  ;;  %p6599_p1 = scmp.lt.s32.totalorder %s6597_s14, %s6591_s22 }
0x30ad   : > { %v6190_v4 = vpop.f32.mrb[75].mxu1  ;;  %v4931_v47 = vmul.f32 %v4930_v30, %v4923_v11 }
0x30ae   : > { %p6593_p12 = pnand %p6592_p11, %p6889_p5  ;;  %p6600_p2 = por %p6599_p1, %p6598_p0 }
0x30af   : > { %v4932_v31 = vmul.f32 %v4931_v47, %v4923_v11 }
0x30b0   : > { %p6594_p13 = pneg %p6593_p12 }
0x30b1   : > { %v4933_v32 = vadd.f32 %v4932_v31, %v4923_v11 }
0x30b2   : > { %p6601_p3 = pnand %p6600_p2, %p6594_p13 }
0x30b3   : > { %v4934_v36 = vmul.f32 0.7978846, %v4933_v32 }
0x30b5   : > { %6563 = vtanh.f32 %v4934_v36 }
0x30bf   : > { %v6564_v34 = vpop.eup %6563 }
0x30c0   : > { %v4936_v35 = vadd.f32 1.0, %v6564_v34 }
0x30c2   : > { %v4937_v41 = vmul.f32 %v4936_v35, %v4929_v40 }
0x311d   : > { %v4940_v43 = vpop.permute.xlu0 %4939 }
0x311e   : > { %v4942_v6 = vmul.f32 %v4940_v43, %v4937_v41 }
0x3120   : > { %v4943_v44 = vpack.c.bf16 %v4942_v6, %v4942_v6 }
0x3122   : > { %6200 = vmatmul.mubr.msk.bf16.vlgmr.msra.gmra.mrb[64].mxu0 %vm1342_vm1, %v4943_v44 }
0x31f5   : > { %v5005_v46 = vpop.f32.mrb[64].mxu0 }
0x31f6   : > { %v5011_v48 = vadd.f32 %v5005_v46, %v4841_v29  ;;  %v6201_v49 = vpop.f32.mrb[65].mxu0 }
0x31f7   : > { %v5008_v61 = vpop.f32.mrb[66].mxu0 }
0x31f8   : > { %v5013_v13 = vmul.f32 %v5011_v48, %v5011_v48  ;;  %v6202_v42 = vpop.f32.mrb[67].mxu0 }
0x31fa   : > { %v5014_v50 = vsel %vm1315_vm0, %v5013_v13, 0.0 }
0x31fb   : > { %5015 = vadd.xlane.f32.xlu0 %v5014_v50 }
0x3211   : > { %5105 = vperm.xlu0 %6302, %v7705_v63  }
0x3288   : > { %v5016_v55 = vpop.xlane.xlu0 %5015 }
0x3289   : > { %v5017_v56 = vmul.f32 0.03125, %v5016_v55 }
0x328b   : > { %v5018_v58 = vadd.f32 1e-06, %v5017_v56 }
0x328d   : > { %6565 = vrsqrt.f32 %v5018_v58 }
0x3290   : > { %v5106_v18 = vpop.permute.xlu0 %5105 }
0x3291   : > { %vm5107_vm7 = vcmp.eq.s32.totalorder %v5103_v12, %v5106_v18 }
0x3297   : > { %v6566_v59 = vpop.eup %6565 }
0x3298   : > { %v5020_v45 = vmul.f32 %v6566_v59, %v5011_v48 }
0x329a   : > { %v5027_v60 = vmul.f32 %v5578_v33, %v5020_v45 }
0x329c   : > { %v5028_v62 = vpack.c.bf16 %v5027_v60, %v5027_v60 }
0x329e   : > { %6208 = vmatmul.mubr.msk.bf16.vlgmr.msra.gmra.mrb[76].mxu1 %vm1315_vm0, %v5028_v62 }
0x3371   : > { %v5082_v15 = vpop.f32.mrb[76].mxu1 }
0x3372   : > { %v6209_v2 = vpop.f32.mrb[77].mxu1  ;;  %v5090_v17 = vsel %vm1315_vm0, %v5082_v15, -inf  ;;  %5088 = vst.msk [vmem:[%s922_s19] sm:$0xff] %vm1315_vm0, %v5082_v15  ;;  %v5108_v19 = vsel %vm5107_vm7, %v5082_v15, 0.0 }
0x3373   : > { %5091 = vmax.xlane.f32.xlu1 %v5090_v17  ;;  %v5085_v25 = vpop.f32.mrb[78].mxu1  ;;  %v5109_v20 = vsel %vm1315_vm0, %v5108_v19, 0.0 }
0x3374   : > { %v6210_v38 = vpop.f32.mrb[79].mxu1 }
0x3400   : > { %v5092_v5 = vpop.xlane.xlu1 %5091 }
0x3401   : > { %v5093_v9 = vsub.f32 %v5082_v15, %v5092_v5 }
0x3403   : > { %v5094_v8 = vmul.f32 1.442695, %v5093_v9 }
0x3405   : > { %6567 = vpow2.f32 %v5094_v8 }
0x340f   : > { %v6568_v29 = vpop.eup %6567 }
0x3410   : > { %v5096_v28 = vsel %vm1315_vm0, %v6568_v29, 0.0 }
0x3411   : > { %5097 = vadd.xlane.f32.xlu1 %v5096_v28 }
0x3415   : > { %5110 = vadd.xlane.f32.xlu1 %v5109_v20 }
0x3416   : > { %6604 = shalt.err (!%p6601_p3)
}
0x3417   : > { %s6605_s0 = scalar_lea.hbm %s7717_s23, 128  ;;  %s6609_s21 = scalar_lea.hbm %s6844_s20, 256 }
0x3418   : > { %p6606_p4 = scmp.ne.s32.totalorder %s7717_s23, %s6605_s0  ;;  %p6610_p9 = scmp.lt.u32.totalorder %s7717_s23, %s6844_s20 }
0x3419   : > { %p6611_p10 = scmp.lt.u32.totalorder %s6609_s21, %s6605_s0  ;;  %p6613_p12 = scmp.lt.u32.totalorder %s6605_s0, %s7717_s23 }
0x341a   : > { %p6607_p7 = pnand %p6606_p4, %p6889_p5 }
0x341b   : > { %p6612_p11 = por %p6611_p10, %p6610_p9 }
0x341c   : > { %p6608_p8 = pneg %p6607_p7 }
0x341d   : > { %p6614_p0 = por %p6613_p12, %p6612_p11 }
0x341f   : > { %p6615_p13 = pnand %p6614_p0, %p6608_p8 }
0x3421   : > { %6618 = shalt.err (!%p6615_p13)
}
0x3422   : > { %s7856_s19 = sld [smem:[#allocation27_spill]]  ;;  %vm5112_vm8 = vcmp.ne.s32.totalorder %v7705_v63, 4294967196  ;;  %vm5117_vm9 = vcmask 7168  }
0x3423   : > { %6223 = dma.vmem_to_hbm [thread:$0]  (%p6889_p5), %s5138_s11, 128, %s7717_s23, %s5120_s16   ;;  %v5582_v39 = vsel %vm5112_vm8, 1.0, %v6692_v26 }
0x3428   : > { %s945_s7 = scalar_lea.vmem %s7856_s19, %s7155_s26 }
0x349e   : > { %v5098_v52 = vpop.xlane.xlu1 %5097 }
0x349f   : > { %6569 = vlog2.f32 %v5098_v52 }
0x34a2   : > { %v5111_v0 = vpop.xlane.xlu1 %5110 }
0x34a9   : > { %v6570_v22 = vpop.eup %6569 }
0x34aa   : > { %v5100_v23 = vmul.f32 0.6931472, %v6570_v22 }
0x34ac   : > { %v5101_v24 = vadd.f32 %v5100_v23, %v5092_v5 }
0x34ae   : > { %v5115_v27 = vsub.f32 %v5101_v24, %v5111_v0 }
0x34b0   : > { %v5116_v1 = vmul.f32 %v5582_v39, %v5115_v27 }
0x34b2   : > { %5118 = vst.msk [vmem:[%s945_s7] sm:$0xff] %vm5117_vm9, %v5116_v1 }
0x34b3 PF: > { %s7857_s28 = sld [smem:[#allocation28_spill]]  ;;  %p6229_p5 = scmp.ge.s32.totalorder %s6653_s15, 2 }
0x34b5   : > { %p6226_p1 = pnand %p6229_p5, %p6893_p6 }
0x34b9   : > { %s5152_s11 = sand.u32 1, %s7857_s28  }
0x34ba   : > { %s5153_s23 = scalar_lea.sflag [#allocation3], %s5152_s11 }
0x34bb   : > { %6636 = dma.done.wait (!%p6226_p1), %s5153_s23, 128  }
0x34bc   : > { %6638 = vsyncadd (!%p6226_p1), %s5153_s23, 4294967168  ;;  %s7859_s15 = sld [smem:[#allocation30_spill]]  ;;  %s7860_s16 = sld [smem:[#allocation29_spill]] }
0x34bd   : > { %s7861_s11 = sld [smem:[#allocation31_spill]]  ;;  %s7862_s7 = smov %s6645_s10 }
0x34c2   : > { %p70_p2 = scmp.ge.s32.totalorder %s7859_s15, 4   ;;  %s7863_s10 = smov %s7860_s16 }
0x34c4   :  { %72 = sbr.rel (!%p70_p2) target bundleno = 64 (0x40), region = 230 }
0x34cb   :  { %5165 = vsyncpa [#allocation3], 1 }
0x34cc   :  { %5167 = vsyncpa [#allocation3 + $0x1], 1 }

</bundles_post_ra>
